<compile_context>
chip_gen: v5e
topology: v5e:2x2
jax: 0.10.0
libtpu: 0.0.40
codegen_flags: <defaults>
</compile_context>

<pallas_src>
import functools

import jax
import jax.numpy as jnp
from jax import lax
from jax.experimental import pallas as pl
from jax.experimental.pallas import tpu as pltpu


def _round_up(x, m):
    return ((x + m - 1) // m) * m


# -----------------------------------------------------------------------------
# Per-tile update shared by both kernels: fused gating projection + online
# softmax over the instance axis + weighted accumulation of x.
# -----------------------------------------------------------------------------
def _tile_update(x_ref, wvu_ref, bvu_ref, ww_ref, bw_ref,
                 m_scr, l_scr, acc_scr, *, row_start, n_valid, padded, d, k):
    x = x_ref[...]                                             # (TN, L), compute dtype

    # Fused gating projection: one (TN, L) @ (L, 2D) MXU pass for both branches.
    h = jnp.dot(x, wvu_ref[...], preferred_element_type=jnp.float32)
    h = h + bvu_ref[...].astype(jnp.float32)                   # (TN, 2D)
    a_v = jnp.tanh(h[:, :d])                                   # (TN, D)
    # sigmoid(z) == 0.5*(tanh(0.5*z)+1): one EUP pass instead of exp+recip.
    a_u = 0.5 * (jnp.tanh(0.5 * h[:, d:]) + 1.0)               # (TN, D)
    gated = a_v * a_u                                          # (TN, D) f32

    # Attention logits, kept un-transposed as (TN, K); softmax over axis 0.
    logits = jnp.dot(gated.astype(ww_ref.dtype), ww_ref[...],
                     preferred_element_type=jnp.float32)
    logits = logits + bw_ref[...].astype(jnp.float32)          # (TN, K)

    if padded:
        row = row_start + lax.broadcasted_iota(jnp.int32, logits.shape, 0)
        logits = jnp.where(row < n_valid, logits, -jnp.inf)

    # Online softmax recurrence across grid steps.
    m_prev = m_scr[...]                                        # (1, K)
    m_new = jnp.maximum(m_prev, jnp.max(logits, axis=0, keepdims=True))
    # Guard against an all-padded tile/split (m_new == -inf would give NaNs).
    m_safe = jnp.where(m_new == -jnp.inf, jnp.float32(0.0), m_new)
    alpha = jnp.exp(m_prev - m_safe)                           # (1, K)
    p = jnp.exp(logits - m_safe)                               # (TN, K); padded rows -> 0
    l_scr[...] = alpha * l_scr[...] + jnp.sum(p, axis=0, keepdims=True)

    # Weighted sum of x, contracting N directly (no (TN,K) transpose/relayout).
    xf = x.astype(jnp.float32)
    if k == 1:
        px = jnp.sum(p * xf, axis=0, keepdims=True)            # (1, L)
    elif k <= 8:
        cols = [jnp.sum(p[:, j:j + 1] * xf, axis=0, keepdims=True)
                for j in range(k)]
        px = jnp.concatenate(cols, axis=0)                     # (K, L)
    else:
        px = lax.dot_general(p.astype(x.dtype), x, (((0,), (0,)), ((), ())),
                             preferred_element_type=jnp.float32)
    acc_scr[...] = alpha.T * acc_scr[...] + px
    m_scr[...] = m_new


# -----------------------------------------------------------------------------
# Single-split kernel: classifier fused in-kernel, one final output store.
# -----------------------------------------------------------------------------
def _attn_cls_kernel(x_ref, wvu_ref, bvu_ref, ww_ref, bw_ref, wc_ref, bc_ref,
                     out_ref, m_scr, l_scr, acc_scr,
                     *, n_valid, tile_n, padded, d, k):
    step = pl.program_id(0)

    @pl.when(step == 0)
    def _init():
        m_scr[...] = jnp.full_like(m_scr, -jnp.inf)
        l_scr[...] = jnp.zeros_like(l_scr)
        acc_scr[...] = jnp.zeros_like(acc_scr)

    _tile_update(x_ref, wvu_ref, bvu_ref, ww_ref, bw_ref,
                 m_scr, l_scr, acc_scr,
                 row_start=step * tile_n, n_valid=n_valid, padded=padded,
                 d=d, k=k)

    @pl.when(step == pl.num_programs(0) - 1)
    def _finalize():
        inv_l = pl.reciprocal(l_scr[...], approx=False)        # (1, K)
        afeat = acc_scr[...] * inv_l.T                         # (K, L)
        pred = jnp.dot(afeat.astype(wc_ref.dtype), wc_ref[...],
                       preferred_element_type=jnp.float32)     # (K, C)
        out_ref[...] = (pred + bc_ref[...].astype(jnp.float32)).astype(out_ref.dtype)


# -----------------------------------------------------------------------------
# Multi-split kernel (v7x megacore): leading "parallel" axis over independent
# halves of N; per-split partial (m, l, acc) written once per split.
# -----------------------------------------------------------------------------
def _attn_partial_kernel(x_ref, wvu_ref, bvu_ref, ww_ref, bw_ref,
                         m_out, l_out, acc_out, m_scr, l_scr, acc_scr,
                         *, n_valid, tile_n, rows_per_split, padded, d, k, l_dim):
    split = pl.program_id(0)
    step = pl.program_id(1)

    @pl.when(step == 0)
    def _init():
        m_scr[...] = jnp.full_like(m_scr, -jnp.inf)
        l_scr[...] = jnp.zeros_like(l_scr)
        acc_scr[...] = jnp.zeros_like(acc_scr)

    _tile_update(x_ref, wvu_ref, bvu_ref, ww_ref, bw_ref,
                 m_scr, l_scr, acc_scr,
                 row_start=split * rows_per_split + step * tile_n,
                 n_valid=n_valid, padded=padded, d=d, k=k)

    @pl.when(step == pl.num_programs(1) - 1)
    def _write():
        m_out[...] = m_scr[...].reshape(1, 1, k)
        l_out[...] = l_scr[...].reshape(1, 1, k)
        acc_out[...] = acc_scr[...].reshape(1, k, l_dim)


# -----------------------------------------------------------------------------
# Host-side wrapper.
# -----------------------------------------------------------------------------
def prepare_params(params, compute_dtype=jnp.bfloat16):
    """Fuse Wv|Wu ONCE (not per forward call) and cast MXU operands to the
    streaming dtype.  Biases stay f32 (added after the f32 accumulation)."""
    return {
        "wvu": jnp.concatenate([params["wv"], params["wu"]], axis=1).astype(compute_dtype),
        "bvu": jnp.concatenate([params["bv"], params["bu"]], axis=1).astype(jnp.float32),
        "ww": params["ww"].astype(compute_dtype),
        "bw": params["bw"].astype(jnp.float32),
        "wc": params["wc"].astype(compute_dtype),
        "bc": params["bc"].astype(jnp.float32),
    }


def attention_with_classifier(x, fused, *, tile_n=1024, num_splits=None):
    """x: (N, L) bag of instance features.  fused: output of prepare_params."""
    N, L = x.shape
    cd = fused["wvu"].dtype
    D2 = fused["wvu"].shape[1]
    D = D2 // 2
    K = fused["ww"].shape[1]
    C = fused["wc"].shape[1]

    # Cast x once for streaming (bf16 by default: halves HBM bytes, native MXU).
    x_in = x.astype(cd)

    # Sublane multiple: 16 for packed bf16, 8 for f32; tile must respect it.
    sub = 16 if jnp.dtype(cd).itemsize < 4 else 8
    tn = max(sub, min(_round_up(tile_n, sub), _round_up(N, sub)))

    if num_splits is None:
        # v7x has 2 TCs; split only when each half is guaranteed valid rows.
        num_splits = 2 if N >= 2 * tn else 1
    S = max(1, int(num_splits))

    n_pad = _round_up(N, S * tn)
    if n_pad != N:
        x_in = jnp.pad(x_in, ((0, n_pad - N), (0, 0)))
    padded = n_pad != N
    rows_per_split = n_pad // S
    tiles_per_split = rows_per_split // tn

    # Scoped-VMEM budget with headroom (v5e default is only 16 MiB).
    est = (2 * tn * L + 2 * (L * D2 + D * K + L * C)) * jnp.dtype(cd).itemsize \
        + 4 * (K * L + 16 * K) + (1 << 20)
    vmem_limit = int(min(64 << 20, max(32 << 20, 2 * est)))

    weight_specs = [
        pl.BlockSpec((L, D2), lambda *_: (0, 0)),    # fused Wv|Wu (resident)
        pl.BlockSpec((1, D2), lambda *_: (0, 0)),    # fused bv|bu
        pl.BlockSpec((D, K), lambda *_: (0, 0)),     # Ww
        pl.BlockSpec((1, K), lambda *_: (0, 0)),     # bw
    ]
    scratch = [
        pltpu.VMEM((1, K), jnp.float32),             # running max
        pltpu.VMEM((1, K), jnp.float32),             # running sum-exp
        pltpu.VMEM((K, L), jnp.float32),             # running weighted sum of x
    ]

    if S == 1:
        kernel = functools.partial(_attn_cls_kernel, n_valid=N, tile_n=tn,
                                   padded=padded, d=D, k=K)
        grid_spec = pltpu.PrefetchScalarGridSpec(
            num_scalar_prefetch=0,
            grid=(tiles_per_split,),
            in_specs=[pl.BlockSpec((tn, L), lambda i: (i, 0))] + weight_specs + [
                pl.BlockSpec((L, C), lambda *_: (0, 0)),   # Wc
                pl.BlockSpec((1, C), lambda *_: (0, 0)),   # bc
            ],
            out_specs=pl.BlockSpec((K, C), lambda *_: (0, 0)),
            scratch_shapes=scratch,
        )
        return pl.pallas_call(
            kernel,
            out_shape=jax.ShapeDtypeStruct((K, C), jnp.float32),
            grid_spec=grid_spec,
            compiler_params=pltpu.CompilerParams(
                dimension_semantics=("arbitrary",),
                vmem_limit_bytes=vmem_limit),
        )(x_in, fused["wvu"], fused["bvu"], fused["ww"], fused["bw"],
          fused["wc"], fused["bc"])

    # S >= 2: independent halves of N on a parallel axis; tiny merge epilogue.
    kernel = functools.partial(_attn_partial_kernel, n_valid=N, tile_n=tn,
                               rows_per_split=rows_per_split, padded=padded,
                               d=D, k=K, l_dim=L)
    grid_spec = pltpu.PrefetchScalarGridSpec(
        num_scalar_prefetch=0,
        grid=(S, tiles_per_split),
        in_specs=[pl.BlockSpec((tn, L),
                               lambda s, i: (s * tiles_per_split + i, 0))]
                 + weight_specs,
        out_specs=[
            pl.BlockSpec((1, 1, K), lambda s, i: (s, 0, 0)),
            pl.BlockSpec((1, 1, K), lambda s, i: (s, 0, 0)),
            pl.BlockSpec((1, K, L), lambda s, i: (s, 0, 0)),
        ],
        scratch_shapes=scratch,
    )
    m_p, l_p, acc_p = pl.pallas_call(
        kernel,
        out_shape=(jax.ShapeDtypeStruct((S, 1, K), jnp.float32),
                   jax.ShapeDtypeStruct((S, 1, K), jnp.float32),
                   jax.ShapeDtypeStruct((S, K, L), jnp.float32)),
        grid_spec=grid_spec,
        compiler_params=pltpu.CompilerParams(
            dimension_semantics=("parallel", "arbitrary"),
            vmem_limit_bytes=vmem_limit),
    )(x_in, fused["wvu"], fused["bvu"], fused["ww"], fused["bw"])

    # Cross-split online-softmax merge + classifier (K x L work -> negligible).
    m_glob = jnp.max(m_p, axis=0)                              # (1, K)
    coef = jnp.exp(m_p - m_glob)                               # (S, 1, K)
    l_tot = jnp.sum(coef * l_p, axis=0)                        # (1, K)
    acc_tot = jnp.sum(jnp.swapaxes(coef, 1, 2) * acc_p, axis=0)  # (K, L)
    afeat = acc_tot / jnp.swapaxes(l_tot, 0, 1)                # (K, L)
    pred = afeat @ fused["wc"].astype(jnp.float32) + fused["bc"].astype(jnp.float32)
    return pred


# -----------------------------------------------------------------------------
# Parameter init (torch xavier_normal_, zero bias) and pure-JAX reference.
# -----------------------------------------------------------------------------
def xavier_normal(key, fan_in, fan_out):
    std = jnp.sqrt(2.0 / (fan_in + fan_out))
    # stored pre-transposed: (in_features, out_features)
    return std * jax.random.normal(key, (fan_in, fan_out), dtype=jnp.float32)


def init_params(key, L, D, K, num_cls):
    kv, ku, kw, kc = jax.random.split(key, 4)
    return {
        "wv": xavier_normal(kv, L, D), "bv": jnp.zeros((1, D), jnp.float32),
        "wu": xavier_normal(ku, L, D), "bu": jnp.zeros((1, D), jnp.float32),
        "ww": xavier_normal(kw, D, K), "bw": jnp.zeros((1, K), jnp.float32),
        "wc": xavier_normal(kc, L, num_cls), "bc": jnp.zeros((1, num_cls), jnp.float32),
    }


def reference_forward(x, p):
    hp = lambda a, b: jnp.dot(a, b, precision=lax.Precision.HIGHEST)
    a_v = jnp.tanh(hp(x, p["wv"]) + p["bv"])
    a_u = jax.nn.sigmoid(hp(x, p["wu"]) + p["bu"])
    a = hp(a_v * a_u, p["ww"]) + p["bw"]
    attn = jax.nn.softmax(a.T, axis=1)
    afeat = hp(attn, x)
    return hp(afeat, p["wc"]) + p["bc"]


if __name__ == "__main__":
    # Module defaults L=512, D=128, K=1, num_cls=2; a small bag of N=300.
    N, L, D, K, NUM_CLS = 300, 512, 128, 1, 2

    key = jax.random.PRNGKey(0)
    kx, kp = jax.random.split(key)
    x = jax.random.normal(kx, (N, L), dtype=jnp.float32)
    params = init_params(kp, L, D, K, NUM_CLS)
    ref = reference_forward(x, params)

    fused_bf16 = prepare_params(params, jnp.bfloat16)
    fused_f32 = prepare_params(params, jnp.float32)

    # (a) default bf16 streaming, single tile covering the bag (with pad mask).
    pred_bf16 = jax.block_until_ready(attention_with_classifier(x, fused_bf16))
    # (b) bf16, 64-row tiles, 2-way split (v7x megacore path) + merge epilogue.
    pred_bf16_split = jax.block_until_ready(
        attention_with_classifier(x, fused_bf16, tile_n=64, num_splits=2))
    # (c) f32, streamed, 2-way split with masked tail.
    pred_f32_split = jax.block_until_ready(
        attention_with_classifier(x, fused_f32, tile_n=64, num_splits=2))
    # (d) f32, single split (classifier fused in-kernel), multi-tile stream.
    pred_f32 = jax.block_until_ready(
        attention_with_classifier(x, fused_f32, tile_n=128, num_splits=1))

    for pred in (pred_bf16, pred_bf16_split, pred_f32_split, pred_f32):
        assert pred.shape == (K, NUM_CLS)

    assert jnp.allclose(pred_f32, ref, atol=5e-3, rtol=5e-3), (pred_f32, ref)
    assert jnp.allclose(pred_f32_split, ref, atol=5e-3, rtol=5e-3), (pred_f32_split, ref)
    assert jnp.allclose(pred_bf16, ref, atol=5e-2, rtol=5e-2), (pred_bf16, ref)
    assert jnp.allclose(pred_bf16_split, ref, atol=5e-2, rtol=5e-2), (pred_bf16_split, ref)

    print("KERNEL_OK")
</pallas_src>

<mosaic_0001>
module attributes {stable_mosaic.version = 11 : i64} {
  func.func @_attn_cls_kernel(%arg0: i32, %arg1: memref<304x512xbf16, #tpu.memory_space<vmem>>, %arg2: memref<512x256xbf16, #tpu.memory_space<vmem>>, %arg3: memref<1x256xf32, #tpu.memory_space<vmem>>, %arg4: memref<128x1xbf16, #tpu.memory_space<vmem>>, %arg5: memref<1x1xf32, #tpu.memory_space<vmem>>, %arg6: memref<512x2xbf16, #tpu.memory_space<vmem>>, %arg7: memref<1x2xf32, #tpu.memory_space<vmem>>, %arg8: memref<1x2xf32, #tpu.memory_space<vmem>>, %arg9: memref<1x1xf32, #tpu.memory_space<vmem>>, %arg10: memref<1x1xf32, #tpu.memory_space<vmem>>, %arg11: memref<1x512xf32, #tpu.memory_space<vmem>>) attributes {dimension_semantics = [#tpu.dimension_semantics<arbitrary>], iteration_bounds = array<i64: 1>, scalar_prefetch = 0 : i64, scratch_operands = 3 : i64, tpu.core_type = #tpu.core_type<tc>, window_params = [{transform_indices = @transform_0, window_bounds = array<i64: 304, 512>}, {pipeline_mode = #tpu.pipeline_mode<synchronous>, transform_indices = @transform_1, window_bounds = array<i64: 512, 256>}, {pipeline_mode = #tpu.pipeline_mode<synchronous>, transform_indices = @transform_2, window_bounds = array<i64: 1, 256>}, {pipeline_mode = #tpu.pipeline_mode<synchronous>, transform_indices = @transform_3, window_bounds = array<i64: 128, 1>}, {pipeline_mode = #tpu.pipeline_mode<synchronous>, transform_indices = @transform_4, window_bounds = array<i64: 1, 1>}, {pipeline_mode = #tpu.pipeline_mode<synchronous>, transform_indices = @transform_5, window_bounds = array<i64: 512, 2>}, {pipeline_mode = #tpu.pipeline_mode<synchronous>, transform_indices = @transform_6, window_bounds = array<i64: 1, 2>}, {pipeline_mode = #tpu.pipeline_mode<synchronous>, transform_indices = @transform_7, window_bounds = array<i64: 1, 2>}]} {
    %c0_i32 = arith.constant 0 : i32
    %0 = arith.cmpi eq, %arg0, %c0_i32 : i32
    %1 = arith.extui %0 : i1 to i32
    %c0_i32_0 = arith.constant 0 : i32
    %2 = arith.cmpi ne, %1, %c0_i32_0 : i32
    scf.if %2 {
      %cst_34 = arith.constant 0xFF800000 : f32
      %68 = vector.broadcast %cst_34 : f32 to vector<1x1xf32>
      %c0_35 = arith.constant 0 : index
      %c0_36 = arith.constant 0 : index
      %69 = vector.load %arg9[%c0_35, %c0_36] : memref<1x1xf32, #tpu.memory_space<vmem>>, vector<1x1xf32>
      tpu.vector_store %arg9[%c0_35, %c0_36], %68 {strides = array<i32>} : memref<1x1xf32, #tpu.memory_space<vmem>>, vector<1x1xf32>,
      %cst_37 = arith.constant 0.000000e+00 : f32
      %70 = vector.broadcast %cst_37 : f32 to vector<1x1xf32>
      %c0_38 = arith.constant 0 : index
      %c0_39 = arith.constant 0 : index
      %71 = vector.load %arg10[%c0_38, %c0_39] : memref<1x1xf32, #tpu.memory_space<vmem>>, vector<1x1xf32>
      tpu.vector_store %arg10[%c0_38, %c0_39], %70 {strides = array<i32>} : memref<1x1xf32, #tpu.memory_space<vmem>>, vector<1x1xf32>,
      %cst_40 = arith.constant 0.000000e+00 : f32
      %72 = vector.broadcast %cst_40 : f32 to vector<1x512xf32>
      %c0_41 = arith.constant 0 : index
      %c0_42 = arith.constant 0 : index
      %73 = vector.load %arg11[%c0_41, %c0_42] : memref<1x512xf32, #tpu.memory_space<vmem>>, vector<1x512xf32>
      tpu.vector_store %arg11[%c0_41, %c0_42], %72 {strides = array<i32>} : memref<1x512xf32, #tpu.memory_space<vmem>>, vector<1x512xf32>,
    } else {
    }
    %c304_i32 = arith.constant 304 : i32
    %3 = arith.muli %arg0, %c304_i32 : i32
    %c0 = arith.constant 0 : index
    %c0_1 = arith.constant 0 : index
    %4 = vector.load %arg1[%c0, %c0_1] : memref<304x512xbf16, #tpu.memory_space<vmem>>, vector<304x512xbf16>
    %c0_2 = arith.constant 0 : index
    %c0_3 = arith.constant 0 : index
    %5 = vector.load %arg2[%c0_2, %c0_3] : memref<512x256xbf16, #tpu.memory_space<vmem>>, vector<512x256xbf16>
    %cst = arith.constant dense<0.000000e+00> : vector<304x256xf32>
    %6 = tpu.matmul %4, %5, %cst {dimension_numbers = #tpu.dot_dimension_numbers<[1], [0], [0], [1], [0, 0, 1, 1], [], []>} : vector<304x512xbf16>, vector<512x256xbf16>, vector<304x256xf32> -> vector<304x256xf32>
    %c0_4 = arith.constant 0 : index
    %c0_5 = arith.constant 0 : index
    %7 = vector.load %arg3[%c0_4, %c0_5] : memref<1x256xf32, #tpu.memory_space<vmem>>, vector<1x256xf32>
    %8 = vector.broadcast %7 : vector<1x256xf32> to vector<304x256xf32>
    %9 = arith.addf %6, %8 : vector<304x256xf32>
    %10 = vector.extract_strided_slice %9 {offsets = [0, 0], sizes = [304, 128], strides = [1, 1]} : vector<304x256xf32> to vector<304x128xf32>
    %11 = math.tanh %10 : vector<304x128xf32>
    %12 = vector.extract_strided_slice %9 {offsets = [0, 128], sizes = [304, 128], strides = [1, 1]} : vector<304x256xf32> to vector<304x128xf32>
    %cst_6 = arith.constant 5.000000e-01 : f32
    %13 = vector.broadcast %cst_6 : f32 to vector<304x128xf32>
    %14 = arith.mulf %13, %12 : vector<304x128xf32>
    %15 = math.tanh %14 : vector<304x128xf32>
    %cst_7 = arith.constant 1.000000e+00 : f32
    %16 = vector.broadcast %cst_7 : f32 to vector<304x128xf32>
    %17 = arith.addf %15, %16 : vector<304x128xf32>
    %cst_8 = arith.constant 5.000000e-01 : f32
    %18 = vector.broadcast %cst_8 : f32 to vector<304x128xf32>
    %19 = arith.mulf %18, %17 : vector<304x128xf32>
    %20 = arith.mulf %11, %19 : vector<304x128xf32>
    %21 = arith.truncf %20 : vector<304x128xf32> to vector<304x128xbf16>
    %c0_9 = arith.constant 0 : index
    %c0_10 = arith.constant 0 : index
    %22 = vector.load %arg4[%c0_9, %c0_10] : memref<128x1xbf16, #tpu.memory_space<vmem>>, vector<128x1xbf16>
    %cst_11 = arith.constant dense<0.000000e+00> : vector<304x1xf32>
    %23 = tpu.matmul %21, %22, %cst_11 {dimension_numbers = #tpu.dot_dimension_numbers<[1], [0], [0], [1], [0, 0, 1, 1], [], []>} : vector<304x128xbf16>, vector<128x1xbf16>, vector<304x1xf32> -> vector<304x1xf32>
    %c0_12 = arith.constant 0 : index
    %c0_13 = arith.constant 0 : index
    %24 = vector.load %arg5[%c0_12, %c0_13] : memref<1x1xf32, #tpu.memory_space<vmem>>, vector<1x1xf32>
    %25 = vector.broadcast %24 : vector<1x1xf32> to vector<304x1xf32>
    %26 = arith.addf %23, %25 : vector<304x1xf32>
    %27 = tpu.iota {dimensions = array<i32: 0>} : vector<304x1xi32>
    %28 = vector.broadcast %3 : i32 to vector<304x1xi32>
    %29 = arith.addi %28, %27 : vector<304x1xi32>
    %c300_i32 = arith.constant 300 : i32
    %30 = vector.broadcast %c300_i32 : i32 to vector<304x1xi32>
    %31 = arith.cmpi slt, %29, %30 : vector<304x1xi32>
    %cst_14 = arith.constant 0xFF800000 : f32
    %32 = vector.broadcast %cst_14 : f32 to vector<304x1xf32>
    %33 = arith.select %31, %26, %32 : vector<304x1xi1>, vector<304x1xf32>
    %c0_15 = arith.constant 0 : index
    %c0_16 = arith.constant 0 : index
    %34 = vector.load %arg9[%c0_15, %c0_16] : memref<1x1xf32, #tpu.memory_space<vmem>>, vector<1x1xf32>
    %cst_17 = arith.constant dense<0xFF800000> : vector<1xf32>
    %35 = vector.multi_reduction <maximumf>, %33, %cst_17 [0] : vector<304x1xf32> to vector<1xf32>
    %36 = vector.shape_cast %35 : vector<1xf32> to vector<1x1xf32>
    %37 = arith.maximumf %34, %36 : vector<1x1xf32>
    %cst_18 = arith.constant 0xFF800000 : f32
    %38 = vector.broadcast %cst_18 : f32 to vector<1x1xf32>
    %39 = arith.cmpf oeq, %37, %38 : vector<1x1xf32>
    %cst_19 = arith.constant 0.000000e+00 : f32
    %40 = vector.broadcast %cst_19 : f32 to vector<1x1xf32>
    %41 = arith.select %39, %40, %37 : vector<1x1xi1>, vector<1x1xf32>
    %42 = arith.subf %34, %41 : vector<1x1xf32>
    %43 = math.exp %42 : vector<1x1xf32>
    %44 = vector.broadcast %41 : vector<1x1xf32> to vector<304x1xf32>
    %45 = arith.subf %33, %44 : vector<304x1xf32>
    %46 = math.exp %45 : vector<304x1xf32>
    %c0_20 = arith.constant 0 : index
    %c0_21 = arith.constant 0 : index
    %47 = vector.load %arg10[%c0_20, %c0_21] : memref<1x1xf32, #tpu.memory_space<vmem>>, vector<1x1xf32>
    %48 = arith.mulf %43, %47 : vector<1x1xf32>
    %cst_22 = arith.constant dense<0.000000e+00> : vector<1xf32>
    %49 = vector.multi_reduction <add>, %46, %cst_22 [0] : vector<304x1xf32> to vector<1xf32>
    %50 = vector.shape_cast %49 : vector<1xf32> to vector<1x1xf32>
    %51 = arith.addf %48, %50 : vector<1x1xf32>
    %c0_23 = arith.constant 0 : index
    %c0_24 = arith.constant 0 : index
    %52 = vector.load %arg10[%c0_23, %c0_24] : memref<1x1xf32, #tpu.memory_space<vmem>>, vector<1x1xf32>
    tpu.vector_store %arg10[%c0_23, %c0_24], %51 {strides = array<i32>} : memref<1x1xf32, #tpu.memory_space<vmem>>, vector<1x1xf32>,
    %53 = arith.extf %4 : vector<304x512xbf16> to vector<304x512xf32>
    %54 = vector.broadcast %46 : vector<304x1xf32> to vector<304x512xf32>
    %55 = arith.mulf %54, %53 : vector<304x512xf32>
    %cst_25 = arith.constant dense<0.000000e+00> : vector<512xf32>
    %56 = vector.multi_reduction <add>, %55, %cst_25 [0] : vector<304x512xf32> to vector<512xf32>
    %57 = vector.shape_cast %56 : vector<512xf32> to vector<1x512xf32>
    %58 = tpu.transpose %43, [1, 0] : vector<1x1xf32> -> vector<1x1xf32>
    %c0_26 = arith.constant 0 : index
    %c0_27 = arith.constant 0 : index
    %59 = vector.load %arg11[%c0_26, %c0_27] : memref<1x512xf32, #tpu.memory_space<vmem>>, vector<1x512xf32>
    %60 = vector.broadcast %58 : vector<1x1xf32> to vector<1x512xf32>
    %61 = arith.mulf %60, %59 : vector<1x512xf32>
    %62 = arith.addf %61, %57 : vector<1x512xf32>
    %c0_28 = arith.constant 0 : index
    %c0_29 = arith.constant 0 : index
    %63 = vector.load %arg11[%c0_28, %c0_29] : memref<1x512xf32, #tpu.memory_space<vmem>>, vector<1x512xf32>
    tpu.vector_store %arg11[%c0_28, %c0_29], %62 {strides = array<i32>} : memref<1x512xf32, #tpu.memory_space<vmem>>, vector<1x512xf32>,
    %c0_30 = arith.constant 0 : index
    %c0_31 = arith.constant 0 : index
    %64 = vector.load %arg9[%c0_30, %c0_31] : memref<1x1xf32, #tpu.memory_space<vmem>>, vector<1x1xf32>
    tpu.vector_store %arg9[%c0_30, %c0_31], %37 {strides = array<i32>} : memref<1x1xf32, #tpu.memory_space<vmem>>, vector<1x1xf32>,
    %c0_i32_32 = arith.constant 0 : i32
    %65 = arith.cmpi eq, %arg0, %c0_i32_32 : i32
    %66 = arith.extui %65 : i1 to i32
    %c0_i32_33 = arith.constant 0 : i32
    %67 = arith.cmpi ne, %66, %c0_i32_33 : i32
    scf.if %67 {
      %c0_34 = arith.constant 0 : index
      %c0_35 = arith.constant 0 : index
      %68 = vector.load %arg10[%c0_34, %c0_35] : memref<1x1xf32, #tpu.memory_space<vmem>>, vector<1x1xf32>
      %69 = tpu.reciprocal %68 : vector<1x1xf32> -> vector<1x1xf32>
      %c0_36 = arith.constant 0 : index
      %c0_37 = arith.constant 0 : index
      %70 = vector.load %arg11[%c0_36, %c0_37] : memref<1x512xf32, #tpu.memory_space<vmem>>, vector<1x512xf32>
      %71 = tpu.transpose %69, [1, 0] : vector<1x1xf32> -> vector<1x1xf32>
      %72 = vector.broadcast %71 : vector<1x1xf32> to vector<1x512xf32>
      %73 = arith.mulf %70, %72 : vector<1x512xf32>
      %74 = arith.truncf %73 : vector<1x512xf32> to vector<1x512xbf16>
      %c0_38 = arith.constant 0 : index
      %c0_39 = arith.constant 0 : index
      %75 = vector.load %arg6[%c0_38, %c0_39] : memref<512x2xbf16, #tpu.memory_space<vmem>>, vector<512x2xbf16>
      %cst_40 = arith.constant dense<0.000000e+00> : vector<1x2xf32>
      %76 = tpu.matmul %74, %75, %cst_40 {dimension_numbers = #tpu.dot_dimension_numbers<[1], [0], [0], [1], [0, 0, 1, 1], [], []>} : vector<1x512xbf16>, vector<512x2xbf16>, vector<1x2xf32> -> vector<1x2xf32>
      %c0_41 = arith.constant 0 : index
      %c0_42 = arith.constant 0 : index
      %77 = vector.load %arg7[%c0_41, %c0_42] : memref<1x2xf32, #tpu.memory_space<vmem>>, vector<1x2xf32>
      %78 = arith.addf %76, %77 : vector<1x2xf32>
      %c0_43 = arith.constant 0 : index
      %c0_44 = arith.constant 0 : index
      %79 = vector.load %arg8[%c0_43, %c0_44] : memref<1x2xf32, #tpu.memory_space<vmem>>, vector<1x2xf32>
      tpu.vector_store %arg8[%c0_43, %c0_44], %78 {strides = array<i32>} : memref<1x2xf32, #tpu.memory_space<vmem>>, vector<1x2xf32>,
    } else {
    }
    return
  }
  func.func @transform_0(%arg0: i32) -> (i32, i32) {
    %c0_i32 = arith.constant 0 : i32
    %c0_i32_0 = arith.constant 0 : i32
    return %arg0, %c0_i32 : i32, i32
  }
  func.func @transform_1(%arg0: i32) -> (i32, i32) {
    %c0_i32 = arith.constant 0 : i32
    %c0_i32_0 = arith.constant 0 : i32
    %c0_i32_1 = arith.constant 0 : i32
    return %c0_i32, %c0_i32_0 : i32, i32
  }
  func.func @transform_2(%arg0: i32) -> (i32, i32) {
    %c0_i32 = arith.constant 0 : i32
    %c0_i32_0 = arith.constant 0 : i32
    %c0_i32_1 = arith.constant 0 : i32
    return %c0_i32, %c0_i32_0 : i32, i32
  }
  func.func @transform_3(%arg0: i32) -> (i32, i32) {
    %c0_i32 = arith.constant 0 : i32
    %c0_i32_0 = arith.constant 0 : i32
    %c0_i32_1 = arith.constant 0 : i32
    return %c0_i32, %c0_i32_0 : i32, i32
  }
  func.func @transform_4(%arg0: i32) -> (i32, i32) {
    %c0_i32 = arith.constant 0 : i32
    %c0_i32_0 = arith.constant 0 : i32
    %c0_i32_1 = arith.constant 0 : i32
    return %c0_i32, %c0_i32_0 : i32, i32
  }
  func.func @transform_5(%arg0: i32) -> (i32, i32) {
    %c0_i32 = arith.constant 0 : i32
    %c0_i32_0 = arith.constant 0 : i32
    %c0_i32_1 = arith.constant 0 : i32
    return %c0_i32, %c0_i32_0 : i32, i32
  }
  func.func @transform_6(%arg0: i32) -> (i32, i32) {
    %c0_i32 = arith.constant 0 : i32
    %c0_i32_0 = arith.constant 0 : i32
    %c0_i32_1 = arith.constant 0 : i32
    return %c0_i32, %c0_i32_0 : i32, i32
  }
  func.func @transform_7(%arg0: i32) -> (i32, i32) {
    %c0_i32 = arith.constant 0 : i32
    %c0_i32_0 = arith.constant 0 : i32
    %c0_i32_1 = arith.constant 0 : i32
    return %c0_i32, %c0_i32_0 : i32, i32
  }
}

</mosaic_0001>

<bundles_post_ra>
// kernel: tpu_custom_call.1
= control target key start
LH: loop header
LB: loop body
LE: loop exit
PB: predicated region body
PF: predicated region fallthrough
CT: control target
= control target key end

     0   :  { %s7006_s0 = inlined_call_operand.hbm [shape: bf16[304,512], index: 0, kind: input, shape index: {}]   ;;  %s7007_s1 = inlined_call_operand.hbm [shape: bf16[512,256], index: 1, kind: input, shape index: {}]   ;;  %s7008_s2 = inlined_call_operand.vmem [shape: f32[1,256], index: 2, kind: input, shape index: {}]   ;;  %s7009_s3 = inlined_call_operand.vmem [shape: bf16[128,1], index: 3, kind: input, shape index: {}]   ;;  %s7010_s4 = inlined_call_operand.<no memory space> [shape: f32[1,1], index: 4, kind: input, shape index: {}]   ;;  %s7011_s5 = inlined_call_operand.vmem [shape: bf16[512,2], index: 5, kind: input, shape index: {}]   ;;  %s7012_s6 = inlined_call_operand.vmem [shape: f32[1,2], index: 6, kind: input, shape index: {}]   ;;  %s7013_s7 = inlined_call_operand.hbm [shape: f32[1,2], index: 7, kind: output, shape index: {}]  }
   0x1   :  { %v12_v0 = vstv %s7010_s4 }
   0x2   :  { %13 = vst [vmem:[#allocation5] sm:$0x1] %v12_v0 }
   0x3   :  { %14 = vsyncpa [#allocation7], 0 }
   0x4   :  { %15 = vsyncpa [#allocation10], 0 }
   0x5   :  { %16 = vsyncpa [#allocation8], 0  ;;  %s21_s28 = sshll.u32 %s7006_s0, 4  ;;  %s5007_s29 = smov [#allocation6]   ;;  %s22_s28 = int_to_ptr.hbm [resolvable:$true] %s21_s28 }
   0x6   :  { %s23_s30 = sshll.u32 %s5007_s29, 4  ;;  %s34_s10 = sshll.u32 %s7007_s1, 4  ;;  %s24_s30 = int_to_ptr.vmem [resolvable:$true] %s23_s30  ;;  %s35_s10 = int_to_ptr.hbm [resolvable:$true] %s34_s10 }
   0x7   :  { %s5008_s11 = smov 256   ;;  %s5009_s12 = smov 16  }
   0x8   :  { %29 = dma.hbm_to_vmem [thread:$0]  %s22_s28, 9728, %s24_s30, [#allocation7], %s5008_s11, %s5008_s11, %s5009_s12  }
   0x9   :  { %s5010_s4 = smov [#allocation9]   ;;  %s5011_s14 = smov 128  }
   0xa   :  { %s36_s13 = sshll.u32 %s5010_s4, 4  ;;  %s5012_s15 = smov 8   ;;  %s37_s13 = int_to_ptr.vmem [resolvable:$true] %s36_s13 }
   0xb   :  { %42 = dma.hbm_to_vmem [thread:$0]  %s35_s10, 8192, %s37_s13, [#allocation10], %s5011_s14, %s5011_s14, %s5012_s15  }
   0xc   :  { %5001 = dma.done.wait [#allocation7], 9728  }
   0xd   :  { %5002 = vsyncadd [#allocation7], 4294957568 }
   0xe   :  { %5003 = dma.done.wait [#allocation10], 8192  }
   0xf   :  { %5004 = vsyncadd [#allocation10], 4294959104  ;;  %v4120_v1 = vld [vmem:[#allocation9 + $0x70] sm:$0xf]  ;;  %v4569_v2 = vld [vmem:[#allocation9 + $0x74] sm:$0xf0] }
  0x10   :  { %v4112_v3 = vld [vmem:[#allocation9 + $0x60] sm:$0xf]  ;;  %v4121_v4 = vor.u32 %v4569_v2, %v4120_v1  ;;  %v4567_v5 = vld [vmem:[#allocation9 + $0x64] sm:$0xf0]  ;;  %v4104_v7 = vld [vmem:[#allocation9 + $0x50] sm:$0xf] }
  0x11   :  { %v4113_v6 = vor.u32 %v4567_v5, %v4112_v3  ;;  %v4565_v8 = vld [vmem:[#allocation9 + $0x54] sm:$0xf0]  ;;  %v4096_v10 = vld [vmem:[#allocation9 + $0x40] sm:$0xf]  ;;  %v4563_v11 = vld [vmem:[#allocation9 + $0x44] sm:$0xf0] }
  0x12   :  { %4658 = vmatpush.bf16.msra.mxu1 %v4121_v4  ;;  %4659 = vmatpush.bf16.msra.mxu2 %v4121_v4  ;;  %v4105_v9 = vor.u32 %v4565_v8, %v4104_v7  ;;  %v4097_v12 = vor.u32 %v4563_v11, %v4096_v10  ;;  %v4088_v13 = vld [vmem:[#allocation9 + $0x30] sm:$0xf]  ;;  %v4561_v14 = vld [vmem:[#allocation9 + $0x34] sm:$0xf0]  ;;  %v4080_v16 = vld [vmem:[#allocation9 + $0x20] sm:$0xf] }
  0x13   :  { %4660 = vmatpush.bf16.msra.mxu3 %v4121_v4  ;;  %920 = vmatpush.bf16.msra.mxu0 %v4121_v4  ;;  %v4089_v15 = vor.u32 %v4561_v14, %v4088_v13  ;;  %v4559_v17 = vld [vmem:[#allocation9 + $0x24] sm:$0xf0]  ;;  %v4072_v19 = vld [vmem:[#allocation9 + $0x10] sm:$0xf]  ;;  %v4557_v20 = vld [vmem:[#allocation9 + $0x14] sm:$0xf0] }
  0x14   :  { %v4081_v18 = vor.u32 %v4559_v17, %v4080_v16  ;;  %v4073_v21 = vor.u32 %v4557_v20, %v4072_v19  ;;  %v4064_v22 = vld [vmem:[#allocation9] sm:$0xf]  ;;  %v4555_v23 = vld [vmem:[#allocation9 + $0x4] sm:$0xf0]  ;;  %v4248_v25 = vld [vmem:[#allocation9 + $0x170] sm:$0xf] }
  0x15   :  { %v3856_v24 = vld [vmem:[#allocation6 + $0xc0] sm:$0xf]  ;;  %v4601_v26 = vld [vmem:[#allocation9 + $0x174] sm:$0xf0]  ;;  %v4312_v27 = vld [vmem:[#allocation9 + $0x1f0] sm:$0xf]  ;;  %v4065_v31 = vor.u32 %v4555_v23, %v4064_v22 }
  0x16   :  { %4661 = vmatpush.bf16.msra.mxu1 %v4113_v6  ;;  %4662 = vmatpush.bf16.msra.mxu2 %v4113_v6  ;;  %v4617_v28 = vld [vmem:[#allocation9 + $0x1f4] sm:$0xf0]  ;;  %v4184_v29 = vld [vmem:[#allocation9 + $0xf0] sm:$0xf]  ;;  %v3904_v33 = vld [vmem:[#allocation6 + $0x120] sm:$0xf]  ;;  %v4249_v37 = vor.u32 %v4601_v26, %v4248_v25 }
  0x17   :  { %4663 = vmatpush.bf16.msra.mxu3 %v4113_v6  ;;  %921 = vmatpush.bf16.msra.mxu0 %v4113_v6  ;;  %v4585_v30 = vld [vmem:[#allocation9 + $0xf4] sm:$0xf0]  ;;  %v4504_v32 = vld [vmem:[#allocation6 + $0xcc] sm:$0xf0]  ;;  %v3984_v35 = vld [vmem:[#allocation6 + $0x1c0] sm:$0xf]  ;;  %v4313_v38 = vor.u32 %v4617_v28, %v4312_v27 }
  0x18   :  { %v4516_v34 = vld [vmem:[#allocation6 + $0x12c] sm:$0xf0]  ;;  %v4240_v39 = vld [vmem:[#allocation9 + $0x160] sm:$0xf]  ;;  %v4599_v40 = vld [vmem:[#allocation9 + $0x164] sm:$0xf0]  ;;  %v4185_v42 = vor.u32 %v4585_v30, %v4184_v29  ;;  %v5066_v43 = vor.u32 %v4504_v32, %v3856_v24 }
  0x19   :  { %v4536_v36 = vld [vmem:[#allocation6 + $0x1cc] sm:$0xf0]  ;;  %v4304_v41 = vld [vmem:[#allocation9 + $0x1e0] sm:$0xf]  ;;  %v5068_v44 = vor.u32 %v4516_v34, %v3904_v33  ;;  %v4615_v45 = vld [vmem:[#allocation9 + $0x1e4] sm:$0xf0]  ;;  %v4241_v49 = vor.u32 %v4599_v40, %v4240_v39 }
  0x1a   :  { %4664 = vmatpush.bf16.msra.mxu1 %v4105_v9  ;;  %4665 = vmatpush.bf16.msra.mxu2 %v4105_v9  ;;  %v4176_v46 = vld [vmem:[#allocation9 + $0xe0] sm:$0xf]  ;;  %v4583_v47 = vld [vmem:[#allocation9 + $0xe4] sm:$0xf0]  ;;  %v5070_v48 = vor.u32 %v4536_v36, %v3984_v35  ;;  %v4305_v50 = vor.u32 %v4615_v45, %v4304_v41  ;;  %v4232_v51 = vld [vmem:[#allocation9 + $0x150] sm:$0xf] }
  0x1b   :  { %4666 = vmatpush.bf16.msra.mxu3 %v4105_v9  ;;  %922 = vmatpush.bf16.msra.mxu0 %v4105_v9  ;;  %v4597_v52 = vld [vmem:[#allocation9 + $0x154] sm:$0xf0]  ;;  %v4177_v53 = vor.u32 %v4583_v47, %v4176_v46  ;;  %v4296_v54 = vld [vmem:[#allocation9 + $0x1d0] sm:$0xf]  ;;  %v4160_v61 = vld [vmem:[#allocation9 + $0xc0] sm:$0xf] }
  0x1c   :  { %7052 = vst [vmem:[#allocation15_spill] sm:$0xff] %v5070_v48  ;;  %v4613_v55 = vld [vmem:[#allocation9 + $0x1d4] sm:$0xf0]  ;;  %v4168_v56 = vld [vmem:[#allocation9 + $0xd0] sm:$0xf]  ;;  %v4233_v58 = vor.u32 %v4597_v52, %v4232_v51  ;;  %vm2326_vm0 = vcmask 7168  }
  0x1d   :  { %v4581_v57 = vld [vmem:[#allocation9 + $0xd4] sm:$0xf0]  ;;  %v4297_v59 = vor.u32 %v4613_v55, %v4296_v54  ;;  %v4224_v62 = vld [vmem:[#allocation9 + $0x140] sm:$0xf]  ;;  %v4595_v63 = vld [vmem:[#allocation9 + $0x144] sm:$0xf0] }
  0x1e   :  { %4667 = vmatpush.bf16.msra.mxu1 %v4097_v12  ;;  %4668 = vmatpush.bf16.msra.mxu2 %v4097_v12  ;;  %v4169_v60 = vor.u32 %v4581_v57, %v4168_v56  ;;  %v4579_v0 = vld [vmem:[#allocation9 + $0xc4] sm:$0xf0]  ;;  %v4288_v1 = vld [vmem:[#allocation9 + $0x1c0] sm:$0xf]  ;;  %v4225_v3 = vor.u32 %v4595_v63, %v4224_v62  ;;  %v4152_v7 = vld [vmem:[#allocation9 + $0xb0] sm:$0xf] }
  0x1f   :  { %4669 = vmatpush.bf16.msra.mxu3 %v4097_v12  ;;  %923 = vmatpush.bf16.msra.mxu0 %v4097_v12  ;;  %v4611_v2 = vld [vmem:[#allocation9 + $0x1c4] sm:$0xf0]  ;;  %v3872_v4 = vld [vmem:[#allocation6 + $0xe0] sm:$0xf]  ;;  %v4161_v5 = vor.u32 %v4579_v0, %v4160_v61  ;;  %v4216_v8 = vld [vmem:[#allocation9 + $0x130] sm:$0xf] }
  0x20   :  { %v4289_v6 = vor.u32 %v4611_v2, %v4288_v1  ;;  %v4593_v9 = vld [vmem:[#allocation9 + $0x134] sm:$0xf0]  ;;  %v4280_v11 = vld [vmem:[#allocation9 + $0x1b0] sm:$0xf]  ;;  %v3920_v14 = vld [vmem:[#allocation6 + $0x140] sm:$0xf] }
  0x21   :  { %v4577_v10 = vld [vmem:[#allocation9 + $0xb4] sm:$0xf0]  ;;  %v4508_v13 = vld [vmem:[#allocation6 + $0xec] sm:$0xf0]  ;;  %v4000_v16 = vld [vmem:[#allocation6 + $0x1e0] sm:$0xf] }
  0x22   :  { %4670 = vmatpush.bf16.msra.mxu1 %v4089_v15  ;;  %4671 = vmatpush.bf16.msra.mxu2 %v4089_v15  ;;  %v4609_v12 = vld [vmem:[#allocation9 + $0x1b4] sm:$0xf0]  ;;  %v4540_v17 = vld [vmem:[#allocation6 + $0x1ec] sm:$0xf0]  ;;  %v4153_v19 = vor.u32 %v4577_v10, %v4152_v7  ;;  %v4144_v23 = vld [vmem:[#allocation9 + $0xa0] sm:$0xf] }
  0x23   :  { %4672 = vmatpush.bf16.msra.mxu3 %v4089_v15  ;;  %924 = vmatpush.bf16.msra.mxu0 %v4089_v15  ;;  %v4520_v15 = vld [vmem:[#allocation6 + $0x14c] sm:$0xf0]  ;;  %v4281_v20 = vor.u32 %v4609_v12, %v4280_v11  ;;  %v4575_v24 = vld [vmem:[#allocation9 + $0xa4] sm:$0xf0]  ;;  %v5079_v25 = vor.u32 %v4540_v17, %v4000_v16  ;;  %v4573_v28 = vld [vmem:[#allocation9 + $0x94] sm:$0xf0] }
  0x24   :  { %v5077_v22 = vor.u32 %v4520_v15, %v3920_v14  ;;  %v4145_v26 = vor.u32 %v4575_v24, %v4144_v23  ;;  %v4136_v27 = vld [vmem:[#allocation9 + $0x90] sm:$0xf]  ;;  %v4208_v29 = vld [vmem:[#allocation9 + $0x120] sm:$0xf]  ;;  %v4591_v30 = vld [vmem:[#allocation9 + $0x124] sm:$0xf0] }
  0x25   :  { %7053 = vst [vmem:[#allocation16_spill] sm:$0xff] %v5079_v25  ;;  %v4209_v32 = vor.u32 %v4591_v30, %v4208_v29  ;;  %v4607_v33 = vld [vmem:[#allocation9 + $0x1a4] sm:$0xf0]  ;;  %v4200_v34 = vld [vmem:[#allocation9 + $0x110] sm:$0xf]  ;;  %v4137_v36 = vor.u32 %v4573_v28, %v4136_v27  ;;  %vm65_vm1 = vcmask 0  }
  0x26   :  { %4673 = vmatpush.bf16.msra.mxu1 %v4081_v18  ;;  %4674 = vmatpush.bf16.msra.mxu2 %v4081_v18  ;;  %v4589_v35 = vld [vmem:[#allocation9 + $0x114] sm:$0xf0]  ;;  %v4128_v40 = vld [vmem:[#allocation9 + $0x80] sm:$0xf]  ;;  %v4571_v41 = vld [vmem:[#allocation9 + $0x84] sm:$0xf0] }
  0x27   :  { %4675 = vmatpush.bf16.msra.mxu3 %v4081_v18  ;;  %925 = vmatpush.bf16.msra.mxu0 %v4081_v18  ;;  %v4217_v18 = vor.u32 %v4593_v9, %v4216_v8  ;;  %v4605_v39 = vld [vmem:[#allocation9 + $0x194] sm:$0xf0]  ;;  %v4129_v46 = vor.u32 %v4571_v41, %v4128_v40  ;;  %v3888_v47 = vld [vmem:[#allocation6 + $0x100] sm:$0xf]  ;;  %v4524_v51 = vld [vmem:[#allocation6 + $0x16c] sm:$0xf0] }
  0x28   :  { %v4016_v52 = vld [vmem:[#allocation6 + $0x200] sm:$0xf]  ;;  %v4603_v61 = vld [vmem:[#allocation9 + $0x184] sm:$0xf0]  ;;  %v4480_v63 = vld [vmem:[#allocation6 + $0xc] sm:$0xf0] }
  0x29   :  { %v4192_v57 = vld [vmem:[#allocation9 + $0x100] sm:$0xf]  ;;  %v4548_v7 = vld [vmem:[#allocation6 + $0x22c] sm:$0xf0]  ;;  %v4600_v11 = vld [vmem:[#allocation9 + $0x174] sm:$0xf] }
  0x2a   :  { %4676 = vmatpush.bf16.msra.mxu1 %v4073_v21  ;;  %4677 = vmatpush.bf16.msra.mxu2 %v4073_v21  ;;  %v3760_v62 = vld [vmem:[#allocation6] sm:$0xf]  ;;  %v4250_v12 = vld [vmem:[#allocation9 + $0x178] sm:$0xf0]  ;;  %v4584_v16 = vld [vmem:[#allocation9 + $0xf4] sm:$0xf] }
  0x2b   :  { %4678 = vmatpush.bf16.msra.mxu3 %v4073_v21  ;;  %926 = vmatpush.bf16.msra.mxu0 %v4073_v21  ;;  %v5075_v21 = vor.u32 %v4508_v13, %v3872_v4  ;;  %v5093_v1 = vor.u32 %v4480_v63, %v3760_v62  ;;  %v3952_v2 = vld [vmem:[#allocation6 + $0x180] sm:$0xf]  ;;  %v4478_v4 = vld [vmem:[#allocation6 + $0x4] sm:$0xf]  ;;  %v4616_v13 = vld [vmem:[#allocation9 + $0x1f4] sm:$0xf]  ;;  %v4253_v14 = vor.u32 %v4600_v11, %v4250_v12 }
  0x2c   :  { %v4314_v15 = vld [vmem:[#allocation9 + $0x1f8] sm:$0xf0]  ;;  %v4484_v23 = vld [vmem:[#allocation6 + $0x2c] sm:$0xf0]  ;;  %v4482_v28 = vld [vmem:[#allocation6 + $0x24] sm:$0xf] }
  0x2d   :  { %v4186_v17 = vld [vmem:[#allocation9 + $0xf8] sm:$0xf0]  ;;  %v4532_v27 = vld [vmem:[#allocation6 + $0x1ac] sm:$0xf0]  ;;  %v3778_v29 = vld [vmem:[#allocation6 + $0x30] sm:$0xf0] }
  0x2e   :  { %4679 = vmatpush.bf16.msra.mxu1 %v4065_v31  ;;  %4680 = vmatpush.bf16.msra.mxu2 %v4065_v31  ;;  %v4048_v30 = vld [vmem:[#allocation6 + $0x240] sm:$0xf]  ;;  %v3768_v40 = vld [vmem:[#allocation6 + $0x8] sm:$0xf]  ;;  %v4481_v41 = vld [vmem:[#allocation6 + $0x14] sm:$0xf0] }
  0x2f   :  { %4681 = vmatpush.bf16.msra.mxu3 %v4065_v31  ;;  %927 = vmatpush.bf16.msra.mxu0 %v4065_v31  ;;  %v4272_v31 = vld [vmem:[#allocation9 + $0x1a0] sm:$0xf]  ;;  %v4582_v62 = vld [vmem:[#allocation9 + $0xe4] sm:$0xf]  ;;  %v4178_v63 = vld [vmem:[#allocation9 + $0xe8] sm:$0xf0] }
  0x30   :  { %vm3345_vm9 = vcmask 1040384   ;;  %vm3347_vm10 = vcmask 1042434   ;;  %vm3349_vm11 = vcmask 1041408   ;;  %s5016_s1 = smov [#allocation11]   ;;  %s3747_s19 = sshll.u32 %s7013_s7, 4  ;;  %vm3738_vm12 = vcmask 8192   ;;  %s3748_s19 = int_to_ptr.hbm [resolvable:$true] %s3747_s19 }
  0x31   :  { %958 = vmatmul.bf16.vlgmr.msra.gmra.mxu1 %v5066_v43  ;;  %973 = vmatmul.bf16.vlgmr.msra.gmra.mxu2 %v5068_v44  ;;  %s3745_s16 = sshll.u32 %s5016_s1, 4  ;;  %s3746_s16 = int_to_ptr.vmem [resolvable:$true] %s3745_s16 }
  0x32   :  { %1128 = vmatpush.bf16.msrb.mxu2 %v4249_v37  ;;  %1024 = vmatpush.bf16.msrb.mxu1 %v4185_v42  ;;  %v4273_v37 = vor.u32 %v4607_v33, %v4272_v31  ;;  %v4201_v42 = vor.u32 %v4589_v35, %v4200_v34  ;;  %v4552_v31 = vld [vmem:[#allocation6 + $0x24c] sm:$0xf0]  ;;  %v5110_v33 = vor.u32 %v4482_v28, %v3778_v29  ;;  %v3792_v35 = vld [vmem:[#allocation6 + $0x40] sm:$0xf] }
  0x33   :  { %1232 = vmatpush.bf16.msrb.mxu3 %v4313_v38  ;;  %v4264_v38 = vld [vmem:[#allocation9 + $0x190] sm:$0xf]  ;;  %928 = vmatmul.bf16.vlgmr.msra.gmra.mxu0 %v5093_v1  ;;  %v5112_v34 = vor.u32 %v4552_v31, %v4048_v30  ;;  %v4568_v30 = vld [vmem:[#allocation9 + $0x74] sm:$0xf]  ;;  %v4122_v31 = vld [vmem:[#allocation9 + $0x78] sm:$0xf0] }
  0x34   :  { %998 = vmatmul.bf16.vlgmr.msra.gmra.mxu3 %v5070_v48  ;;  %v4265_v45 = vor.u32 %v4605_v39, %v4264_v38  ;;  %v4486_v38 = vld [vmem:[#allocation6 + $0x44] sm:$0xf]  ;;  %v3794_v39 = vld [vmem:[#allocation6 + $0x50] sm:$0xf0] }
  0x35   :  { %7057 = vst [vmem:[#allocation20_spill] sm:$0xff] %v5112_v34  ;;  %v4608_v48 = vld [vmem:[#allocation9 + $0x1b4] sm:$0xf] }
  0x36   :  { %1129 = vmatpush.bf16.msrb.mxu2 %v4241_v49  ;;  %1025 = vmatpush.bf16.msrb.mxu1 %v4177_v53  ;;  %v4512_v49 = vld [vmem:[#allocation6 + $0x10c] sm:$0xf0] }
  0x37   :  { %1233 = vmatpush.bf16.msrb.mxu3 %v4305_v50  ;;  %v3936_v50 = vld [vmem:[#allocation6 + $0x160] sm:$0xf]  ;;  %v4544_v53 = vld [vmem:[#allocation6 + $0x20c] sm:$0xf0]  ;;  %v5084_v54 = vor.u32 %v4512_v49, %v3888_v47  ;;  %v5122_v47 = vor.u32 %v4481_v41, %v3768_v40  ;;  %v4498_v40 = vld [vmem:[#allocation6 + $0xa4] sm:$0xf] }
  0x38   :  { %v5086_v55 = vor.u32 %v4524_v51, %v3936_v50  ;;  %v5088_v56 = vor.u32 %v4544_v53, %v4016_v52  ;;  %v4598_v50 = vld [vmem:[#allocation9 + $0x164] sm:$0xf]  ;;  %v4242_v51 = vld [vmem:[#allocation9 + $0x168] sm:$0xf0]  ;;  %v3842_v41 = vld [vmem:[#allocation6 + $0xb0] sm:$0xf0] }
  0x39   :  { %v4614_v52 = vld [vmem:[#allocation9 + $0x1e4] sm:$0xf]  ;;  %v4245_v53 = vor.u32 %v4598_v50, %v4242_v51  ;;  %v4491_v50 = vld [vmem:[#allocation6 + $0x6c] sm:$0xf]  ;;  %v3818_v51 = vld [vmem:[#allocation6 + $0x78] sm:$0xf0] }
  0x3a   :  { %1130 = vmatpush.bf16.msrb.mxu2 %v4233_v58  ;;  %1026 = vmatpush.bf16.msrb.mxu1 %v4169_v60  ;;  %7054 = vst [vmem:[#allocation17_spill] sm:$0xff] %v5088_v56  ;;  %v4587_v58 = vld [vmem:[#allocation9 + $0x104] sm:$0xf0] }
  0x3b   :  { %1234 = vmatpush.bf16.msrb.mxu3 %v4297_v59  ;;  %v4256_v59 = vld [vmem:[#allocation9 + $0x180] sm:$0xf]  ;;  %v4193_v60 = vor.u32 %v4587_v58, %v4192_v57  ;;  %v4306_v57 = vld [vmem:[#allocation9 + $0x1e8] sm:$0xf0] }
  0x3c   :  { %v4257_v0 = vor.u32 %v4603_v61, %v4256_v59  ;;  %v3808_v58 = vld [vmem:[#allocation6 + $0x60] sm:$0xf]  ;;  %v4492_v59 = vld [vmem:[#allocation6 + $0x6c] sm:$0xf0] }
  0x3d   :  { %v5129_v61 = vor.u32 %v4492_v59, %v3808_v58  ;;  %v5162_v58 = vor.u32 %v4491_v50, %v3818_v51  ;;  %v4596_v59 = vld [vmem:[#allocation9 + $0x154] sm:$0xf] }
  0x3e   :  { %1131 = vmatpush.bf16.msrb.mxu2 %v4225_v3  ;;  %1027 = vmatpush.bf16.msrb.mxu1 %v4161_v5  ;;  %v4528_v3 = vld [vmem:[#allocation6 + $0x18c] sm:$0xf0]  ;;  %v3762_v5 = vld [vmem:[#allocation6 + $0x10] sm:$0xf0] }
  0x3f   :  { %1235 = vmatpush.bf16.msrb.mxu3 %v4289_v6  ;;  %v4032_v6 = vld [vmem:[#allocation6 + $0x220] sm:$0xf]  ;;  %v5096_v8 = vor.u32 %v4528_v3, %v3952_v2  ;;  %v5098_v9 = vor.u32 %v4478_v4, %v3762_v5  ;;  %v4490_v2 = vld [vmem:[#allocation6 + $0x64] sm:$0xf]  ;;  %v3810_v3 = vld [vmem:[#allocation6 + $0x70] sm:$0xf0] }
  0x40   :  { %v5100_v10 = vor.u32 %v4548_v7, %v4032_v6  ;;  %v3784_v4 = vld [vmem:[#allocation6 + $0x28] sm:$0xf]  ;;  %v4485_v5 = vld [vmem:[#allocation6 + $0x34] sm:$0xf0]  ;;  %v4483_v6 = vld [vmem:[#allocation6 + $0x2c] sm:$0xf]  ;;  %v5132_v11 = vor.u32 %v4490_v2, %v3810_v3 }
  0x41   :  { %963 = vmatmul.bf16.gmra.mxu1 %v5075_v21  ;;  %978 = vmatmul.bf16.gmra.mxu2 %v5077_v22  ;;  %v3786_v7 = vld [vmem:[#allocation6 + $0x38] sm:$0xf0]  ;;  %v5134_v12 = vor.u32 %v4485_v5, %v3784_v4  ;;  %7063 = vst [vmem:[#allocation26_spill] sm:$0xff] %v5162_v58  ;;  %v4612_v2 = vld [vmem:[#allocation9 + $0x1d4] sm:$0xf] }
  0x42   :  { %1132 = vmatpush.bf16.msrb.mxu2 %v4217_v18  ;;  %1028 = vmatpush.bf16.msrb.mxu1 %v4153_v19  ;;  %7055 = vst [vmem:[#allocation18_spill] sm:$0xff] %v5100_v10  ;;  %v4317_v18 = vor.u32 %v4616_v13, %v4314_v15  ;;  %v4189_v19 = vor.u32 %v4584_v16, %v4186_v17  ;;  %v4496_v15 = vld [vmem:[#allocation6 + $0x8c] sm:$0xf0]  ;;  %v4494_v17 = vld [vmem:[#allocation6 + $0x84] sm:$0xf] }
  0x43   :  { %1236 = vmatpush.bf16.msrb.mxu3 %v4281_v20  ;;  %v3776_v20 = vld [vmem:[#allocation6 + $0x20] sm:$0xf]  ;;  %v5136_v13 = vor.u32 %v4483_v6, %v3786_v7  ;;  %v4298_v4 = vld [vmem:[#allocation9 + $0x1d8] sm:$0xf0]  ;;  %v4580_v6 = vld [vmem:[#allocation9 + $0xd4] sm:$0xf] }
  0x44   :  { %1003 = vmatmul.bf16.gmra.mxu3 %v5079_v25  ;;  %v5105_v24 = vor.u32 %v4484_v23, %v3776_v20  ;;  %v4489_v20 = vld [vmem:[#allocation6 + $0x54] sm:$0xf0]  ;;  %v4487_v23 = vld [vmem:[#allocation6 + $0x4c] sm:$0xf]  ;;  %v4301_v5 = vor.u32 %v4612_v2, %v4298_v4  ;;  %v4170_v7 = vld [vmem:[#allocation9 + $0xd8] sm:$0xf0] }
  0x45   :  { %v3874_v4 = vld [vmem:[#allocation6 + $0xf0] sm:$0xf0]  ;;  %v4082_v25 = vld [vmem:[#allocation9 + $0x28] sm:$0xf0] }
  0x46   :  { %1029 = vmatpush.bf16.msrb.mxu1 %v4145_v26  ;;  %1133 = vmatpush.bf16.msrb.mxu2 %v4209_v32  ;;  %v3968_v26 = vld [vmem:[#allocation6 + $0x1a0] sm:$0xf] }
  0x47   :  { %1237 = vmatpush.bf16.msrb.mxu3 %v4273_v37  ;;  %933 = vmatmul.bf16.gmra.mxu0 %v5105_v24  ;;  %v5108_v32 = vor.u32 %v4532_v27, %v3968_v26  ;;  %v3802_v26 = vld [vmem:[#allocation6 + $0x58] sm:$0xf0] }
  0x48   :  { %v5148_v29 = vor.u32 %v4487_v23, %v3802_v26  ;;  %v4502_v26 = vld [vmem:[#allocation6 + $0xc4] sm:$0xf] }
  0x49   :  { %7056 = vst [vmem:[#allocation19_spill] sm:$0xff] %v5108_v32 }
  0x4a   :  { %1030 = vmatpush.bf16.msrb.mxu1 %v4137_v36  ;;  %1134 = vmatpush.bf16.msrb.mxu2 %v4201_v42  ;;  %v4488_v36 = vld [vmem:[#allocation6 + $0x4c] sm:$0xf0]  ;;  %v4479_v42 = vld [vmem:[#allocation6 + $0xc] sm:$0xf]  ;;  %7060 = vst [vmem:[#allocation23_spill] sm:$0xff] %v5148_v29 }
  0x4b   :  { %1238 = vmatpush.bf16.msrb.mxu3 %v4265_v45  ;;  %v5117_v37 = vor.u32 %v4488_v36, %v3792_v35  ;;  %v3770_v45 = vld [vmem:[#allocation6 + $0x18] sm:$0xf0]  ;;  %v4125_v35 = vor.u32 %v4568_v30, %v4122_v31  ;;  %v3840_v36 = vld [vmem:[#allocation6 + $0xa0] sm:$0xf]  ;;  %v3858_v30 = vld [vmem:[#allocation6 + $0xd0] sm:$0xf0] }
  0x4c   :  { %v5124_v49 = vor.u32 %v4479_v42, %v3770_v45  ;;  %v3816_v42 = vld [vmem:[#allocation6 + $0x68] sm:$0xf]  ;;  %v4493_v45 = vld [vmem:[#allocation6 + $0x74] sm:$0xf0] }
  0x4d   :  { %1336 = vmatpush.bf16.msrb.mxu0 %v4125_v35  ;;  %v3832_v31 = vld [vmem:[#allocation6 + $0x88] sm:$0xf]  ;;  %v4497_v35 = vld [vmem:[#allocation6 + $0x94] sm:$0xf0] }
  0x4e   :  { %1031 = vmatpush.bf16.msrb.mxu1 %v4129_v46  ;;  %1135 = vmatpush.bf16.msrb.mxu2 %v4193_v60  ;;  %v5120_v46 = vor.u32 %v4486_v38, %v3794_v39  ;;  %v4309_v60 = vor.u32 %v4614_v52, %v4306_v57  ;;  %v4500_v38 = vld [vmem:[#allocation6 + $0xac] sm:$0xf0]  ;;  %v5156_v52 = vor.u32 %v4498_v40, %v3842_v41 }
  0x4f   :  { %1239 = vmatpush.bf16.msrb.mxu3 %v4257_v0  ;;  %v4181_v0 = vor.u32 %v4582_v62, %v4178_v63  ;;  %v5153_v39 = vor.u32 %v4500_v38, %v3840_v36  ;;  %v4566_v63 = vld [vmem:[#allocation9 + $0x64] sm:$0xf]  ;;  %v4495_v36 = vld [vmem:[#allocation6 + $0x8c] sm:$0xf]  ;;  %v3834_v38 = vld [vmem:[#allocation6 + $0x98] sm:$0xf0] }
  0x50   :  { %7061 = vst [vmem:[#allocation24_spill] sm:$0xff] %v5156_v52  ;;  %v5183_v51 = vor.u32 %v4495_v36, %v3834_v38  ;;  %v4090_v36 = vld [vmem:[#allocation9 + $0x38] sm:$0xf0]  ;;  %v4594_v38 = vld [vmem:[#allocation9 + $0x144] sm:$0xf] }
  0x51   :  { %968 = vmatmul.bf16.gmra.mxu1 %v5084_v54  ;;  %983 = vmatmul.bf16.gmra.mxu2 %v5086_v55 }
  0x52   :  { %1544 = vmatpush.bf16.msra.mxu2 %v4253_v14  ;;  %1440 = vmatpush.bf16.msra.mxu1 %v4189_v19  ;;  %v3824_v14 = vld [vmem:[#allocation6 + $0x80] sm:$0xf]  ;;  %v3800_v19 = vld [vmem:[#allocation6 + $0x48] sm:$0xf]  ;;  %7066 = vst [vmem:[#allocation29_spill] sm:$0xff] %v5183_v51 }
  0x53   :  { %1648 = vmatpush.bf16.msra.mxu3 %v4317_v18  ;;  %v5141_v16 = vor.u32 %v4496_v15, %v3824_v14  ;;  %v3826_v18 = vld [vmem:[#allocation6 + $0x90] sm:$0xf0]  ;;  %v5146_v28 = vor.u32 %v4489_v20, %v3800_v19  ;;  %v4173_v14 = vor.u32 %v4580_v6, %v4170_v7  ;;  %v4106_v20 = vld [vmem:[#allocation9 + $0x58] sm:$0xf0]  ;;  %v4501_v6 = vld [vmem:[#allocation6 + $0xb4] sm:$0xf0] }
  0x54   :  { %1008 = vmatmul.bf16.gmra.mxu3 %v5088_v56  ;;  %v5144_v27 = vor.u32 %v4494_v17, %v3826_v18  ;;  %v4564_v19 = vld [vmem:[#allocation9 + $0x54] sm:$0xf]  ;;  %v4499_v7 = vld [vmem:[#allocation6 + $0xac] sm:$0xf]  ;;  %v3866_v56 = vld [vmem:[#allocation6 + $0xd8] sm:$0xf0] }
  0x55   :  { %7059 = vst [vmem:[#allocation22_spill] sm:$0xff] %v5146_v28  ;;  %v4109_v23 = vor.u32 %v4564_v19, %v4106_v20 }
  0x56   :  { %1545 = vmatpush.bf16.msra.mxu2 %v4245_v53  ;;  %1441 = vmatpush.bf16.msra.mxu1 %v4181_v0  ;;  %7058 = vst [vmem:[#allocation21_spill] sm:$0xff] %v5144_v27  ;;  %v5158_v53 = vor.u32 %v4493_v45, %v3816_v42  ;;  %v4114_v0 = vld [vmem:[#allocation9 + $0x68] sm:$0xf0]  ;;  %v5177_v42 = vor.u32 %v4502_v26, %v3858_v30 }
  0x57   :  { %938 = vmatmul.bf16.gmra.mxu0 %v5117_v37  ;;  %1649 = vmatpush.bf16.msra.mxu3 %v4309_v60  ;;  %v4234_v60 = vld [vmem:[#allocation9 + $0x158] sm:$0xf0]  ;;  %v4117_v3 = vor.u32 %v4566_v63, %v4114_v0  ;;  %v5179_v45 = vor.u32 %v4497_v35, %v3832_v31  ;;  %v4562_v63 = vld [vmem:[#allocation9 + $0x44] sm:$0xf]  ;;  %v4098_v0 = vld [vmem:[#allocation9 + $0x48] sm:$0xf0] }
  0x58   :  { %7062 = vst [vmem:[#allocation25_spill] sm:$0xff] %v5158_v53  ;;  %v4237_v62 = vor.u32 %v4596_v59, %v4234_v60  ;;  %v4101_v2 = vor.u32 %v4562_v63, %v4098_v0  ;;  %v4560_v35 = vld [vmem:[#allocation9 + $0x34] sm:$0xf]  ;;  %v4226_v0 = vld [vmem:[#allocation9 + $0x148] sm:$0xf0] }
  0x59   :  { %1337 = vmatpush.bf16.msrb.mxu0 %v4117_v3  ;;  %7064 = vst [vmem:[#allocation27_spill] sm:$0xff] %v5177_v42  ;;  %v4506_v3 = vld [vmem:[#allocation6 + $0xe4] sm:$0xf]  ;;  %v4093_v63 = vor.u32 %v4560_v35, %v4090_v36  ;;  %v214_v35 = vld [vmem:[%s7008_s2] sm:$0x3] }
  0x5a   :  { %1546 = vmatpush.bf16.msra.mxu2 %v4237_v62  ;;  %1442 = vmatpush.bf16.msra.mxu1 %v4173_v14  ;;  %7065 = vst [vmem:[#allocation28_spill] sm:$0xff] %v5179_v45  ;;  %v3850_v14 = vld [vmem:[#allocation6 + $0xb8] sm:$0xf0]  ;;  %v4510_v36 = vld [vmem:[#allocation6 + $0x104] sm:$0xf] }
  0x5b   :  { %1650 = vmatpush.bf16.msra.mxu3 %v4301_v5  ;;  %v3848_v5 = vld [vmem:[#allocation6 + $0xa8] sm:$0xf]  ;;  %v5204_v31 = vor.u32 %v4499_v7, %v3850_v14  ;;  %v4290_v7 = vld [vmem:[#allocation9 + $0x1c8] sm:$0xf0]  ;;  %v4578_v14 = vld [vmem:[#allocation9 + $0xc4] sm:$0xf] }
  0x5c   :  { %v5200_v26 = vor.u32 %v4501_v6, %v3848_v5  ;;  %v4610_v6 = vld [vmem:[#allocation9 + $0x1c4] sm:$0xf] }
  0x5d   :  { %1338 = vmatpush.bf16.msrb.mxu0 %v4109_v23  ;;  %v5198_v23 = vor.u32 %v4506_v3, %v3874_v4  ;;  %7071 = vst [vmem:[#allocation34_spill] sm:$0xff] %v5204_v31  ;;  %v4229_v3 = vor.u32 %v4594_v38, %v4226_v0  ;;  %v3890_v38 = vld [vmem:[#allocation6 + $0x110] sm:$0xf0]  ;;  %v3864_v0 = vld [vmem:[#allocation6 + $0xc8] sm:$0xf] }
  0x5e   :  { %7070 = vst [vmem:[#allocation33_spill] sm:$0xff] %v5200_v26 }
  0x5f   :  { %7069 = vst [vmem:[#allocation32_spill] sm:$0xff] %v5198_v23  ;;  %1547 = vmatpush.bf16.msra.mxu2 %v4229_v3  ;;  %v5218_v3 = vperm.slane %v214_v35, 0 }
  0x61   :  { %988 = vmatmul.bf16.gmra.mxu2 %v5096_v8  ;;  %1032 = vmatmul.bf16.vlgmr.msrb.gmra.mxu1 %v5098_v9 }
  0x62   :  { %1339 = vmatpush.bf16.msrb.mxu0 %v4101_v2 }
  0x64   :  { %1013 = vmatmul.bf16.gmra.mxu3 %v5100_v10  ;;  %v4293_v10 = vor.u32 %v4610_v6, %v4290_v7  ;;  %v5224_v6 = vor.u32 %v4510_v36, %v3890_v38 }
  0x66   :  { %1340 = vmatpush.bf16.msrb.mxu0 %v4093_v63  ;;  %1651 = vmatpush.bf16.msra.mxu3 %v4293_v10  ;;  %v4503_v63 = vld [vmem:[#allocation6 + $0xcc] sm:$0xf]  ;;  %7074 = vst [vmem:[#allocation37_spill] sm:$0xff] %v5224_v6 }
  0x67   :  { %943 = vmatmul.bf16.gmra.mxu0 %v5129_v61 }
  0x71   :  { %993 = vmatmul.bf16.gmra.mxu2 %v5108_v32  ;;  %1037 = vmatmul.bf16.gmra.mxu1 %v5110_v33 }
  0x74   :  { %1018 = vmatmul.bf16.gmra.mxu3 %v5112_v34 }
  0x77   :  { %948 = vmatmul.bf16.gmra.mxu0 %v5141_v16 }
  0x81   :  { %1042 = vmatmul.bf16.gmra.mxu1 %v5120_v46  ;;  %1136 = vmatmul.bf16.vlgmr.msrb.gmra.mxu2 %v5122_v47 }
  0x84   :  { %1240 = vmatmul.bf16.vlgmr.msrb.gmra.mxu3 %v5124_v49 }
  0x87   :  { %953 = vmatmul.bf16.gmra.mxu0 %v5153_v39 }
  0x91   :  { %1047 = vmatmul.bf16.gmra.mxu1 %v5132_v11  ;;  %1141 = vmatmul.bf16.gmra.mxu2 %v5134_v12 }
  0x94   :  { %1245 = vmatmul.bf16.gmra.mxu3 %v5136_v13 }
  0xa1   :  { %1052 = vmatmul.bf16.gmra.mxu1 %v5144_v27  ;;  %1146 = vmatmul.bf16.gmra.mxu2 %v5146_v28  ;;  %v3898_v28 = vld [vmem:[#allocation6 + $0x118] sm:$0xf0] }
  0xa4   :  { %1250 = vmatmul.bf16.gmra.mxu3 %v5148_v29  ;;  %v4511_v29 = vld [vmem:[#allocation6 + $0x10c] sm:$0xf] }
  0xa5   :  { %v5277_v32 = vor.u32 %v4511_v29, %v3898_v28 }
  0xa7   :  { %7086 = vst [vmem:[#allocation49_spill] sm:$0xff] %v5277_v32 }
  0xae   :  { %v5160_v57 = vpop.f32.mrf.mxu1 }
  0xb0   :  { %v929_v34 = vpop.f32.mrf.mxu0 }
  0xb1   :  { %1057 = vmatmul.bf16.gmra.mxu1 %v5156_v52  ;;  %1151 = vmatmul.bf16.gmra.mxu2 %v5158_v53  ;;  %v930_v10 = vadd.f32 %v929_v34, %v5218_v3  ;;  %v4514_v34 = vld [vmem:[#allocation6 + $0x124] sm:$0xf]  ;;  %v3882_v53 = vld [vmem:[#allocation6 + $0xf8] sm:$0xf0] }
  0xb4   :  { %1255 = vmatmul.bf16.gmra.mxu3 %v5162_v58  ;;  %v5167_v15 = vpop.f32.mrf.mxu2 }
  0xb6   :  { %v5171_v18 = vpop.f32.mrf.mxu1 }
  0xb7   :  { %v5169_v17 = vpop.f32.mrf.mxu3 }
  0xb8   :  { %v5231_v58 = vpop.f32.mrf.mxu0 }
  0xbc   :  { %v5173_v40 = vpop.f32.mrf.mxu2 }
  0xbe   :  { %v5181_v50 = vpop.f32.mrf.mxu1 }
  0xbf   :  { %v5175_v41 = vpop.f32.mrf.mxu3 }
  0xc1   :  { %1062 = vmatmul.bf16.gmra.mxu1 %v5177_v42  ;;  %1156 = vmatmul.bf16.gmra.mxu2 %v5179_v45  ;;  %v4558_v42 = vld [vmem:[#allocation9 + $0x24] sm:$0xf] }
  0xc4   :  { %1260 = vmatmul.bf16.gmra.mxu3 %v5183_v51  ;;  %v5188_v59 = vpop.f32.mrf.mxu2  ;;  %v934_v38 = vpop.f32.mrf.mxu0 }
  0xc6   :  { %v5192_v62 = vpop.f32.mrf.mxu1 }
  0xc7   :  { %v5190_v60 = vpop.f32.mrf.mxu3 }
  0xc8   :  { %7067 = vst [vmem:[#allocation30_spill] sm:$0xff] %v5190_v60 }
  0xcc   :  { %v5194_v19 = vpop.f32.mrf.mxu2 }
  0xce   :  { %v5202_v30 = vpop.f32.mrf.mxu1 }
  0xcf   :  { %v5196_v20 = vpop.f32.mrf.mxu3 }
  0xd0   :  { %7068 = vst [vmem:[#allocation31_spill] sm:$0xff] %v5196_v20  ;;  %v3896_v20 = vld [vmem:[#allocation6 + $0x108] sm:$0xf] }
  0xd1   :  { %1067 = vmatmul.bf16.gmra.mxu1 %v5198_v23  ;;  %1161 = vmatmul.bf16.gmra.mxu2 %v5200_v26  ;;  %v4505_v23 = vld [vmem:[#allocation6 + $0xd4] sm:$0xf0] }
  0xd4   :  { %1265 = vmatmul.bf16.gmra.mxu3 %v5204_v31  ;;  %v5209_v2 = vpop.f32.mrf.mxu2  ;;  %v4162_v31 = vld [vmem:[#allocation9 + $0xc8] sm:$0xf0] }
  0xd5   :  { %v4165_v26 = vor.u32 %v4578_v14, %v4162_v31  ;;  %v5226_v31 = vor.u32 %v4505_v23, %v3864_v0  ;;  %v5228_v14 = vor.u32 %v4503_v63, %v3866_v56  ;;  %v3906_v0 = vld [vmem:[#allocation6 + $0x130] sm:$0xf0]  ;;  %v3880_v63 = vld [vmem:[#allocation6 + $0xe8] sm:$0xf] }
  0xd6   :  { %v5213_v5 = vpop.f32.mrf.mxu1 }
  0xd7   :  { %v5211_v4 = vpop.f32.mrf.mxu3  ;;  %1443 = vmatpush.bf16.msra.mxu1 %v4165_v26  ;;  %7075 = vst [vmem:[#allocation38_spill] sm:$0xff] %v5226_v31  ;;  %v4085_v26 = vor.u32 %v4558_v42, %v4082_v25  ;;  %v4556_v25 = vld [vmem:[#allocation9 + $0x14] sm:$0xf]  ;;  %v4074_v42 = vld [vmem:[#allocation9 + $0x18] sm:$0xf0] }
  0xd8   :  { %7072 = vst [vmem:[#allocation35_spill] sm:$0xff] %v5211_v4  ;;  %v935_v4 = vadd.f32 %v934_v38, %v5218_v3  ;;  %v4518_v38 = vld [vmem:[#allocation6 + $0x144] sm:$0xf] }
  0xd9   :  { %7076 = vst [vmem:[#allocation39_spill] sm:$0xff] %v5228_v14  ;;  %1341 = vmatpush.bf16.msrb.mxu0 %v4085_v26 }
  0xdc   :  { %v5220_v51 = vpop.f32.mrf.mxu2 }
  0xde   :  { %v1033_v7 = vpop.f32.mrf.mxu1 }
  0xdf   :  { %v5222_v45 = vpop.f32.mrf.mxu3  ;;  %v5236_v35 = vadd.f32 %v1033_v7, %v930_v10  ;;  %v5248_v10 = vor.u32 %v4514_v34, %v3906_v0  ;;  %v4066_v0 = vld [vmem:[#allocation9 + $0x8] sm:$0xf0] }
  0xe0   :  { %7073 = vst [vmem:[#allocation36_spill] sm:$0xff] %v5222_v45  ;;  %v4077_v45 = vor.u32 %v4556_v25, %v4074_v42  ;;  %v5257_v25 = vpop.f32.mrf.mxu0 }
  0xe1   :  { %1072 = vmatmul.bf16.gmra.mxu1 %v5224_v6  ;;  %1166 = vmatmul.bf16.gmra.mxu2 %v5226_v31  ;;  %v4509_v6 = vld [vmem:[#allocation6 + $0xf4] sm:$0xf0]  ;;  %v4507_v31 = vld [vmem:[#allocation6 + $0xec] sm:$0xf]  ;;  %7079 = vst [vmem:[#allocation42_spill] sm:$0xff] %v5248_v10 }
  0xe2   :  { %1342 = vmatpush.bf16.msrb.mxu0 %v4077_v45  ;;  %v5250_v26 = vor.u32 %v4509_v6, %v3880_v63  ;;  %v5252_v52 = vor.u32 %v4507_v31, %v3882_v53  ;;  %v4554_v6 = vld [vmem:[#allocation9 + $0x4] sm:$0xf]  ;;  %v3922_v63 = vld [vmem:[#allocation6 + $0x150] sm:$0xf0] }
  0xe3   :  { %v4069_v31 = vor.u32 %v4554_v6, %v4066_v0  ;;  %v5273_v0 = vor.u32 %v4518_v38, %v3922_v63  ;;  %v932_v63 = vadd.f32 %v5231_v58, %v5218_v3 }
  0xe4   :  { %1270 = vmatmul.bf16.gmra.mxu3 %v5228_v14  ;;  %v5238_v23 = vpop.f32.mrf.mxu2  ;;  %7080 = vst [vmem:[#allocation43_spill] sm:$0xff] %v5250_v26 }
  0xe5   :  { %7081 = vst [vmem:[#allocation44_spill] sm:$0xff] %v5252_v52 }
  0xe6   :  { %v5242_v36 = vpop.f32.mrf.mxu1  ;;  %1343 = vmatpush.bf16.msrb.mxu0 %v4069_v31  ;;  %7084 = vst [vmem:[#allocation47_spill] sm:$0xff] %v5273_v0 }
  0xe7   :  { %v5240_v56 = vpop.f32.mrf.mxu3 }
  0xe8   :  { %7077 = vst [vmem:[#allocation40_spill] sm:$0xff] %v5240_v56 }
  0xe9   :  { %1344 = vmatmul.bf16.vlgmr.msrb.gmra.mxu0 %v5093_v1  ;;  %v4154_v1 = vld [vmem:[#allocation9 + $0xb8] sm:$0xf0] }
  0xec   :  { %v5244_v14 = vpop.f32.mrf.mxu2 }
  0xee   :  { %v1038_v56 = vpop.f32.mrf.mxu1 }
  0xef   :  { %v5246_v7 = vpop.f32.mrf.mxu3  ;;  %v5260_v45 = vadd.f32 %v1038_v56, %v935_v4  ;;  %v4282_v56 = vld [vmem:[#allocation9 + $0x1b8] sm:$0xf0] }
  0xf0   :  { %7078 = vst [vmem:[#allocation41_spill] sm:$0xff] %v5246_v7  ;;  %v4218_v7 = vld [vmem:[#allocation9 + $0x138] sm:$0xf0] }
  0xf1   :  { %1077 = vmatmul.bf16.gmra.mxu1 %v5248_v10  ;;  %1171 = vmatmul.bf16.gmra.mxu2 %v5250_v26  ;;  %v939_v10 = vpop.f32.mrf.mxu0  ;;  %v4592_v26 = vld [vmem:[#allocation9 + $0x134] sm:$0xf] }
  0xf2   :  { %v4221_v4 = vor.u32 %v4592_v26, %v4218_v7  ;;  %v940_v7 = vadd.f32 %v939_v10, %v5218_v3 }
  0xf4   :  { %1275 = vmatmul.bf16.gmra.mxu3 %v5252_v52  ;;  %v5262_v42 = vpop.f32.mrf.mxu2  ;;  %v4513_v52 = vld [vmem:[#allocation6 + $0x114] sm:$0xf0]  ;;  %1548 = vmatpush.bf16.msra.mxu2 %v4221_v4 }
  0xf5   :  { %v5275_v31 = vor.u32 %v4513_v52, %v3896_v20  ;;  %v4625_v52 = vld [vmem:[%s7009_s3 + $0x38] sm:$0xff] }
  0xf6   :  { %v5266_v53 = vpop.f32.mrf.mxu1  ;;  %2067 = vmatpush.bf16.msra.mxu0 %v4625_v52 }
  0xf7   :  { %v5264_v34 = vpop.f32.mrf.mxu3  ;;  %7085 = vst [vmem:[#allocation48_spill] sm:$0xff] %v5275_v31 }
  0xf8   :  { %7082 = vst [vmem:[#allocation45_spill] sm:$0xff] %v5264_v34  ;;  %v4285_v34 = vor.u32 %v4608_v48, %v4282_v56  ;;  %v4576_v48 = vld [vmem:[#allocation9 + $0xb4] sm:$0xf]  ;;  %v4522_v56 = vld [vmem:[#allocation6 + $0x164] sm:$0xf] }
  0xf9   :  { %v5282_v26 = vpop.f32.mrf.mxu0  ;;  %v4157_v38 = vor.u32 %v4576_v48, %v4154_v1  ;;  %v3938_v1 = vld [vmem:[#allocation6 + $0x170] sm:$0xf0]  ;;  %1349 = vmatmul.bf16.gmra.mxu0 %v5105_v24 }
  0xfa   :  { %1652 = vmatpush.bf16.msra.mxu3 %v4285_v34 }
  0xfb   :  { %1444 = vmatpush.bf16.msra.mxu1 %v4157_v38  ;;  %v3914_v38 = vld [vmem:[#allocation6 + $0x138] sm:$0xf0] }
  0xfc   :  { %v5269_v27 = vpop.f32.mrf.mxu2 }
  0xfe   :  { %v1043_v60 = vpop.f32.mrf.mxu1 }
  0xff   :  { %v5271_v6 = vpop.f32.mrf.mxu3  ;;  %v5288_v20 = vadd.f32 %v1043_v60, %v940_v7  ;;  %v1036_v60 = vadd.f32 %v5242_v36, %v932_v63  ;;  %v4515_v7 = vld [vmem:[#allocation6 + $0x12c] sm:$0xf] }
 0x100   :  { %7083 = vst [vmem:[#allocation46_spill] sm:$0xff] %v5271_v6 }
 0x101   :  { %1082 = vmatmul.bf16.gmra.mxu1 %v5273_v0  ;;  %1176 = vmatmul.bf16.gmra.mxu2 %v5275_v31  ;;  %v944_v48 = vpop.f32.mrf.mxu0  ;;  %v4517_v31 = vld [vmem:[#allocation6 + $0x134] sm:$0xf0]  ;;  %v5299_v0 = vor.u32 %v4522_v56, %v3938_v1 }
 0x104   :  { %1280 = vmatmul.bf16.gmra.mxu3 %v5277_v32  ;;  %v1137_v28 = vpop.f32.mrf.mxu2  ;;  %v3912_v32 = vld [vmem:[#allocation6 + $0x128] sm:$0xf] }
 0x105   :  { %v1138_v29 = vadd.f32 %v1137_v28, %v5236_v35  ;;  %v5301_v6 = vor.u32 %v4517_v31, %v3912_v32 }
 0x106   :  { %v5291_v34 = vpop.f32.mrf.mxu1 }
 0x107   :  { %v1241_v10 = vpop.f32.mrf.mxu3  ;;  %7088 = vst [vmem:[#allocation51_spill] sm:$0xff] %v5301_v6 }
 0x108   :  { %v5295_v4 = vadd.f32 %v1241_v10, %v1138_v29  ;;  %v5303_v29 = vor.u32 %v4515_v7, %v3914_v38  ;;  %v945_v10 = vadd.f32 %v944_v48, %v5218_v3  ;;  %v937_v48 = vadd.f32 %v5257_v25, %v5218_v3  ;;  %v3954_v38 = vld [vmem:[#allocation6 + $0x190] sm:$0xf0] }
 0x109   :  { %v5310_v36 = vpop.f32.mrf.mxu0  ;;  %1354 = vmatmul.bf16.gmra.mxu0 %v5117_v37  ;;  %v4210_v37 = vld [vmem:[#allocation9 + $0x128] sm:$0xf0] }
 0x10a   :  { %7087 = vst [vmem:[#allocation50_spill] sm:$0xff] %v5295_v4 }
 0x10b   :  { %7089 = vst [vmem:[#allocation52_spill] sm:$0xff] %v5303_v29 }
 0x10c   :  { %v1139_v35 = vpop.f32.mrf.mxu2 }
 0x10d   :  { %v1140_v52 = vadd.f32 %v1139_v35, %v1036_v60  ;;  %v4526_v60 = vld [vmem:[#allocation6 + $0x184] sm:$0xf]  ;;  %v3928_v35 = vld [vmem:[#allocation6 + $0x148] sm:$0xf] }
 0x10e   :  { %v1048_v58 = vpop.f32.mrf.mxu1 }
 0x10f   :  { %v1243_v28 = vpop.f32.mrf.mxu3  ;;  %v5313_v24 = vadd.f32 %v1048_v58, %v945_v10  ;;  %v4519_v58 = vld [vmem:[#allocation6 + $0x14c] sm:$0xf]  ;;  %v3930_v10 = vld [vmem:[#allocation6 + $0x158] sm:$0xf0] }
 0x110   :  { %v5306_v4 = vadd.f32 %v1243_v28, %v1140_v52  ;;  %v4521_v52 = vld [vmem:[#allocation6 + $0x154] sm:$0xf0]  ;;  %v1041_v28 = vadd.f32 %v5266_v53, %v937_v48  ;;  %v4590_v53 = vld [vmem:[#allocation9 + $0x124] sm:$0xf] }
 0x111   :  { %1087 = vmatmul.bf16.gmra.mxu1 %v5299_v0  ;;  %1181 = vmatmul.bf16.gmra.mxu2 %v5301_v6  ;;  %v949_v7 = vpop.f32.mrf.mxu0  ;;  %v5326_v6 = vor.u32 %v4521_v52, %v3928_v35  ;;  %v4213_v48 = vor.u32 %v4590_v53, %v4210_v37  ;;  %v4574_v35 = vld [vmem:[#allocation9 + $0xa4] sm:$0xf]  ;;  %v942_v53 = vadd.f32 %v5282_v26, %v5218_v3 }
 0x112   :  { %7090 = vst [vmem:[#allocation53_spill] sm:$0xff] %v5306_v4 }
 0x113   :  { %7093 = vst [vmem:[#allocation56_spill] sm:$0xff] %v5326_v6  ;;  %1549 = vmatpush.bf16.msra.mxu2 %v4213_v48  ;;  %v3944_v48 = vld [vmem:[#allocation6 + $0x168] sm:$0xf] }
 0x114   :  { %1285 = vmatmul.bf16.gmra.mxu3 %v5303_v29  ;;  %v1142_v63 = vpop.f32.mrf.mxu2  ;;  %v5324_v29 = vor.u32 %v4526_v60, %v3954_v38  ;;  %v4606_v60 = vld [vmem:[#allocation9 + $0x1a4] sm:$0xf]  ;;  %v4274_v38 = vld [vmem:[#allocation9 + $0x1a8] sm:$0xf0] }
 0x115   :  { %v1143_v32 = vadd.f32 %v1142_v63, %v5260_v45 }
 0x116   :  { %v5316_v56 = vpop.f32.mrf.mxu1  ;;  %7092 = vst [vmem:[#allocation55_spill] sm:$0xff] %v5324_v29 }
 0x117   :  { %v1246_v31 = vpop.f32.mrf.mxu3 }
 0x118   :  { %v5320_v1 = vadd.f32 %v1246_v31, %v1143_v32  ;;  %v5328_v32 = vor.u32 %v4519_v58, %v3930_v10  ;;  %v950_v31 = vadd.f32 %v949_v7, %v5218_v3  ;;  %v4277_v58 = vor.u32 %v4606_v60, %v4274_v38  ;;  %v4146_v7 = vld [vmem:[#allocation9 + $0xa8] sm:$0xf0]  ;;  %v3970_v60 = vld [vmem:[#allocation6 + $0x1b0] sm:$0xf0]  ;;  %v4525_v38 = vld [vmem:[#allocation6 + $0x174] sm:$0xf0] }
 0x119   :  { %v4149_v10 = vor.u32 %v4574_v35, %v4146_v7  ;;  %v4523_v35 = vld [vmem:[#allocation6 + $0x16c] sm:$0xf]  ;;  %1359 = vmatmul.bf16.gmra.mxu0 %v5129_v61 }
 0x11a   :  { %7091 = vst [vmem:[#allocation54_spill] sm:$0xff] %v5320_v1  ;;  %1653 = vmatpush.bf16.msra.mxu3 %v4277_v58  ;;  %v3946_v58 = vld [vmem:[#allocation6 + $0x178] sm:$0xf0] }
 0x11b   :  { %7094 = vst [vmem:[#allocation57_spill] sm:$0xff] %v5328_v32  ;;  %1445 = vmatpush.bf16.msra.mxu1 %v4149_v10 }
 0x11c   :  { %v1144_v45 = vpop.f32.mrf.mxu2 }
 0x11d   :  { %v1145_v63 = vadd.f32 %v1144_v45, %v1041_v28  ;;  %v5338_v28 = vpop.f32.mrf.mxu0 }
 0x11e   :  { %v1053_v25 = vpop.f32.mrf.mxu1 }
 0x11f   :  { %v1248_v4 = vpop.f32.mrf.mxu3  ;;  %v5336_v52 = vadd.f32 %v1053_v25, %v950_v31  ;;  %v4530_v25 = vld [vmem:[#allocation6 + $0x1a4] sm:$0xf]  ;;  %v4624_v31 = vld [vmem:[%s7009_s3 + $0x30] sm:$0xff] }
 0x120   :  { %v5331_v1 = vadd.f32 %v1248_v4, %v1145_v63  ;;  %2068 = vmatpush.bf16.msra.mxu0 %v4624_v31  ;;  %v5352_v10 = vor.u32 %v4530_v25, %v3970_v60  ;;  %v947_v60 = vadd.f32 %v5310_v36, %v5218_v3 }
 0x121   :  { %1092 = vmatmul.bf16.gmra.mxu1 %v5324_v29  ;;  %1186 = vmatmul.bf16.gmra.mxu2 %v5326_v6 }
 0x122   :  { %7095 = vst [vmem:[#allocation58_spill] sm:$0xff] %v5331_v1 }
 0x124   :  { %1290 = vmatmul.bf16.gmra.mxu3 %v5328_v32  ;;  %v1147_v4 = vpop.f32.mrf.mxu2  ;;  %v5356_v32 = vor.u32 %v4523_v35, %v3946_v58  ;;  %v3960_v35 = vld [vmem:[#allocation6 + $0x188] sm:$0xf]  ;;  %v4529_v58 = vld [vmem:[#allocation6 + $0x194] sm:$0xf0] }
 0x125   :  { %v1148_v45 = vadd.f32 %v1147_v4, %v5288_v20  ;;  %v1046_v20 = vadd.f32 %v5291_v34, %v942_v53  ;;  %v5379_v36 = vor.u32 %v4529_v58, %v3960_v35  ;;  %v952_v35 = vadd.f32 %v5338_v28, %v5218_v3 }
 0x126   :  { %v5341_v1 = vpop.f32.mrf.mxu1 }
 0x127   :  { %v1251_v63 = vpop.f32.mrf.mxu3  ;;  %7100 = vst [vmem:[#allocation63_spill] sm:$0xff] %v5379_v36 }
 0x128   :  { %v5345_v37 = vadd.f32 %v1251_v63, %v1148_v45  ;;  %v5354_v45 = vor.u32 %v4525_v38, %v3944_v48  ;;  %v954_v63 = vpop.f32.mrf.mxu0  ;;  %v4534_v38 = vld [vmem:[#allocation6 + $0x1c4] sm:$0xf] }
 0x129   :  { %v955_v6 = vadd.f32 %v954_v63, %v5218_v3  ;;  %1364 = vmatmul.bf16.gmra.mxu0 %v5141_v16 }
 0x12a   :  { %7096 = vst [vmem:[#allocation59_spill] sm:$0xff] %v5345_v37 }
 0x12c   :  { %v1149_v7 = vpop.f32.mrf.mxu2 }
 0x12d   :  { %v1150_v4 = vadd.f32 %v1149_v7, %v1046_v20  ;;  %v3986_v20 = vld [vmem:[#allocation6 + $0x1d0] sm:$0xf0]  ;;  %v1051_v7 = vadd.f32 %v5316_v56, %v947_v60 }
 0x12e   :  { %v1058_v37 = vpop.f32.mrf.mxu1 }
 0x12f   :  { %v1253_v26 = vpop.f32.mrf.mxu3  ;;  %v5364_v61 = vadd.f32 %v1058_v37, %v955_v6  ;;  %v3962_v6 = vld [vmem:[#allocation6 + $0x198] sm:$0xf0] }
 0x130   :  { %v5359_v29 = vadd.f32 %v1253_v26, %v1150_v4  ;;  %v4527_v4 = vld [vmem:[#allocation6 + $0x18c] sm:$0xf] }
 0x131   :  { %1097 = vmatmul.bf16.gmra.mxu1 %v5352_v10  ;;  %1191 = vmatmul.bf16.gmra.mxu2 %v5354_v45 }
 0x132   :  { %7097 = vst [vmem:[#allocation60_spill] sm:$0xff] %v5359_v29 }
 0x134   :  { %1295 = vmatmul.bf16.gmra.mxu3 %v5356_v32  ;;  %v1152_v34 = vpop.f32.mrf.mxu2 }
 0x135   :  { %v1153_v53 = vadd.f32 %v1152_v34, %v5313_v24  ;;  %v960_v24 = vadd.f32 %v5160_v57, %v5218_v3  ;;  %v5377_v34 = vor.u32 %v4534_v38, %v3986_v20  ;;  %v962_v57 = vadd.f32 %v5171_v18, %v5218_v3  ;;  %v4266_v18 = vld [vmem:[#allocation9 + $0x198] sm:$0xf0] }
 0x136   :  { %v5367_v31 = vpop.f32.mrf.mxu1 }
 0x137   :  { %v1256_v25 = vpop.f32.mrf.mxu3  ;;  %7099 = vst [vmem:[#allocation62_spill] sm:$0xff] %v5377_v34 }
 0x138   :  { %v5371_v48 = vadd.f32 %v1256_v25, %v1153_v53  ;;  %v5381_v25 = vor.u32 %v4527_v4, %v3962_v6  ;;  %v4538_v4 = vld [vmem:[#allocation6 + $0x1e4] sm:$0xf]  ;;  %v4002_v6 = vld [vmem:[#allocation6 + $0x1f0] sm:$0xf0] }
 0x139   :  { %1369 = vmatmul.bf16.gmra.mxu0 %v5153_v39  ;;  %v5403_v29 = vor.u32 %v4538_v4, %v4002_v6  ;;  %v4623_v39 = vld [vmem:[%s7009_s3 + $0x28] sm:$0xff] }
 0x13a   :  { %7098 = vst [vmem:[#allocation61_spill] sm:$0xff] %v5371_v48  ;;  %2069 = vmatpush.bf16.msra.mxu0 %v4623_v39 }
 0x13b   :  { %7101 = vst [vmem:[#allocation64_spill] sm:$0xff] %v5381_v25 }
 0x13c   :  { %v1154_v37 = vpop.f32.mrf.mxu2 }
 0x13d   :  { %v1155_v26 = vadd.f32 %v1154_v37, %v1051_v7  ;;  %v3976_v37 = vld [vmem:[#allocation6 + $0x1a8] sm:$0xf] }
 0x13e   :  { %v1063_v53 = vpop.f32.mrf.mxu1 }
 0x13f   :  { %v1258_v63 = vpop.f32.mrf.mxu3  ;;  %v5385_v56 = vadd.f32 %v1063_v53, %v960_v24  ;;  %v4533_v24 = vld [vmem:[#allocation6 + $0x1b4] sm:$0xf0]  ;;  %v4604_v53 = vld [vmem:[#allocation9 + $0x194] sm:$0xf] }
 0x140   :  { %v5383_v48 = vadd.f32 %v1258_v63, %v1155_v26  ;;  %v4588_v26 = vld [vmem:[#allocation9 + $0x114] sm:$0xf]  ;;  %v4202_v63 = vld [vmem:[#allocation9 + $0x118] sm:$0xf0]  ;;  %v4269_v28 = vor.u32 %v4604_v53, %v4266_v18  ;;  %v4542_v53 = vld [vmem:[#allocation6 + $0x204] sm:$0xf] }
 0x141   :  { %1102 = vmatmul.bf16.gmra.mxu1 %v5377_v34  ;;  %1196 = vmatmul.bf16.gmra.mxu2 %v5379_v36  ;;  %v4531_v36 = vld [vmem:[#allocation6 + $0x1ac] sm:$0xf]  ;;  %v3978_v34 = vld [vmem:[#allocation6 + $0x1b8] sm:$0xf0]  ;;  %v4018_v18 = vld [vmem:[#allocation6 + $0x210] sm:$0xf0] }
 0x142   :  { %7102 = vst [vmem:[#allocation65_spill] sm:$0xff] %v5383_v48  ;;  %v4205_v48 = vor.u32 %v4588_v26, %v4202_v63  ;;  %v5405_v26 = vor.u32 %v4533_v24, %v3976_v37  ;;  %1654 = vmatpush.bf16.msra.mxu3 %v4269_v28 }
 0x144   :  { %1300 = vmatmul.bf16.gmra.mxu3 %v5381_v25  ;;  %v1157_v16 = vpop.f32.mrf.mxu2  ;;  %v4572_v25 = vld [vmem:[#allocation9 + $0x94] sm:$0xf]  ;;  %1550 = vmatpush.bf16.msra.mxu2 %v4205_v48 }
 0x145   :  { %v1158_v60 = vadd.f32 %v1157_v16, %v5336_v52  ;;  %v4138_v52 = vld [vmem:[#allocation9 + $0x98] sm:$0xf0]  ;;  %v1056_v16 = vadd.f32 %v5341_v1, %v952_v35  ;;  %v5407_v35 = vor.u32 %v4531_v36, %v3978_v34  ;;  %v967_v34 = vadd.f32 %v5192_v62, %v5218_v3 }
 0x146   :  { %v1065_v20 = vpop.f32.mrf.mxu1  ;;  %v970_v62 = vadd.f32 %v5202_v30, %v5218_v3  ;;  %v972_v30 = vadd.f32 %v5213_v5, %v5218_v3  ;;  %v975_v5 = vadd.f32 %v5167_v15, %v5218_v3 }
 0x147   :  { %v1261_v38 = vpop.f32.mrf.mxu3  ;;  %v5397_v7 = vadd.f32 %v1065_v20, %v962_v57  ;;  %v965_v57 = vadd.f32 %v5181_v50, %v5218_v3  ;;  %v956_v50 = vpop.f32.mrf.mxu0 }
 0x148   :  { %v5395_v58 = vadd.f32 %v1261_v38, %v1158_v60  ;;  %v4141_v60 = vor.u32 %v4572_v25, %v4138_v52  ;;  %v957_v6 = vadd.f32 %v956_v50, %v5218_v3  ;;  %v3992_v52 = vld [vmem:[#allocation6 + $0x1c8] sm:$0xf] }
 0x149   :  { %1374 = vmatmul.bf16.gmra.mxu0 %v5066_v43 }
 0x14a   :  { %7103 = vst [vmem:[#allocation66_spill] sm:$0xff] %v5395_v58  ;;  %1446 = vmatpush.bf16.msra.mxu1 %v4141_v60  ;;  %v1061_v28 = vadd.f32 %v5367_v31, %v957_v6  ;;  %v4535_v60 = vld [vmem:[#allocation6 + $0x1cc] sm:$0xf] }
 0x14c   :  { %v1159_v38 = vpop.f32.mrf.mxu2 }
 0x14d   :  { %v1160_v20 = vadd.f32 %v1159_v38, %v1056_v16  ;;  %v4537_v16 = vld [vmem:[#allocation6 + $0x1d4] sm:$0xf0] }
 0x14e   :  { %v1068_v1 = vpop.f32.mrf.mxu1  ;;  %v5433_v39 = vor.u32 %v4537_v16, %v3992_v52  ;;  %v4586_v52 = vld [vmem:[#allocation9 + $0x104] sm:$0xf]  ;;  %v4194_v16 = vld [vmem:[#allocation9 + $0x108] sm:$0xf0] }
 0x14f   :  { %v1263_v58 = vpop.f32.mrf.mxu3  ;;  %v5411_v25 = vadd.f32 %v1068_v1, %v965_v57  ;;  %v3994_v57 = vld [vmem:[#allocation6 + $0x1d8] sm:$0xf0]  ;;  %v5431_v1 = vor.u32 %v4542_v53, %v4018_v18  ;;  %v4546_v18 = vld [vmem:[#allocation6 + $0x224] sm:$0xf] }
 0x150   :  { %v5409_v63 = vadd.f32 %v1263_v58, %v1160_v20 }
 0x151   :  { %1107 = vmatmul.bf16.gmra.mxu1 %v5403_v29  ;;  %1201 = vmatmul.bf16.gmra.mxu2 %v5405_v26 }
 0x154   :  { %1305 = vmatmul.bf16.gmra.mxu3 %v5407_v35  ;;  %v1162_v48 = vpop.f32.mrf.mxu2 }
 0x155   :  { %v1163_v36 = vadd.f32 %v1162_v48, %v5364_v61  ;;  %v5435_v48 = vor.u32 %v4535_v60, %v3994_v57  ;;  %v4008_v60 = vld [vmem:[#allocation6 + $0x1e8] sm:$0xf]  ;;  %v4541_v57 = vld [vmem:[#allocation6 + $0x1f4] sm:$0xf0] }
 0x156   :  { %v1070_v4 = vpop.f32.mrf.mxu1 }
 0x157   :  { %v1266_v58 = vpop.f32.mrf.mxu3  ;;  %v5425_v24 = vadd.f32 %v1070_v4, %v967_v34 }
 0x158   :  { %v5423_v37 = vadd.f32 %v1266_v58, %v1163_v36 }
 0x159   :  { %1379 = vmatmul.bf16.gmra.mxu0 %v5075_v21  ;;  %v4602_v21 = vld [vmem:[#allocation9 + $0x184] sm:$0xf] }
 0x15c   :  { %v1164_v38 = vpop.f32.mrf.mxu2 }
 0x15d   :  { %v1165_v61 = vadd.f32 %v1164_v38, %v1061_v28  ;;  %v4034_v28 = vld [vmem:[#allocation6 + $0x230] sm:$0xf0]  ;;  %v4197_v38 = vor.u32 %v4586_v52, %v4194_v16 }
 0x15e   :  { %v1073_v50 = vpop.f32.mrf.mxu1 }
 0x15f   :  { %v1268_v20 = vpop.f32.mrf.mxu3  ;;  %v5439_v31 = vadd.f32 %v1073_v50, %v970_v62  ;;  %v4539_v62 = vld [vmem:[#allocation6 + $0x1ec] sm:$0xf]  ;;  %1551 = vmatpush.bf16.msra.mxu2 %v4197_v38 }
 0x160   :  { %v5437_v34 = vadd.f32 %v1268_v20, %v1165_v61  ;;  %v4010_v61 = vld [vmem:[#allocation6 + $0x1f8] sm:$0xf0]  ;;  %v4130_v50 = vld [vmem:[#allocation9 + $0x88] sm:$0xf0] }
 0x161   :  { %1112 = vmatmul.bf16.gmra.mxu1 %v5431_v1  ;;  %1206 = vmatmul.bf16.gmra.mxu2 %v5433_v39  ;;  %v5459_v16 = vor.u32 %v4539_v62, %v4010_v61 }
 0x164   :  { %1310 = vmatmul.bf16.gmra.mxu3 %v5435_v48  ;;  %v1167_v43 = vpop.f32.mrf.mxu2 }
 0x165   :  { %v1168_v36 = vadd.f32 %v1167_v43, %v5385_v56  ;;  %v4570_v56 = vld [vmem:[#allocation9 + $0x84] sm:$0xf] }
 0x166   :  { %v1075_v4 = vpop.f32.mrf.mxu1 }
 0x167   :  { %v1271_v58 = vpop.f32.mrf.mxu3  ;;  %v5449_v53 = vadd.f32 %v1075_v4, %v972_v30  ;;  %v4133_v4 = vor.u32 %v4570_v56, %v4130_v50  ;;  %v4550_v56 = vld [vmem:[#allocation6 + $0x244] sm:$0xf]  ;;  %v4622_v50 = vld [vmem:[%s7009_s3 + $0x20] sm:$0xff] }
 0x168   :  { %v5447_v6 = vadd.f32 %v1271_v58, %v1168_v36  ;;  %v5455_v36 = vor.u32 %v4546_v18, %v4034_v28  ;;  %v5457_v58 = vor.u32 %v4541_v57, %v4008_v60  ;;  %v977_v60 = vadd.f32 %v5173_v40, %v5218_v3  ;;  %v4026_v40 = vld [vmem:[#allocation6 + $0x218] sm:$0xf0]  ;;  %2070 = vmatpush.bf16.msra.mxu0 %v4622_v50 }
 0x169   :  { %1447 = vmatpush.bf16.msra.mxu1 %v4133_v4  ;;  %v4545_v4 = vld [vmem:[#allocation6 + $0x214] sm:$0xf0]  ;;  %1384 = vmatmul.bf16.gmra.mxu0 %v5084_v54 }
 0x16a   :  { %7104 = vst [vmem:[#allocation67_spill] sm:$0xff] %v5447_v6 }
 0x16c   :  { %v1169_v20 = vpop.f32.mrf.mxu2 }
 0x16d   :  { %v1170_v43 = vadd.f32 %v1169_v20, %v5397_v7  ;;  %v4258_v7 = vld [vmem:[#allocation9 + $0x188] sm:$0xf0]  ;;  %v5475_v20 = vpop.f32.mrf.mxu0 }
 0x16e   :  { %v1078_v52 = vpop.f32.mrf.mxu1  ;;  %v4261_v18 = vor.u32 %v4602_v21, %v4258_v7  ;;  %v980_v21 = vadd.f32 %v5188_v59, %v5218_v3  ;;  %v982_v59 = vadd.f32 %v5194_v19, %v5218_v3 }
 0x16f   :  { %v1273_v30 = vpop.f32.mrf.mxu3  ;;  %v5463_v15 = vadd.f32 %v1078_v52, %v975_v5  ;;  %v4543_v52 = vld [vmem:[#allocation6 + $0x20c] sm:$0xf] }
 0x170   :  { %v5461_v6 = vadd.f32 %v1273_v30, %v1170_v43  ;;  %1655 = vmatpush.bf16.msra.mxu3 %v4261_v18  ;;  %v4050_v43 = vld [vmem:[#allocation6 + $0x250] sm:$0xf0]  ;;  %v4024_v30 = vld [vmem:[#allocation6 + $0x208] sm:$0xf] }
 0x171   :  { %1117 = vmatmul.bf16.gmra.mxu1 %v5455_v36  ;;  %1211 = vmatmul.bf16.gmra.mxu2 %v5457_v58 }
 0x174   :  { %1315 = vmatmul.bf16.gmra.mxu3 %v5459_v16  ;;  %v1172_v28 = vpop.f32.mrf.mxu2 }
 0x175   :  { %v1173_v57 = vadd.f32 %v1172_v28, %v5411_v25  ;;  %v5484_v28 = vor.u32 %v4550_v56, %v4050_v43  ;;  %v5492_v50 = vpop.f32.mrf.mxu0 }
 0x176   :  { %v1080_v62 = vpop.f32.mrf.mxu1 }
 0x177   :  { %v1276_v38 = vpop.f32.mrf.mxu3  ;;  %v5473_v5 = vadd.f32 %v1080_v62, %v977_v60  ;;  %v5486_v60 = vor.u32 %v4545_v4, %v4024_v30 }
 0x178   :  { %v5471_v61 = vadd.f32 %v1276_v38, %v1173_v57  ;;  %v5488_v38 = vor.u32 %v4543_v52, %v4026_v40  ;;  %v4040_v40 = vld [vmem:[#allocation6 + $0x228] sm:$0xf] }
 0x179   :  { %1389 = vmatmul.bf16.gmra.mxu0 %v5068_v44 }
 0x17a   :  { %7105 = vst [vmem:[#allocation68_spill] sm:$0xff] %v5471_v61 }
 0x17c   :  { %v1174_v25 = vpop.f32.mrf.mxu2 }
 0x17d   :  { %v1175_v7 = vadd.f32 %v1174_v25, %v5425_v24  ;;  %v5502_v52 = vpop.f32.mrf.mxu0  ;;  %v4549_v25 = vld [vmem:[#allocation6 + $0x234] sm:$0xf0] }
 0x17e   :  { %v1083_v57 = vpop.f32.mrf.mxu1 }
 0x17f   :  { %v1278_v18 = vpop.f32.mrf.mxu3  ;;  %v1084_v61 = vadd.f32 %v1083_v57, %v980_v21  ;;  %v4547_v21 = vld [vmem:[#allocation6 + $0x22c] sm:$0xf]  ;;  %v985_v57 = vadd.f32 %v5209_v2, %v5218_v3  ;;  %v987_v2 = vadd.f32 %v5220_v51, %v5218_v3  ;;  %v990_v51 = vadd.f32 %v5238_v23, %v5218_v3 }
 0x180   :  { %v5490_v62 = vadd.f32 %v1278_v18, %v1175_v7  ;;  %v4042_v7 = vld [vmem:[#allocation6 + $0x238] sm:$0xf0]  ;;  %v992_v23 = vadd.f32 %v5244_v14, %v5218_v3 }
 0x181   :  { %1122 = vmatmul.bf16.gmra.mxu1 %v5484_v28  ;;  %1216 = vmatmul.bf16.gmra.mxu2 %v5486_v60 }
 0x184   :  { %1320 = vmatmul.bf16.gmra.mxu3 %v5488_v38  ;;  %v1177_v54 = vpop.f32.mrf.mxu2 }
 0x185   :  { %v1178_v24 = vadd.f32 %v1177_v54, %v5439_v31  ;;  %v5508_v54 = vor.u32 %v4549_v25, %v4040_v40 }
 0x186   :  { %v1085_v43 = vpop.f32.mrf.mxu1 }
 0x187   :  { %v1281_v56 = vpop.f32.mrf.mxu3  ;;  %v1086_v4 = vadd.f32 %v1085_v43, %v982_v59 }
 0x188   :  { %v5500_v30 = vadd.f32 %v1281_v56, %v1178_v24  ;;  %v5510_v56 = vor.u32 %v4547_v21, %v4042_v7 }
 0x189   :  { %1394 = vmatmul.bf16.gmra.mxu0 %v5077_v22 }
 0x18a   :  { %7106 = vst [vmem:[#allocation69_spill] sm:$0xff] %v5500_v30  ;;  %v5514_v30 = vpop.f32.mrf.mxu0 }
 0x18b   :  { %7107 = vst [vmem:[#allocation70_spill] sm:$0xff] %v5510_v56 }
 0x18c   :  { %v1179_v18 = vpop.f32.mrf.mxu2 }
 0x18d   :  { %v1180_v19 = vadd.f32 %v1179_v18, %v5449_v53 }
 0x18e   :  { %v1088_v24 = vpop.f32.mrf.mxu1 }
 0x18f   :  { %v1283_v31 = vpop.f32.mrf.mxu3  ;;  %v1089_v43 = vadd.f32 %v1088_v24, %v985_v57  ;;  %v4621_v57 = vld [vmem:[%s7009_s3 + $0x18] sm:$0xff]  ;;  %v4058_v24 = vld [vmem:[#allocation6 + $0x258] sm:$0xf0] }
 0x190   :  { %v5512_v59 = vadd.f32 %v1283_v31, %v1180_v19  ;;  %v4553_v19 = vld [vmem:[#allocation6 + $0x254] sm:$0xf0]  ;;  %v4551_v31 = vld [vmem:[#allocation6 + $0x24c] sm:$0xf]  ;;  %2071 = vmatpush.bf16.msra.mxu0 %v4621_v57 }
 0x191   :  { %1221 = vmatmul.bf16.gmra.mxu2 %v5508_v54  ;;  %1448 = vmatmul.bf16.vlgmr.msra.gmra.mxu1 %v5098_v9  ;;  %v4056_v9 = vld [vmem:[#allocation6 + $0x248] sm:$0xf] }
 0x192   :  { %7108 = vst [vmem:[#allocation71_spill] sm:$0xff] %v5512_v59  ;;  %v5524_v18 = vpop.f32.mrf.mxu0 }
 0x194   :  { %1325 = vmatmul.bf16.gmra.mxu3 %v5510_v56  ;;  %v1182_v44 = vpop.f32.mrf.mxu2 }
 0x195   :  { %v1183_v53 = vadd.f32 %v1182_v44, %v5463_v15 }
 0x196   :  { %v1090_v25 = vpop.f32.mrf.mxu1 }
 0x197   :  { %v1286_v40 = vpop.f32.mrf.mxu3  ;;  %v1091_v7 = vadd.f32 %v1090_v25, %v987_v2  ;;  %v5533_v2 = vor.u32 %v4553_v19, %v4056_v9 }
 0x198   :  { %v5522_v21 = vadd.f32 %v1286_v40, %v1183_v53  ;;  %v5535_v40 = vor.u32 %v4551_v31, %v4058_v24 }
 0x199   :  { %7110 = vst [vmem:[#allocation73_spill] sm:$0xff] %v5533_v2  ;;  %1399 = vmatmul.bf16.gmra.mxu0 %v5086_v55  ;;  %v997_v55 = vadd.f32 %v5269_v27, %v5218_v3 }
 0x19a   :  { %7109 = vst [vmem:[#allocation72_spill] sm:$0xff] %v5522_v21  ;;  %v5539_v56 = vpop.f32.mrf.mxu0 }
 0x19b   :  { %7111 = vst [vmem:[#allocation74_spill] sm:$0xff] %v5535_v40 }
 0x19c   :  { %v1184_v59 = vpop.f32.mrf.mxu2 }
 0x19d   :  { %v1185_v15 = vadd.f32 %v1184_v59, %v5473_v5 }
 0x19e   :  { %v1093_v53 = vpop.f32.mrf.mxu1 }
 0x19f   :  { %v1288_v44 = vpop.f32.mrf.mxu3  ;;  %v1094_v21 = vadd.f32 %v1093_v53, %v990_v51 }
 0x1a0   :  { %v5537_v25 = vadd.f32 %v1288_v44, %v1185_v15 }
 0x1a1   :  { %1226 = vmatmul.bf16.gmra.mxu2 %v5533_v2  ;;  %1453 = vmatmul.bf16.gmra.mxu1 %v5110_v33  ;;  %v995_v33 = vadd.f32 %v5262_v42, %v5218_v3 }
 0x1a2   :  { %7112 = vst [vmem:[#allocation75_spill] sm:$0xff] %v5537_v25  ;;  %v5548_v31 = vpop.f32.mrf.mxu0 }
 0x1a4   :  { %1330 = vmatmul.bf16.gmra.mxu3 %v5535_v40  ;;  %v1187_v22 = vpop.f32.mrf.mxu2  ;;  %v7153_v40 = vld [vmem:[#allocation38_spill] sm:$0xff] }
 0x1a5   :  { %v1188_v5 = vadd.f32 %v1187_v22, %v1084_v61 }
 0x1a6   :  { %v1095_v57 = vpop.f32.mrf.mxu1 }
 0x1a7   :  { %v1291_v59 = vpop.f32.mrf.mxu3  ;;  %v1096_v19 = vadd.f32 %v1095_v57, %v992_v23 }
 0x1a8   :  { %v5546_v9 = vadd.f32 %v1291_v59, %v1188_v5 }
 0x1a9   :  { %1404 = vmatmul.bf16.gmra.mxu0 %v5096_v8 }
 0x1aa   :  { %7113 = vst [vmem:[#allocation76_spill] sm:$0xff] %v5546_v9  ;;  %v5557_v61 = vpop.f32.mrf.mxu0 }
 0x1ac   :  { %v1189_v24 = vpop.f32.mrf.mxu2 }
 0x1ad   :  { %v1190_v51 = vadd.f32 %v1189_v24, %v1086_v4 }
 0x1ae   :  { %v1098_v44 = vpop.f32.mrf.mxu1 }
 0x1af   :  { %v1293_v15 = vpop.f32.mrf.mxu3  ;;  %v1099_v14 = vadd.f32 %v1098_v44, %v995_v33 }
 0x1b0   :  { %v5553_v53 = vadd.f32 %v1293_v15, %v1190_v51  ;;  %v4620_v15 = vld [vmem:[%s7009_s3 + $0x10] sm:$0xff] }
 0x1b1   :  { %1458 = vmatmul.bf16.gmra.mxu1 %v5120_v46  ;;  %1552 = vmatmul.bf16.vlgmr.msra.gmra.mxu2 %v5122_v47  ;;  %v1000_v46 = vadd.f32 %v5169_v17, %v5218_v3  ;;  %v1002_v17 = vadd.f32 %v5175_v41, %v5218_v3 }
 0x1b2   :  { %7114 = vst [vmem:[#allocation77_spill] sm:$0xff] %v5553_v53  ;;  %v5564_v57 = vpop.f32.mrf.mxu0  ;;  %2072 = vmatpush.bf16.msra.mxu0 %v4620_v15 }
 0x1b4   :  { %1656 = vmatmul.bf16.vlgmr.msra.gmra.mxu3 %v5124_v49  ;;  %v1192_v22 = vpop.f32.mrf.mxu2 }
 0x1b5   :  { %v1193_v23 = vadd.f32 %v1192_v22, %v1089_v43 }
 0x1b6   :  { %v1100_v4 = vpop.f32.mrf.mxu1 }
 0x1b7   :  { %v1296_v42 = vpop.f32.mrf.mxu3  ;;  %v1101_v59 = vadd.f32 %v1100_v4, %v997_v55  ;;  %v7119_v4 = vld [vmem:[#allocation30_spill] sm:$0xff] }
 0x1b8   :  { %v5562_v5 = vadd.f32 %v1296_v42, %v1193_v23  ;;  %v7118_v42 = vld [vmem:[#allocation19_spill] sm:$0xff] }
 0x1b9   :  { %1409 = vmatmul.bf16.gmra.mxu0 %v7118_v42 }
 0x1ba   :  { %7115 = vst [vmem:[#allocation78_spill] sm:$0xff] %v5562_v5  ;;  %v5573_v43 = vpop.f32.mrf.mxu0 }
 0x1bc   :  { %v1194_v24 = vpop.f32.mrf.mxu2 }
 0x1bd   :  { %v1195_v47 = vadd.f32 %v1194_v24, %v1091_v7  ;;  %v1005_v24 = vadd.f32 %v7119_v4, %v5218_v3 }
 0x1be   :  { %v1103_v33 = vpop.f32.mrf.mxu1 }
 0x1bf   :  { %v1298_v49 = vpop.f32.mrf.mxu3  ;;  %v1104_v27 = vadd.f32 %v1103_v33, %v1000_v46  ;;  %v7122_v33 = vld [vmem:[#allocation22_spill] sm:$0xff] }
 0x1c0   :  { %v5569_v51 = vadd.f32 %v1298_v49, %v1195_v47 }
 0x1c1   :  { %1463 = vmatmul.bf16.gmra.mxu1 %v5132_v11  ;;  %1557 = vmatmul.bf16.gmra.mxu2 %v5134_v12 }
 0x1c2   :  { %7116 = vst [vmem:[#allocation79_spill] sm:$0xff] %v5569_v51  ;;  %v5583_v12 = vpop.f32.mrf.mxu0 }
 0x1c4   :  { %1661 = vmatmul.bf16.gmra.mxu3 %v5136_v13  ;;  %v1197_v8 = vpop.f32.mrf.mxu2 }
 0x1c5   :  { %v1198_v7 = vadd.f32 %v1197_v8, %v1094_v21  ;;  %v7121_v21 = vld [vmem:[#allocation21_spill] sm:$0xff]  ;;  %v7123_v8 = vld [vmem:[#allocation23_spill] sm:$0xff] }
 0x1c6   :  { %v1105_v22 = vpop.f32.mrf.mxu1 }
 0x1c7   :  { %v1301_v44 = vpop.f32.mrf.mxu3  ;;  %v1106_v11 = vadd.f32 %v1105_v22, %v1002_v17 }
 0x1c8   :  { %v5581_v55 = vadd.f32 %v1301_v44, %v1198_v7  ;;  %v7124_v7 = vld [vmem:[#allocation31_spill] sm:$0xff] }
 0x1c9   :  { %v1007_v44 = vadd.f32 %v7124_v7, %v5218_v3 }
 0x1ca   :  { %7117 = vst [vmem:[#allocation80_spill] sm:$0xff] %v5581_v55  ;;  %v5592_v15 = vpop.f32.mrf.mxu0 }
 0x1cc   :  { %v1199_v23 = vpop.f32.mrf.mxu2 }
 0x1cd   :  { %v1200_v13 = vadd.f32 %v1199_v23, %v1096_v19 }
 0x1ce   :  { %v1108_v47 = vpop.f32.mrf.mxu1 }
 0x1cf   :  { %v1303_v46 = vpop.f32.mrf.mxu3  ;;  %v1109_v41 = vadd.f32 %v1108_v47, %v1005_v24  ;;  %v7127_v47 = vld [vmem:[#allocation35_spill] sm:$0xff] }
 0x1d0   :  { %v5588_v49 = vadd.f32 %v1303_v46, %v1200_v13  ;;  %v7126_v46 = vld [vmem:[#allocation15_spill] sm:$0xff] }
 0x1d1   :  { %1468 = vmatmul.bf16.gmra.mxu1 %v7121_v21  ;;  %1562 = vmatmul.bf16.gmra.mxu2 %v7122_v33  ;;  %v1010_v21 = vadd.f32 %v7127_v47, %v5218_v3 }
 0x1d2   :  { %7120 = vst [vmem:[#allocation19_spill] sm:$0xff] %v5588_v49  ;;  %v5599_v13 = vpop.f32.mrf.mxu0  ;;  %1414 = vmatmul.bf16.gmra.mxu0 %v7126_v46 }
 0x1d4   :  { %1666 = vmatmul.bf16.gmra.mxu3 %v7123_v8  ;;  %v1202_v17 = vpop.f32.mrf.mxu2 }
 0x1d5   :  { %v1203_v22 = vadd.f32 %v1202_v17, %v1099_v14  ;;  %v7129_v14 = vld [vmem:[#allocation24_spill] sm:$0xff]  ;;  %v7130_v17 = vld [vmem:[#allocation25_spill] sm:$0xff] }
 0x1d6   :  { %v1110_v19 = vpop.f32.mrf.mxu1 }
 0x1d7   :  { %v1306_v42 = vpop.f32.mrf.mxu3  ;;  %v1111_v4 = vadd.f32 %v1110_v19, %v1007_v44  ;;  %v7131_v44 = vld [vmem:[#allocation26_spill] sm:$0xff]  ;;  %v7132_v19 = vld [vmem:[#allocation36_spill] sm:$0xff] }
 0x1d8   :  { %v5597_v23 = vadd.f32 %v1306_v42, %v1203_v22  ;;  %v1012_v46 = vadd.f32 %v7132_v19, %v5218_v3 }
 0x1da   :  { %7125 = vst [vmem:[#allocation30_spill] sm:$0xff] %v5597_v23  ;;  %v5608_v22 = vpop.f32.mrf.mxu0 }
 0x1dc   :  { %v1204_v24 = vpop.f32.mrf.mxu2 }
 0x1dd   :  { %v1205_v33 = vadd.f32 %v1204_v24, %v1101_v59 }
 0x1de   :  { %v1113_v49 = vpop.f32.mrf.mxu1 }
 0x1df   :  { %v1308_v8 = vpop.f32.mrf.mxu3  ;;  %v1114_v7 = vadd.f32 %v1113_v49, %v1010_v21  ;;  %v4619_v49 = vld [vmem:[%s7009_s3 + $0x8] sm:$0xff] }
 0x1e0   :  { %v5604_v55 = vadd.f32 %v1308_v8, %v1205_v33  ;;  %2073 = vmatpush.bf16.msra.mxu0 %v4619_v49 }
 0x1e1   :  { %1473 = vmatmul.bf16.gmra.mxu1 %v7129_v14  ;;  %1567 = vmatmul.bf16.gmra.mxu2 %v7130_v17  ;;  %v7134_v14 = vld [vmem:[#allocation16_spill] sm:$0xff] }
 0x1e2   :  { %7128 = vst [vmem:[#allocation21_spill] sm:$0xff] %v5604_v55  ;;  %v5618_v21 = vpop.f32.mrf.mxu0  ;;  %1419 = vmatmul.bf16.gmra.mxu0 %v7134_v14  ;;  %v7135_v17 = vld [vmem:[#allocation40_spill] sm:$0xff]  ;;  %v7140_v14 = vld [vmem:[#allocation41_spill] sm:$0xff] }
 0x1e3   :  { %v1017_v51 = vadd.f32 %v7140_v14, %v5218_v3 }
 0x1e4   :  { %1671 = vmatmul.bf16.gmra.mxu3 %v7131_v44  ;;  %v1207_v42 = vpop.f32.mrf.mxu2  ;;  %v1015_v44 = vadd.f32 %v7135_v17, %v5218_v3 }
 0x1e5   :  { %v1208_v23 = vadd.f32 %v1207_v42, %v1104_v27 }
 0x1e6   :  { %v1115_v59 = vpop.f32.mrf.mxu1 }
 0x1e7   :  { %v1311_v47 = vpop.f32.mrf.mxu3  ;;  %v1116_v33 = vadd.f32 %v1115_v59, %v1012_v46  ;;  %v7137_v46 = vld [vmem:[#allocation27_spill] sm:$0xff] }
 0x1e8   :  { %v5613_v24 = vadd.f32 %v1311_v47, %v1208_v23  ;;  %v7138_v47 = vld [vmem:[#allocation28_spill] sm:$0xff] }
 0x1ea   :  { %7133 = vst [vmem:[#allocation22_spill] sm:$0xff] %v5613_v24  ;;  %v5627_v59 = vpop.f32.mrf.mxu0  ;;  %v7139_v24 = vld [vmem:[#allocation29_spill] sm:$0xff] }
 0x1ec   :  { %v1209_v8 = vpop.f32.mrf.mxu2 }
 0x1ed   :  { %v1210_v19 = vadd.f32 %v1209_v8, %v1106_v11 }
 0x1ee   :  { %v1118_v42 = vpop.f32.mrf.mxu1 }
 0x1ef   :  { %v1313_v27 = vpop.f32.mrf.mxu3  ;;  %v1119_v23 = vadd.f32 %v1118_v42, %v1015_v44  ;;  %v7142_v42 = vld [vmem:[#allocation17_spill] sm:$0xff] }
 0x1f0   :  { %v5623_v55 = vadd.f32 %v1313_v27, %v1210_v19 }
 0x1f1   :  { %1478 = vmatmul.bf16.gmra.mxu1 %v7137_v46  ;;  %1572 = vmatmul.bf16.gmra.mxu2 %v7138_v47  ;;  %v7143_v46 = vld [vmem:[#allocation45_spill] sm:$0xff] }
 0x1f2   :  { %7136 = vst [vmem:[#allocation23_spill] sm:$0xff] %v5623_v55  ;;  %v5634_v27 = vpop.f32.mrf.mxu0  ;;  %1424 = vmatmul.bf16.gmra.mxu0 %v7142_v42  ;;  %v1020_v47 = vadd.f32 %v7143_v46, %v5218_v3 }
 0x1f4   :  { %1676 = vmatmul.bf16.gmra.mxu3 %v7139_v24  ;;  %v1212_v49 = vpop.f32.mrf.mxu2 }
 0x1f5   :  { %v1213_v5 = vadd.f32 %v1212_v49, %v1109_v41  ;;  %v7145_v41 = vld [vmem:[#allocation32_spill] sm:$0xff]  ;;  %v7146_v49 = vld [vmem:[#allocation33_spill] sm:$0xff] }
 0x1f6   :  { %v1120_v11 = vpop.f32.mrf.mxu1 }
 0x1f7   :  { %v1316_v17 = vpop.f32.mrf.mxu3  ;;  %v1121_v19 = vadd.f32 %v1120_v11, %v1017_v51  ;;  %v7147_v51 = vld [vmem:[#allocation34_spill] sm:$0xff] }
 0x1f8   :  { %v5632_v8 = vadd.f32 %v1316_v17, %v1213_v5  ;;  %v7148_v11 = vld [vmem:[#allocation46_spill] sm:$0xff] }
 0x1f9   :  { %v1022_v42 = vadd.f32 %v7148_v11, %v5218_v3  ;;  %v4618_v3 = vld [vmem:[%s7009_s3] sm:$0xff] }
 0x1fa   :  { %7141 = vst [vmem:[#allocation31_spill] sm:$0xff] %v5632_v8  ;;  %v5643_v5 = vpop.f32.mrf.mxu0  ;;  %2074 = vmatpush.bf16.msra.mxu0 %v4618_v3  ;;  %v7159_v3 = vld [vmem:[#allocation43_spill] sm:$0xff] }
 0x1fc   :  { %v1214_v44 = vpop.f32.mrf.mxu2 }
 0x1fd   :  { %v1215_v55 = vadd.f32 %v1214_v44, %v1111_v4 }
 0x1fe   :  { %v1123_v53 = vpop.f32.mrf.mxu1 }
 0x1ff   :  { %v1318_v24 = vpop.f32.mrf.mxu3  ;;  %v1124_v14 = vadd.f32 %v1123_v53, %v1020_v47  ;;  %v7150_v47 = vld [vmem:[#allocation18_spill] sm:$0xff] }
 0x200   :  { %v5639_v9 = vadd.f32 %v1318_v24, %v1215_v55 }
 0x201   :  { %1483 = vmatmul.bf16.gmra.mxu1 %v7145_v41  ;;  %1577 = vmatmul.bf16.gmra.mxu2 %v7146_v49 }
 0x202   :  { %7144 = vst [vmem:[#allocation15_spill] sm:$0xff] %v5639_v9  ;;  %v5650_v24 = vpop.f32.mrf.mxu0  ;;  %1429 = vmatmul.bf16.gmra.mxu0 %v7150_v47 }
 0x204   :  { %1681 = vmatmul.bf16.gmra.mxu3 %v7147_v51  ;;  %v1217_v17 = vpop.f32.mrf.mxu2  ;;  %v7152_v51 = vld [vmem:[#allocation37_spill] sm:$0xff] }
 0x205   :  { %v1218_v8 = vadd.f32 %v1217_v17, %v1114_v7  ;;  %v7154_v7 = vld [vmem:[#allocation39_spill] sm:$0xff] }
 0x206   :  { %v1125_v4 = vpop.f32.mrf.mxu1 }
 0x207   :  { %v1321_v46 = vpop.f32.mrf.mxu3  ;;  %v1126_v55 = vadd.f32 %v1125_v4, %v1022_v42 }
 0x208   :  { %v5648_v44 = vadd.f32 %v1321_v46, %v1218_v8 }
 0x20a   :  { %7149 = vst [vmem:[#allocation35_spill] sm:$0xff] %v5648_v44  ;;  %v5661_v8 = vpop.f32.mrf.mxu0 }
 0x20c   :  { %v1219_v53 = vpop.f32.mrf.mxu2 }
 0x20d   :  { %v1220_v41 = vadd.f32 %v1219_v53, %v1116_v33  ;;  %v7156_v53 = vld [vmem:[#allocation20_spill] sm:$0xff] }
 0x20e   :  { %v1449_v9 = vpop.f32.mrf.mxu1 }
 0x20f   :  { %v1323_v49 = vpop.f32.mrf.mxu3 }
 0x210   :  { %v5653_v25 = vadd.f32 %v1323_v49, %v1220_v41 }
 0x211   :  { %1488 = vmatmul.bf16.gmra.mxu1 %v7152_v51  ;;  %1582 = vmatmul.bf16.gmra.mxu2 %v7153_v40 }
 0x212   :  { %7151 = vst [vmem:[#allocation24_spill] sm:$0xff] %v5653_v25  ;;  %1434 = vmatmul.bf16.gmra.mxu0 %v7156_v53  ;;  %v5666_v41 = vpop.f32.mrf.mxu0  ;;  %v7160_v25 = vld [vmem:[#allocation44_spill] sm:$0xff] }
 0x214   :  { %1686 = vmatmul.bf16.gmra.mxu3 %v7154_v7  ;;  %v1222_v17 = vpop.f32.mrf.mxu2  ;;  %v7158_v7 = vld [vmem:[#allocation42_spill] sm:$0xff] }
 0x215   :  { %v1223_v11 = vadd.f32 %v1222_v17, %v1119_v23 }
 0x216   :  { %v1451_v42 = vpop.f32.mrf.mxu1 }
 0x217   :  { %v1326_v33 = vpop.f32.mrf.mxu3 }
 0x218   :  { %v5663_v46 = vadd.f32 %v1326_v33, %v1223_v11 }
 0x21a   :  { %7155 = vst [vmem:[#allocation25_spill] sm:$0xff] %v5663_v46  ;;  %v5675_v53 = vpop.f32.mrf.mxu0 }
 0x21b   :  { %7162 = vst [vmem:[#allocation16_spill] sm:$0xff] %v5675_v53 }
 0x21c   :  { %v1224_v4 = vpop.f32.mrf.mxu2 }
 0x21d   :  { %v1225_v47 = vadd.f32 %v1224_v4, %v1121_v19  ;;  %v4928_v4 = vld [vmem:[%s7008_s2] sm:$0x3] }
 0x21e   :  { %v1454_v49 = vpop.f32.mrf.mxu1 }
 0x21f   :  { %v1328_v40 = vpop.f32.mrf.mxu3 }
 0x220   :  { %v5668_v51 = vadd.f32 %v1328_v40, %v1225_v47  ;;  %v5680_v47 = vperm.slane %v4928_v4, 1 }
 0x221   :  { %1493 = vmatmul.bf16.gmra.mxu1 %v7158_v7  ;;  %1587 = vmatmul.bf16.gmra.mxu2 %v7159_v3 }
 0x222   :  { %7157 = vst [vmem:[#allocation26_spill] sm:$0xff] %v5668_v51 }
 0x224   :  { %1691 = vmatmul.bf16.gmra.mxu3 %v7160_v25  ;;  %v1227_v23 = vpop.f32.mrf.mxu2 }
 0x225   :  { %v1228_v17 = vadd.f32 %v1227_v23, %v1124_v14  ;;  %v1346_v14 = vadd.f32 %v5475_v20, %v5680_v47  ;;  %v7164_v23 = vld [vmem:[#allocation47_spill] sm:$0xff] }
 0x226   :  { %v1456_v33 = vpop.f32.mrf.mxu1 }
 0x227   :  { %v1331_v11 = vpop.f32.mrf.mxu3  ;;  %v1450_v51 = vadd.f32 %v1449_v9, %v1346_v14  ;;  %v7169_v9 = vld [vmem:[#allocation50_spill] sm:$0xff] }
 0x228   :  { %v5673_v46 = vadd.f32 %v1331_v11, %v1228_v17  ;;  %v7165_v17 = vld [vmem:[#allocation48_spill] sm:$0xff]  ;;  %v5690_v11 = vpop.f32.mrf.mxu0 }
 0x229   :  { %7166 = vst [vmem:[#allocation27_spill] sm:$0xff] %v5690_v11 }
 0x22a   :  { %7161 = vst [vmem:[#allocation36_spill] sm:$0xff] %v5673_v46  ;;  %v7167_v46 = vld [vmem:[#allocation49_spill] sm:$0xff] }
 0x22c   :  { %v1229_v19 = vpop.f32.mrf.mxu2 }
 0x22d   :  { %v1230_v40 = vadd.f32 %v1229_v19, %v1126_v55 }
 0x22e   :  { %v5682_v3 = vpop.f32.mrf.mxu1 }
 0x22f   :  { %v1333_v7 = vpop.f32.mrf.mxu3 }
 0x230   :  { %v5684_v25 = vadd.f32 %v1333_v7, %v1230_v40  ;;  %v1348_v40 = vadd.f32 %v5492_v50, %v5680_v47  ;;  %v7170_v50 = vld [vmem:[#allocation51_spill] sm:$0xff] }
 0x231   :  { %1498 = vmatmul.bf16.gmra.mxu1 %v7164_v23  ;;  %1592 = vmatmul.bf16.gmra.mxu2 %v7165_v17  ;;  %v5697_v23 = vpop.f32.mrf.mxu0 }
 0x232   :  { %7163 = vst [vmem:[#allocation40_spill] sm:$0xff] %v5684_v25  ;;  %v1452_v20 = vadd.f32 %v1451_v42, %v1348_v40 }
 0x233   :  { %7168 = vst [vmem:[#allocation28_spill] sm:$0xff] %v5697_v23 }
 0x234   :  { %1696 = vmatmul.bf16.gmra.mxu3 %v7167_v46  ;;  %v1553_v4 = vpop.f32.mrf.mxu2 }
 0x235   :  { %v1554_v44 = vadd.f32 %v1553_v4, %v1450_v51 }
 0x236   :  { %v5693_v19 = vpop.f32.mrf.mxu1 }
 0x237   :  { %v1657_v55 = vpop.f32.mrf.mxu3 }
 0x238   :  { %v1658_v53 = vadd.f32 %v1657_v55, %v1554_v44  ;;  %v1351_v44 = vadd.f32 %v5502_v52, %v5680_v47  ;;  %v7173_v52 = vld [vmem:[#allocation53_spill] sm:$0xff] }
 0x23a   :  { %v1790_v7 = vmul.f32 0.5, %v1658_v53  ;;  %v7171_v53 = vld [vmem:[#allocation52_spill] sm:$0xff]  ;;  %v1455_v4 = vadd.f32 %v1454_v49, %v1351_v44 }
 0x23c   :  { %4696 = vtanh.f32 %v1790_v7  ;;  %v1555_v17 = vpop.f32.mrf.mxu2 }
 0x23d   :  { %v1556_v25 = vadd.f32 %v1555_v17, %v1452_v20  ;;  %4698 = vtanh.f32 %v7169_v9 }
 0x23e   :  { %v5699_v2 = vpop.f32.mrf.mxu1 }
 0x23f   :  { %v1659_v11 = vpop.f32.mrf.mxu3 }
 0x240   :  { %v1660_v46 = vadd.f32 %v1659_v11, %v1556_v25  ;;  %v5707_v25 = vpop.f32.mrf.mxu0 }
 0x241   :  { %1503 = vmatmul.bf16.gmra.mxu1 %v5299_v0  ;;  %1597 = vmatmul.bf16.gmra.mxu2 %v7170_v50  ;;  %7172 = vst [vmem:[#allocation29_spill] sm:$0xff] %v5707_v25 }
 0x242   :  { %v4697_v51 = vpop.eup %4696  ;;  %v1791_v14 = vmul.f32 0.5, %v1660_v46 }
 0x243   :  { %v1866_v42 = vadd.f32 1.0, %v4697_v51  ;;  %v4699_v7 = vpop.eup %4698  ;;  %v1353_v51 = vadd.f32 %v5514_v30, %v5680_v47  ;;  %v1356_v30 = vadd.f32 %v5524_v18, %v5680_v47  ;;  %v7178_v18 = vld [vmem:[#allocation58_spill] sm:$0xff] }
 0x244   :  { %1701 = vmatmul.bf16.gmra.mxu3 %v7171_v53  ;;  %4700 = vtanh.f32 %v1791_v14  ;;  %v1558_v40 = vpop.f32.mrf.mxu2 }
 0x245   :  { %v1904_v55 = vmul.f32 0.5, %v1866_v42  ;;  %v1559_v20 = vadd.f32 %v1558_v40, %v1455_v4  ;;  %4702 = vtanh.f32 %v7173_v52  ;;  %v1457_v44 = vadd.f32 %v1456_v33, %v1353_v51 }
 0x246   :  { %v5709_v9 = vpop.f32.mrf.mxu1 }
 0x247   :  { %v1662_v17 = vpop.f32.mrf.mxu3  ;;  %v1942_v11 = vmul.f32 %v4699_v7, %v1904_v55  ;;  %v7174_v7 = vld [vmem:[#allocation54_spill] sm:$0xff] }
 0x248   :  { %v1663_v0 = vadd.f32 %v1662_v17, %v1559_v20  ;;  %v5717_v20 = vpop.f32.mrf.mxu0 }
 0x24a   :  { %v4701_v46 = vpop.eup %4700  ;;  %v1792_v50 = vmul.f32 0.5, %v1663_v0  ;;  %v7175_v0 = vld [vmem:[#allocation55_spill] sm:$0xff] }
 0x24b   :  { %v1867_v49 = vadd.f32 1.0, %v4701_v46  ;;  %v4703_v53 = vpop.eup %4702  ;;  %v7176_v46 = vld [vmem:[#allocation56_spill] sm:$0xff] }
 0x24c   :  { %4704 = vtanh.f32 %v1792_v50  ;;  %v1560_v42 = vpop.f32.mrf.mxu2  ;;  %v7177_v50 = vld [vmem:[#allocation57_spill] sm:$0xff] }
 0x24d   :  { %v1905_v14 = vmul.f32 0.5, %v1867_v49  ;;  %v1561_v4 = vadd.f32 %v1560_v42, %v1457_v44  ;;  %4706 = vtanh.f32 %v7174_v7  ;;  %v1460_v49 = vadd.f32 %v5682_v3, %v1356_v30 }
 0x24e   :  { %v5714_v55 = vpop.f32.mrf.mxu1 }
 0x24f   :  { %v1664_v40 = vpop.f32.mrf.mxu3  ;;  %v1943_v25 = vmul.f32 %v4703_v53, %v1905_v14 }
 0x250   :  { %v1665_v52 = vadd.f32 %v1664_v40, %v1561_v4 }
 0x251   :  { %v1980_v17 = vpack.c.bf16 %v1943_v25, %v1942_v11  ;;  %1508 = vmatmul.bf16.gmra.mxu1 %v7175_v0  ;;  %1602 = vmatmul.bf16.gmra.mxu2 %v7176_v46 }
 0x252   :  { %v4705_v23 = vpop.eup %4704  ;;  %v1793_v33 = vmul.f32 0.5, %v1665_v52 }
 0x253   :  { %v1868_v51 = vadd.f32 1.0, %v4705_v23  ;;  %2075 = vmatmul.bf16.vlgmr.msra.gmra.mxu0 %v1980_v17  ;;  %v4707_v42 = vpop.eup %4706  ;;  %v1358_v23 = vadd.f32 %v5539_v56, %v5680_v47  ;;  %v5730_v17 = vpop.f32.mrf.mxu0 }
 0x254   :  { %1706 = vmatmul.bf16.gmra.mxu3 %v7177_v50  ;;  %4708 = vtanh.f32 %v1793_v33  ;;  %v1563_v14 = vpop.f32.mrf.mxu2 }
 0x255   :  { %v1906_v44 = vmul.f32 0.5, %v1868_v51  ;;  %v1564_v25 = vadd.f32 %v1563_v14, %v1460_v49  ;;  %4710 = vtanh.f32 %v7178_v18  ;;  %v1462_v30 = vadd.f32 %v5693_v19, %v1358_v23  ;;  %v7179_v14 = vld [vmem:[#allocation59_spill] sm:$0xff] }
 0x256   :  { %v5725_v4 = vpop.f32.mrf.mxu1 }
 0x257   :  { %v1667_v11 = vpop.f32.mrf.mxu3  ;;  %v1944_v53 = vmul.f32 %v4707_v42, %v1906_v44 }
 0x258   :  { %v1668_v40 = vadd.f32 %v1667_v11, %v1564_v25  ;;  %v1361_v11 = vadd.f32 %v5548_v31, %v5680_v47 }
 0x25a   :  { %v4709_v7 = vpop.eup %4708  ;;  %v1794_v52 = vmul.f32 0.5, %v1668_v40  ;;  %v1465_v40 = vadd.f32 %v5699_v2, %v1361_v11 }
 0x25b   :  { %v1869_v3 = vadd.f32 1.0, %v4709_v7  ;;  %v4711_v46 = vpop.eup %4710  ;;  %v5742_v7 = vpop.f32.mrf.mxu0 }
 0x25c   :  { %4712 = vtanh.f32 %v1794_v52  ;;  %v1565_v0 = vpop.f32.mrf.mxu2 }
 0x25d   :  { %v1907_v33 = vmul.f32 0.5, %v1869_v3  ;;  %v1566_v51 = vadd.f32 %v1565_v0, %v1462_v30  ;;  %4714 = vtanh.f32 %v7179_v14 }
 0x25e   :  { %v5733_v49 = vpop.f32.mrf.mxu1 }
 0x25f   :  { %v1669_v50 = vpop.f32.mrf.mxu3  ;;  %v1945_v44 = vmul.f32 %v4711_v46, %v1907_v33 }
 0x260   :  { %v1670_v42 = vadd.f32 %v1669_v50, %v1566_v51 }
 0x261   :  { %v1981_v25 = vpack.c.bf16 %v1945_v44, %v1944_v53  ;;  %1513 = vmatmul.bf16.gmra.mxu1 %v5352_v10  ;;  %1607 = vmatmul.bf16.gmra.mxu2 %v5354_v45  ;;  %v7180_v10 = vld [vmem:[#allocation60_spill] sm:$0xff] }
 0x262   :  { %v4713_v56 = vpop.eup %4712  ;;  %v1795_v18 = vmul.f32 0.5, %v1670_v42 }
 0x263   :  { %v1870_v19 = vadd.f32 1.0, %v4713_v56  ;;  %2080 = vmatmul.bf16.gmra.mxu0 %v1981_v25  ;;  %v4715_v52 = vpop.eup %4714  ;;  %v5750_v56 = vpop.f32.mrf.mxu0 }
 0x264   :  { %1711 = vmatmul.bf16.gmra.mxu3 %v5356_v32  ;;  %4716 = vtanh.f32 %v1795_v18  ;;  %v1568_v53 = vpop.f32.mrf.mxu2  ;;  %v1363_v32 = vadd.f32 %v5557_v61, %v5680_v47 }
 0x265   :  { %v1908_v23 = vmul.f32 0.5, %v1870_v19  ;;  %v1569_v3 = vadd.f32 %v1568_v53, %v1465_v40  ;;  %4718 = vtanh.f32 %v7180_v10  ;;  %v7181_v19 = vld [vmem:[#allocation61_spill] sm:$0xff]  ;;  %v1366_v53 = vadd.f32 %v5564_v57, %v5680_v47  ;;  %v7184_v10 = vld [vmem:[#allocation64_spill] sm:$0xff] }
 0x266   :  { %v5744_v33 = vpop.f32.mrf.mxu1  ;;  %v1467_v51 = vadd.f32 %v5709_v9, %v1363_v32  ;;  %v7185_v57 = vld [vmem:[#allocation65_spill] sm:$0xff] }
 0x267   :  { %v1672_v30 = vpop.f32.mrf.mxu3  ;;  %v1946_v31 = vmul.f32 %v4715_v52, %v1908_v23  ;;  %v7182_v52 = vld [vmem:[#allocation62_spill] sm:$0xff] }
 0x268   :  { %v1673_v45 = vadd.f32 %v1672_v30, %v1569_v3  ;;  %v7183_v3 = vld [vmem:[#allocation63_spill] sm:$0xff] }
 0x26a   :  { %v4717_v0 = vpop.eup %4716  ;;  %v1796_v46 = vmul.f32 0.5, %v1673_v45  ;;  %v1470_v45 = vadd.f32 %v5714_v55, %v1366_v53 }
 0x26b   :  { %v1871_v2 = vadd.f32 1.0, %v4717_v0  ;;  %v4719_v14 = vpop.eup %4718 }
 0x26c   :  { %4720 = vtanh.f32 %v1796_v46  ;;  %v1570_v44 = vpop.f32.mrf.mxu2 }
 0x26d   :  { %v1909_v50 = vmul.f32 0.5, %v1871_v2  ;;  %v1571_v42 = vadd.f32 %v1570_v44, %v1467_v51  ;;  %4722 = vtanh.f32 %v7181_v19 }
 0x26e   :  { %v5752_v11 = vpop.f32.mrf.mxu1 }
 0x26f   :  { %v1674_v25 = vpop.f32.mrf.mxu3  ;;  %v1947_v18 = vmul.f32 %v4719_v14, %v1909_v50  ;;  %v5764_v14 = vpop.f32.mrf.mxu0 }
 0x270   :  { %v1675_v40 = vadd.f32 %v1674_v25, %v1571_v42  ;;  %v1368_v25 = vadd.f32 %v5573_v43, %v5680_v47  ;;  %v1371_v43 = vadd.f32 %v5583_v12, %v5680_v47 }
 0x271   :  { %v1982_v23 = vpack.c.bf16 %v1947_v18, %v1946_v31  ;;  %1518 = vmatmul.bf16.gmra.mxu1 %v7182_v52  ;;  %1612 = vmatmul.bf16.gmra.mxu2 %v7183_v3 }
 0x272   :  { %v4721_v61 = vpop.eup %4720  ;;  %v1797_v9 = vmul.f32 0.5, %v1675_v40  ;;  %v1472_v19 = vadd.f32 %v5725_v4, %v1368_v25 }
 0x273   :  { %v1872_v30 = vadd.f32 1.0, %v4721_v61  ;;  %2085 = vmatmul.bf16.gmra.mxu0 %v1982_v23  ;;  %v4723_v46 = vpop.eup %4722 }
 0x274   :  { %1716 = vmatmul.bf16.gmra.mxu3 %v7184_v10  ;;  %4724 = vtanh.f32 %v1797_v9  ;;  %v1573_v32 = vpop.f32.mrf.mxu2 }
 0x275   :  { %v1910_v0 = vmul.f32 0.5, %v1872_v30  ;;  %v1574_v31 = vadd.f32 %v1573_v32, %v1470_v45  ;;  %4726 = vtanh.f32 %v7185_v57  ;;  %v7186_v30 = vld [vmem:[#allocation66_spill] sm:$0xff] }
 0x276   :  { %v5761_v50 = vpop.f32.mrf.mxu1 }
 0x277   :  { %v1677_v2 = vpop.f32.mrf.mxu3  ;;  %v1948_v51 = vmul.f32 %v4723_v46, %v1910_v0  ;;  %v5776_v4 = vpop.f32.mrf.mxu0 }
 0x278   :  { %v1678_v44 = vadd.f32 %v1677_v2, %v1574_v31  ;;  %v1475_v31 = vadd.f32 %v5733_v49, %v1371_v43 }
 0x27a   :  { %v4725_v42 = vpop.eup %4724  ;;  %v1798_v18 = vmul.f32 0.5, %v1678_v44 }
 0x27b   :  { %v1873_v55 = vadd.f32 1.0, %v4725_v42  ;;  %v4727_v61 = vpop.eup %4726 }
 0x27c   :  { %4728 = vtanh.f32 %v1798_v18  ;;  %v1575_v23 = vpop.f32.mrf.mxu2  ;;  %v1373_v18 = vadd.f32 %v5592_v15, %v5680_v47 }
 0x27d   :  { %v1911_v40 = vmul.f32 0.5, %v1873_v55  ;;  %v1576_v53 = vadd.f32 %v1575_v23, %v1472_v19  ;;  %4730 = vtanh.f32 %v7186_v30 }
 0x27e   :  { %v5769_v52 = vpop.f32.mrf.mxu1  ;;  %v1477_v49 = vadd.f32 %v5744_v33, %v1373_v18 }
 0x27f   :  { %v1679_v9 = vpop.f32.mrf.mxu3  ;;  %v1949_v3 = vmul.f32 %v4727_v61, %v1911_v40  ;;  %v5786_v19 = vpop.f32.mrf.mxu0 }
 0x280   :  { %v1680_v10 = vadd.f32 %v1679_v9, %v1576_v53 }
 0x281   :  { %v1983_v45 = vpack.c.bf16 %v1949_v3, %v1948_v51  ;;  %1523 = vmatmul.bf16.gmra.mxu1 %v5403_v29  ;;  %1617 = vmatmul.bf16.gmra.mxu2 %v5405_v26 }
 0x282   :  { %v4729_v0 = vpop.eup %4728  ;;  %v1799_v32 = vmul.f32 0.5, %v1680_v10 }
 0x283   :  { %v1874_v46 = vadd.f32 1.0, %v4729_v0  ;;  %2090 = vmatmul.bf16.gmra.mxu0 %v1983_v45  ;;  %v4731_v57 = vpop.eup %4730  ;;  %v1376_v45 = vadd.f32 %v5599_v13, %v5680_v47 }
 0x284   :  { %1721 = vmatmul.bf16.gmra.mxu3 %v5407_v35  ;;  %4732 = vtanh.f32 %v1799_v32  ;;  %v1578_v51 = vpop.f32.mrf.mxu2 }
 0x285   :  { %v1912_v2 = vmul.f32 0.5, %v1874_v46  ;;  %v1579_v44 = vadd.f32 %v1578_v51, %v1475_v31  ;;  %4734 = vtanh.f32 %v5409_v63  ;;  %v1480_v43 = vadd.f32 %v5752_v11, %v1376_v45 }
 0x286   :  { %v5780_v25 = vpop.f32.mrf.mxu1 }
 0x287   :  { %v1682_v42 = vpop.f32.mrf.mxu3  ;;  %v1950_v12 = vmul.f32 %v4731_v57, %v1912_v2  ;;  %v5797_v51 = vpop.f32.mrf.mxu0 }
 0x288   :  { %v1683_v29 = vadd.f32 %v1682_v42, %v1579_v44 }
 0x28a   :  { %v4733_v26 = vpop.eup %4732  ;;  %v1800_v35 = vmul.f32 0.5, %v1683_v29 }
 0x28b   :  { %v1875_v55 = vadd.f32 1.0, %v4733_v26  ;;  %v4735_v61 = vpop.eup %4734 }
 0x28c   :  { %4736 = vtanh.f32 %v1800_v35  ;;  %v1580_v23 = vpop.f32.mrf.mxu2 }
 0x28d   :  { %v1913_v40 = vmul.f32 0.5, %v1875_v55  ;;  %v1581_v53 = vadd.f32 %v1580_v23, %v1477_v49  ;;  %4738 = vtanh.f32 %v5423_v37 }
 0x28e   :  { %v5788_v3 = vpop.f32.mrf.mxu1 }
 0x28f   :  { %v1684_v9 = vpop.f32.mrf.mxu3  ;;  %v1951_v63 = vmul.f32 %v4735_v61, %v1913_v40  ;;  %v7187_v40 = vld [vmem:[#allocation67_spill] sm:$0xff]  ;;  %v5808_v23 = vpop.f32.mrf.mxu0 }
 0x290   :  { %v1685_v30 = vadd.f32 %v1684_v9, %v1581_v53  ;;  %v1381_v53 = vadd.f32 %v5618_v21, %v5680_v47 }
 0x291   :  { %v1984_v10 = vpack.c.bf16 %v1951_v63, %v1950_v12  ;;  %1528 = vmatmul.bf16.gmra.mxu1 %v5431_v1  ;;  %1622 = vmatmul.bf16.gmra.mxu2 %v5433_v39 }
 0x292   :  { %v4737_v15 = vpop.eup %4736  ;;  %v1801_v33 = vmul.f32 0.5, %v1685_v30  ;;  %v1485_v63 = vadd.f32 %v5769_v52, %v1381_v53 }
 0x293   :  { %v1876_v0 = vadd.f32 1.0, %v4737_v15  ;;  %2095 = vmatmul.bf16.gmra.mxu0 %v1984_v10  ;;  %v4739_v46 = vpop.eup %4738 }
 0x294   :  { %1726 = vmatmul.bf16.gmra.mxu3 %v5435_v48  ;;  %4740 = vtanh.f32 %v1801_v33  ;;  %v1583_v37 = vpop.f32.mrf.mxu2  ;;  %v1378_v48 = vadd.f32 %v5608_v22, %v5680_v47 }
 0x295   :  { %v1914_v32 = vmul.f32 0.5, %v1876_v0  ;;  %v1584_v31 = vadd.f32 %v1583_v37, %v1480_v43  ;;  %4742 = vtanh.f32 %v5437_v34 }
 0x296   :  { %v5799_v57 = vpop.f32.mrf.mxu1  ;;  %v1482_v42 = vadd.f32 %v5761_v50, %v1378_v48  ;;  %v7188_v48 = vld [vmem:[#allocation68_spill] sm:$0xff] }
 0x297   :  { %v1687_v2 = vpop.f32.mrf.mxu3  ;;  %v1952_v13 = vmul.f32 %v4739_v46, %v1914_v32  ;;  %v5821_v32 = vpop.f32.mrf.mxu0 }
 0x298   :  { %v1688_v1 = vadd.f32 %v1687_v2, %v1584_v31 }
 0x29a   :  { %v4741_v39 = vpop.eup %4740  ;;  %v1802_v44 = vmul.f32 0.5, %v1688_v1 }
 0x29b   :  { %v1877_v11 = vadd.f32 1.0, %v4741_v39  ;;  %v4743_v26 = vpop.eup %4742 }
 0x29c   :  { %4744 = vtanh.f32 %v1802_v44  ;;  %v1585_v29 = vpop.f32.mrf.mxu2 }
 0x29d   :  { %v1915_v12 = vmul.f32 0.5, %v1877_v11  ;;  %v1586_v18 = vadd.f32 %v1585_v29, %v1482_v42  ;;  %4746 = vtanh.f32 %v7187_v40  ;;  %v1386_v42 = vadd.f32 %v5634_v27, %v5680_v47 }
 0x29e   :  { %v5805_v55 = vpop.f32.mrf.mxu1 }
 0x29f   :  { %v1689_v35 = vpop.f32.mrf.mxu3  ;;  %v1953_v49 = vmul.f32 %v4743_v26, %v1915_v12  ;;  %v1490_v29 = vadd.f32 %v5788_v3, %v1386_v42  ;;  %v5833_v26 = vpop.f32.mrf.mxu0 }
 0x2a0   :  { %v1690_v34 = vadd.f32 %v1689_v35, %v1586_v18 }
 0x2a1   :  { %v1985_v61 = vpack.c.bf16 %v1953_v49, %v1952_v13  ;;  %1533 = vmatmul.bf16.gmra.mxu1 %v5455_v36  ;;  %1627 = vmatmul.bf16.gmra.mxu2 %v5457_v58  ;;  %v1383_v58 = vadd.f32 %v5627_v59, %v5680_v47 }
 0x2a2   :  { %v4745_v22 = vpop.eup %4744  ;;  %v1803_v50 = vmul.f32 0.5, %v1690_v34 }
 0x2a3   :  { %v1878_v9 = vadd.f32 1.0, %v4745_v22  ;;  %2100 = vmatmul.bf16.gmra.mxu0 %v1985_v61  ;;  %v4747_v15 = vpop.eup %4746  ;;  %v1487_v37 = vadd.f32 %v5780_v25, %v1383_v58 }
 0x2a4   :  { %1731 = vmatmul.bf16.gmra.mxu3 %v5459_v16  ;;  %4748 = vtanh.f32 %v1803_v50  ;;  %v1588_v10 = vpop.f32.mrf.mxu2 }
 0x2a5   :  { %v1916_v30 = vmul.f32 0.5, %v1878_v9  ;;  %v1589_v45 = vadd.f32 %v1588_v10, %v1485_v63  ;;  %4750 = vtanh.f32 %v5461_v6 }
 0x2a6   :  { %v5816_v43 = vpop.f32.mrf.mxu1 }
 0x2a7   :  { %v1692_v33 = vpop.f32.mrf.mxu3  ;;  %v1954_v0 = vmul.f32 %v4747_v15, %v1916_v30  ;;  %v5841_v30 = vpop.f32.mrf.mxu0 }
 0x2a8   :  { %v1693_v36 = vadd.f32 %v1692_v33, %v1589_v45  ;;  %v7189_v45 = vld [vmem:[#allocation69_spill] sm:$0xff] }
 0x2aa   :  { %v4749_v21 = vpop.eup %4748  ;;  %v1804_v16 = vmul.f32 0.5, %v1693_v36 }
 0x2ab   :  { %v1879_v52 = vadd.f32 1.0, %v4749_v21  ;;  %v4751_v2 = vpop.eup %4750 }
 0x2ac   :  { %4752 = vtanh.f32 %v1804_v16  ;;  %v1590_v31 = vpop.f32.mrf.mxu2  ;;  %v7190_v16 = vld [vmem:[#allocation70_spill] sm:$0xff] }
 0x2ad   :  { %v1917_v46 = vmul.f32 0.5, %v1879_v52  ;;  %v1591_v13 = vadd.f32 %v1590_v31, %v1487_v37  ;;  %4754 = vtanh.f32 %v7188_v48 }
 0x2ae   :  { %v5824_v39 = vpop.f32.mrf.mxu1 }
 0x2af   :  { %v1694_v1 = vpop.f32.mrf.mxu3  ;;  %v1955_v6 = vmul.f32 %v4751_v2, %v1917_v46 }
 0x2b0   :  { %v1695_v44 = vadd.f32 %v1694_v1, %v1591_v13 }
 0x2b1   :  { %v1986_v11 = vpack.c.bf16 %v1955_v6, %v1954_v0  ;;  %1538 = vmatmul.bf16.gmra.mxu1 %v5484_v28  ;;  %1632 = vmatmul.bf16.gmra.mxu2 %v5486_v60  ;;  %v7191_v6 = vld [vmem:[#allocation71_spill] sm:$0xff] }
 0x2b2   :  { %v4753_v59 = vpop.eup %4752  ;;  %v1805_v12 = vmul.f32 0.5, %v1695_v44  ;;  %v1393_v44 = vadd.f32 %v5661_v8, %v5680_v47 }
 0x2b3   :  { %v1880_v25 = vadd.f32 1.0, %v4753_v59  ;;  %2105 = vmatmul.bf16.gmra.mxu0 %v1986_v11  ;;  %v4755_v49 = vpop.eup %4754 }
 0x2b4   :  { %1736 = vmatmul.bf16.gmra.mxu3 %v5488_v38  ;;  %4756 = vtanh.f32 %v1805_v12  ;;  %v1593_v35 = vpop.f32.mrf.mxu2  ;;  %v1388_v38 = vadd.f32 %v5643_v5, %v5680_v47  ;;  %v1391_v5 = vadd.f32 %v5650_v24, %v5680_v47  ;;  %v5852_v24 = vpop.f32.mrf.mxu0 }
 0x2b5   :  { %v1918_v18 = vmul.f32 0.5, %v1880_v25  ;;  %v1594_v40 = vadd.f32 %v1593_v35, %v1490_v29  ;;  %4758 = vtanh.f32 %v5490_v62 }
 0x2b6   :  { %v5836_v61 = vpop.f32.mrf.mxu1  ;;  %v1492_v53 = vadd.f32 %v5799_v57, %v1388_v38  ;;  %v1495_v52 = vadd.f32 %v5805_v55, %v1391_v5  ;;  %v1497_v55 = vadd.f32 %v5816_v43, %v1393_v44  ;;  %v7193_v38 = vld [vmem:[#allocation73_spill] sm:$0xff]  ;;  %v7196_v5 = vld [vmem:[#allocation16_spill] sm:$0xff] }
 0x2b7   :  { %v1697_v34 = vpop.f32.mrf.mxu3  ;;  %v1956_v27 = vmul.f32 %v4755_v49, %v1918_v18 }
 0x2b8   :  { %v1698_v28 = vadd.f32 %v1697_v34, %v1594_v40  ;;  %v7192_v40 = vld [vmem:[#allocation72_spill] sm:$0xff] }
 0x2ba   :  { %v4757_v60 = vpop.eup %4756  ;;  %v1806_v22 = vmul.f32 0.5, %v1698_v28 }
 0x2bb   :  { %v1881_v3 = vadd.f32 1.0, %v4757_v60  ;;  %v4759_v63 = vpop.eup %4758  ;;  %v1396_v60 = vadd.f32 %v5666_v41, %v5680_v47 }
 0x2bc   :  { %4760 = vtanh.f32 %v1806_v22  ;;  %v1595_v9 = vpop.f32.mrf.mxu2 }
 0x2bd   :  { %v1919_v50 = vmul.f32 0.5, %v1881_v3  ;;  %v1596_v10 = vadd.f32 %v1595_v9, %v1492_v53  ;;  %4762 = vtanh.f32 %v7189_v45  ;;  %v7194_v3 = vld [vmem:[#allocation74_spill] sm:$0xff]  ;;  %v1500_v53 = vadd.f32 %v5824_v39, %v1396_v60 }
 0x2be   :  { %v5847_v58 = vpop.f32.mrf.mxu1 }
 0x2bf   :  { %v1699_v15 = vpop.f32.mrf.mxu3  ;;  %v1957_v62 = vmul.f32 %v4759_v63, %v1919_v50 }
 0x2c0   :  { %v1700_v33 = vadd.f32 %v1699_v15, %v1596_v10 }
 0x2c1   :  { %v1987_v0 = vpack.c.bf16 %v1957_v62, %v1956_v27  ;;  %1637 = vmatmul.bf16.gmra.mxu2 %v5508_v54 }
 0x2c2   :  { %v4761_v36 = vpop.eup %4760  ;;  %v1807_v21 = vmul.f32 0.5, %v1700_v33  ;;  %v7195_v33 = vld [vmem:[#allocation75_spill] sm:$0xff] }
 0x2c3   :  { %v1882_v57 = vadd.f32 1.0, %v4761_v36  ;;  %2110 = vmatmul.bf16.gmra.mxu0 %v1987_v0  ;;  %v4763_v31 = vpop.eup %4762 }
 0x2c4   :  { %1741 = vmatmul.bf16.gmra.mxu3 %v7190_v16  ;;  %4764 = vtanh.f32 %v1807_v21  ;;  %v1598_v46 = vpop.f32.mrf.mxu2  ;;  %v1398_v21 = vadd.f32 %v7196_v5, %v5680_v47  ;;  %v7201_v5 = vld [vmem:[#allocation78_spill] sm:$0xff] }
 0x2c5   :  { %v1920_v37 = vmul.f32 0.5, %v1882_v57  ;;  %v1599_v2 = vadd.f32 %v1598_v46, %v1495_v52  ;;  %4766 = vtanh.f32 %v7191_v6 }
 0x2c6   :  { %v5857_v12 = vpop.f32.mrf.mxu1  ;;  %v1502_v16 = vadd.f32 %v5836_v61, %v1398_v21 }
 0x2c7   :  { %v1702_v13 = vpop.f32.mrf.mxu3  ;;  %v1958_v1 = vmul.f32 %v4763_v31, %v1920_v37 }
 0x2c8   :  { %v1703_v54 = vadd.f32 %v1702_v13, %v1599_v2 }
 0x2ca   :  { %v4765_v48 = vpop.eup %4764  ;;  %v1808_v11 = vmul.f32 0.5, %v1703_v54 }
 0x2cb   :  { %v1883_v59 = vadd.f32 1.0, %v4765_v48  ;;  %v4767_v29 = vpop.eup %4766 }
 0x2cc   :  { %4768 = vtanh.f32 %v1808_v11  ;;  %v1600_v25 = vpop.f32.mrf.mxu2 }
 0x2cd   :  { %v1921_v42 = vmul.f32 0.5, %v1883_v59  ;;  %v1601_v18 = vadd.f32 %v1600_v25, %v1497_v55  ;;  %4770 = vtanh.f32 %v7192_v40  ;;  %v7198_v59 = vld [vmem:[#allocation27_spill] sm:$0xff] }
 0x2ce   :  { %v5867_v45 = vpop.f32.mrf.mxu1  ;;  %v1401_v55 = vadd.f32 %v7198_v59, %v5680_v47 }
 0x2cf   :  { %v1704_v35 = vpop.f32.mrf.mxu3  ;;  %v1959_v49 = vmul.f32 %v4767_v29, %v1921_v42 }
 0x2d0   :  { %v1705_v34 = vadd.f32 %v1704_v35, %v1601_v18  ;;  %v5860_v27 = vpop.f32.mrf.mxu0  ;;  %v1505_v25 = vadd.f32 %v5847_v58, %v1401_v55 }
 0x2d1   :  { %v1988_v28 = vpack.c.bf16 %v1959_v49, %v1958_v1  ;;  %1642 = vmatmul.bf16.gmra.mxu2 %v7193_v38  ;;  %v7197_v1 = vld [vmem:[#allocation76_spill] sm:$0xff] }
 0x2d2   :  { %v4769_v8 = vpop.eup %4768  ;;  %v1809_v43 = vmul.f32 0.5, %v1705_v34  ;;  %v7200_v38 = vld [vmem:[#allocation28_spill] sm:$0xff] }
 0x2d3   :  { %v1884_v22 = vadd.f32 1.0, %v4769_v8  ;;  %2115 = vmatmul.bf16.gmra.mxu0 %v1988_v28  ;;  %v4771_v63 = vpop.eup %4770  ;;  %v7199_v28 = vld [vmem:[#allocation77_spill] sm:$0xff] }
 0x2d4   :  { %1746 = vmatmul.bf16.gmra.mxu3 %v7194_v3  ;;  %4772 = vtanh.f32 %v1809_v43  ;;  %v1603_v9 = vpop.f32.mrf.mxu2 }
 0x2d5   :  { %v1922_v50 = vmul.f32 0.5, %v1884_v22  ;;  %v1604_v10 = vadd.f32 %v1603_v9, %v1500_v53  ;;  %4774 = vtanh.f32 %v7195_v33  ;;  %v1403_v22 = vadd.f32 %v7200_v38, %v5680_v47  ;;  %v5888_v53 = vld [vmem:[#allocation5] ss:$0 sm:$0xff] }
 0x2d6   :  { %v5878_v48 = vpop.f32.mrf.mxu1 }
 0x2d7   :  { %v1707_v15 = vpop.f32.mrf.mxu3  ;;  %v1960_v62 = vmul.f32 %v4771_v63, %v1922_v50  ;;  %v1507_v9 = vadd.f32 %v5857_v12, %v1403_v22 }
 0x2d8   :  { %v1708_v41 = vadd.f32 %v1707_v15, %v1604_v10  ;;  %v5870_v0 = vpop.f32.mrf.mxu0 }
 0x2da   :  { %v4773_v36 = vpop.eup %4772  ;;  %v1810_v57 = vmul.f32 0.5, %v1708_v41  ;;  %v5895_v41 = vadd.f32 %v5888_v53, %v5860_v27 }
 0x2db   :  { %v1885_v39 = vadd.f32 1.0, %v4773_v36  ;;  %v4775_v46 = vpop.eup %4774 }
 0x2dc   :  { %4776 = vtanh.f32 %v1810_v57  ;;  %v1605_v37 = vpop.f32.mrf.mxu2 }
 0x2dd   :  { %v1923_v52 = vmul.f32 0.5, %v1885_v39  ;;  %v1606_v31 = vadd.f32 %v1605_v37, %v1502_v16  ;;  %4778 = vtanh.f32 %v7197_v1 }
 0x2de   :  { %v5890_v50 = vpop.f32.mrf.mxu1 }
 0x2df   :  { %v1709_v2 = vpop.f32.mrf.mxu3  ;;  %v1961_v13 = vmul.f32 %v4775_v46, %v1923_v52  ;;  %v7202_v52 = vld [vmem:[#allocation29_spill] sm:$0xff] }
 0x2e0   :  { %v1710_v6 = vadd.f32 %v1709_v2, %v1606_v31  ;;  %v5876_v54 = vpop.f32.mrf.mxu0  ;;  %v1406_v37 = vadd.f32 %v7202_v52, %v5680_v47  ;;  %v5905_v31 = vsel %vm2326_vm0, %v5895_v41, -inf }
 0x2e1   :  { %v1989_v44 = vpack.c.bf16 %v1961_v13, %v1960_v62 }
 0x2e2   :  { %v4777_v11 = vpop.eup %4776  ;;  %v1811_v61 = vmul.f32 0.5, %v1710_v6  ;;  %v1510_v13 = vadd.f32 %v5867_v45, %v1406_v37 }
 0x2e3   :  { %v1886_v42 = vadd.f32 1.0, %v4777_v11  ;;  %2120 = vmatmul.bf16.gmra.mxu0 %v1989_v44  ;;  %v4779_v35 = vpop.eup %4778 }
 0x2e4   :  { %4780 = vtanh.f32 %v1811_v61  ;;  %v1608_v18 = vpop.f32.mrf.mxu2 }
 0x2e5   :  { %v1924_v29 = vmul.f32 0.5, %v1886_v42  ;;  %v1609_v49 = vadd.f32 %v1608_v18, %v1505_v25  ;;  %4782 = vtanh.f32 %v7199_v28  ;;  %v5916_v42 = vadd.f32 %v5888_v53, %v5870_v0 }
 0x2e6   :  { %v1516_v44 = vpop.f32.mrf.mxu1 }
 0x2e7   :  { %v1712_v40 = vpop.f32.mrf.mxu3  ;;  %v1962_v34 = vmul.f32 %v4779_v35, %v1924_v29  ;;  %v7203_v29 = vld [vmem:[#allocation79_spill] sm:$0xff]  ;;  %v5926_v28 = vsel %vm2326_vm0, %v5916_v42, -inf }
 0x2e8   :  { %v1713_v8 = vadd.f32 %v1712_v40, %v1609_v49  ;;  %v5884_v60 = vpop.f32.mrf.mxu0  ;;  %v1408_v40 = vadd.f32 %v5717_v20, %v5680_v47 }
 0x2ea   :  { %v4781_v43 = vpop.eup %4780  ;;  %v1812_v3 = vmul.f32 0.5, %v1713_v8 }
 0x2eb   :  { %v1887_v58 = vadd.f32 1.0, %v4781_v43  ;;  %v4783_v15 = vpop.eup %4782  ;;  %v1512_v43 = vadd.f32 %v5878_v48, %v1408_v40 }
 0x2ec   :  { %4784 = vtanh.f32 %v1812_v3  ;;  %v1610_v10 = vpop.f32.mrf.mxu2 }
 0x2ed   :  { %v1925_v63 = vmul.f32 0.5, %v1887_v58  ;;  %v1611_v62 = vadd.f32 %v1610_v10, %v1507_v9  ;;  %4786 = vtanh.f32 %v7201_v5 }
 0x2ef   :  { %v1714_v33 = vpop.f32.mrf.mxu3  ;;  %v1963_v36 = vmul.f32 %v4783_v15, %v1925_v63  ;;  %v5937_v63 = vadd.f32 %v5888_v53, %v5876_v54  ;;  %v1519_v15 = vpop.f32.mrf.mxu1 }
 0x2f0   :  { %v1715_v21 = vadd.f32 %v1714_v33, %v1611_v62  ;;  %v2086_v57 = vpop.f32.mrf.mxu0  ;;  %v7204_v62 = vld [vmem:[#allocation80_spill] sm:$0xff] }
 0x2f1   :  { %v5899_v39 = vadd.f32 %v5888_v53, %v2086_v57  ;;  %v1990_v12 = vpack.c.bf16 %v1963_v36, %v1962_v34  ;;  %v1411_v57 = vadd.f32 %v5730_v17, %v5680_v47 }
 0x2f2   :  { %v4785_v16 = vpop.eup %4784  ;;  %v1813_v46 = vmul.f32 0.5, %v1715_v21 }
 0x2f3   :  { %v1888_v27 = vadd.f32 1.0, %v4785_v16  ;;  %v5909_v2 = vsel %vm2326_vm0, %v5899_v39, -inf  ;;  %2125 = vmatmul.bf16.gmra.mxu0 %v1990_v12  ;;  %v4787_v59 = vpop.eup %4786  ;;  %v5947_v16 = vsel %vm2326_vm0, %v5937_v63, -inf  ;;  %v1515_v37 = vadd.f32 %v5890_v50, %v1411_v57 }
 0x2f4   :  { %4788 = vtanh.f32 %v1813_v46  ;;  %v2332_v1 = vmax.f32 %v5905_v31, %v5909_v2  ;;  %v1613_v11 = vpop.f32.mrf.mxu2 }
 0x2f5   :  { %v1926_v6 = vmul.f32 0.5, %v1888_v27  ;;  %v1614_v55 = vadd.f32 %v1613_v11, %v1510_v13  ;;  %4790 = vtanh.f32 %v7203_v29 }
 0x2f7   :  { %v1717_v61 = vpop.f32.mrf.mxu3  ;;  %v1964_v25 = vmul.f32 %v4787_v59, %v1926_v6  ;;  %v5958_v59 = vadd.f32 %v5888_v53, %v5884_v60 }
 0x2f8   :  { %v1718_v18 = vadd.f32 %v1717_v61, %v1614_v55  ;;  %v2088_v35 = vpop.f32.mrf.mxu0  ;;  %v7205_v61 = vld [vmem:[#allocation19_spill] sm:$0xff] }
 0x2f9   :  { %v5920_v45 = vadd.f32 %v5888_v53, %v2088_v35 }
 0x2fa   :  { %v4789_v49 = vpop.eup %4788  ;;  %v1814_v34 = vmul.f32 0.5, %v1718_v18  ;;  %v1521_v18 = vpop.f32.mrf.mxu1 }
 0x2fb   :  { %v1889_v8 = vadd.f32 1.0, %v4789_v49  ;;  %v5930_v0 = vsel %vm2326_vm0, %v5920_v45, -inf  ;;  %v4791_v58 = vpop.eup %4790  ;;  %v1413_v49 = vadd.f32 %v5742_v7, %v5680_v47 }
 0x2fc   :  { %4792 = vtanh.f32 %v1814_v34  ;;  %v2334_v38 = vmax.f32 %v5926_v28, %v5930_v0  ;;  %v1615_v3 = vpop.f32.mrf.mxu2  ;;  %v5968_v34 = vsel %vm2326_vm0, %v5958_v59, -inf }
 0x2fd   :  { %v1927_v22 = vmul.f32 0.5, %v1889_v8  ;;  %v1616_v20 = vadd.f32 %v1615_v3, %v1512_v43  ;;  %4794 = vtanh.f32 %v7204_v62  ;;  %v1517_v43 = vadd.f32 %v1516_v44, %v1413_v49  ;;  %v7206_v62 = vld [vmem:[#allocation30_spill] sm:$0xff] }
 0x2fe   :  { %v1416_v44 = vadd.f32 %v5750_v56, %v5680_v47  ;;  %v1418_v56 = vadd.f32 %v5764_v14, %v5680_v47  ;;  %v1421_v14 = vadd.f32 %v5776_v4, %v5680_v47  ;;  %v1423_v4 = vadd.f32 %v5786_v19, %v5680_v47 }
 0x2ff   :  { %v1719_v9 = vpop.f32.mrf.mxu3  ;;  %v1965_v10 = vmul.f32 %v4791_v58, %v1927_v22  ;;  %v1426_v19 = vadd.f32 %v5797_v51, %v5680_v47  ;;  %v1428_v51 = vadd.f32 %v5808_v23, %v5680_v47  ;;  %v1431_v23 = vadd.f32 %v5821_v32, %v5680_v47 }
 0x300   :  { %v1720_v33 = vadd.f32 %v1719_v9, %v1616_v20  ;;  %v2091_v36 = vpop.f32.mrf.mxu0  ;;  %v1433_v32 = vadd.f32 %v5833_v26, %v5680_v47  ;;  %v1436_v26 = vadd.f32 %v5841_v30, %v5680_v47  ;;  %v1438_v30 = vadd.f32 %v5852_v24, %v5680_v47 }
 0x301   :  { %v5941_v48 = vadd.f32 %v5888_v53, %v2091_v36  ;;  %v1991_v5 = vpack.c.bf16 %v1965_v10, %v1964_v25 }
 0x302   :  { %v4793_v21 = vpop.eup %4792  ;;  %v1815_v12 = vmul.f32 0.5, %v1720_v33 }
 0x303   :  { %v1890_v54 = vadd.f32 1.0, %v4793_v21  ;;  %v5951_v52 = vsel %vm2326_vm0, %v5941_v48, -inf  ;;  %2130 = vmatmul.bf16.gmra.mxu0 %v1991_v5  ;;  %v4795_v17 = vpop.eup %4794 }
 0x304   :  { %4796 = vtanh.f32 %v1815_v12  ;;  %v2336_v46 = vmax.f32 %v5947_v16, %v5951_v52  ;;  %v1618_v13 = vpop.f32.mrf.mxu2  ;;  %v1524_v12 = vpop.f32.mrf.mxu1 }
 0x305   :  { %v1928_v27 = vmul.f32 0.5, %v1890_v54  ;;  %v1619_v6 = vadd.f32 %v1618_v13, %v1515_v37  ;;  %4798 = vtanh.f32 %v7205_v61  ;;  %v1520_v37 = vadd.f32 %v1519_v15, %v1416_v44 }
 0x307   :  { %v1722_v11 = vpop.f32.mrf.mxu3  ;;  %v1966_v55 = vmul.f32 %v4795_v17, %v1928_v27 }
 0x308   :  { %v1723_v25 = vadd.f32 %v1722_v11, %v1619_v6  ;;  %v2093_v29 = vpop.f32.mrf.mxu0 }
 0x309   :  { %v5962_v50 = vadd.f32 %v5888_v53, %v2093_v29 }
 0x30a   :  { %v4797_v35 = vpop.eup %4796  ;;  %v1816_v40 = vmul.f32 0.5, %v1723_v25  ;;  %v7207_v25 = vld [vmem:[#allocation21_spill] sm:$0xff] }
 0x30b   :  { %v1891_v60 = vadd.f32 1.0, %v4797_v35  ;;  %v5972_v8 = vsel %vm2326_vm0, %v5962_v50, -inf  ;;  %v4799_v20 = vpop.eup %4798 }
 0x30c   :  { %4800 = vtanh.f32 %v1816_v40  ;;  %v2338_v22 = vmax.f32 %v5968_v34, %v5972_v8  ;;  %v1620_v58 = vpop.f32.mrf.mxu2  ;;  %v1526_v15 = vpop.f32.mrf.mxu1 }
 0x30d   :  { %v1929_v3 = vmul.f32 0.5, %v1891_v60  ;;  %v1621_v9 = vadd.f32 %v1620_v58, %v1517_v43  ;;  %4802 = vtanh.f32 %v7206_v62  ;;  %v1522_v60 = vadd.f32 %v1521_v18, %v1418_v56 }
 0x30f   :  { %v1724_v7 = vpop.f32.mrf.mxu3  ;;  %v1967_v10 = vmul.f32 %v4799_v20, %v1929_v3 }
 0x310   :  { %v1725_v33 = vadd.f32 %v1724_v7, %v1621_v9  ;;  %v5977_v36 = vpop.f32.mrf.mxu0 }
 0x311   :  { %v1992_v5 = vpack.c.bf16 %v1967_v10, %v1966_v55  ;;  %v7208_v10 = vld [vmem:[#allocation22_spill] sm:$0xff] }
 0x312   :  { %v4801_v21 = vpop.eup %4800  ;;  %v1817_v57 = vmul.f32 0.5, %v1725_v33 }
 0x313   :  { %v1892_v54 = vadd.f32 1.0, %v4801_v21  ;;  %2135 = vmatmul.bf16.gmra.mxu0 %v1992_v5  ;;  %v4803_v17 = vpop.eup %4802 }
 0x314   :  { %4804 = vtanh.f32 %v1817_v57  ;;  %v1623_v13 = vpop.f32.mrf.mxu2  ;;  %v1525_v57 = vadd.f32 %v1524_v12, %v1421_v14  ;;  %v1527_v12 = vadd.f32 %v1526_v15, %v1423_v4 }
 0x315   :  { %v1930_v27 = vmul.f32 0.5, %v1892_v54  ;;  %v1624_v6 = vadd.f32 %v1623_v13, %v1520_v37  ;;  %4806 = vtanh.f32 %v7207_v25  ;;  %v7209_v25 = vld [vmem:[#allocation23_spill] sm:$0xff] }
 0x317   :  { %v1727_v11 = vpop.f32.mrf.mxu3  ;;  %v1968_v61 = vmul.f32 %v4803_v17, %v1930_v27 }
 0x318   :  { %v1728_v29 = vadd.f32 %v1727_v11, %v1624_v6  ;;  %v5982_v55 = vpop.f32.mrf.mxu0  ;;  %v1529_v6 = vpop.f32.mrf.mxu1 }
 0x31a   :  { %v4805_v35 = vpop.eup %4804  ;;  %v1818_v49 = vmul.f32 0.5, %v1728_v29 }
 0x31b   :  { %v1893_v40 = vadd.f32 1.0, %v4805_v35  ;;  %v4807_v58 = vpop.eup %4806 }
 0x31c   :  { %4808 = vtanh.f32 %v1818_v49  ;;  %v1625_v3 = vpop.f32.mrf.mxu2 }
 0x31d   :  { %v1931_v43 = vmul.f32 0.5, %v1893_v40  ;;  %v1626_v20 = vadd.f32 %v1625_v3, %v1522_v60  ;;  %4810 = vtanh.f32 %v7208_v10 }
 0x31f   :  { %v1729_v9 = vpop.f32.mrf.mxu3  ;;  %v1969_v7 = vmul.f32 %v4807_v58, %v1931_v43 }
 0x320   :  { %v1730_v62 = vadd.f32 %v1729_v9, %v1626_v20  ;;  %v5987_v33 = vpop.f32.mrf.mxu0  ;;  %v7210_v9 = vld [vmem:[#allocation31_spill] sm:$0xff] }
 0x321   :  { %v1993_v5 = vpack.c.bf16 %v1969_v7, %v1968_v61 }
 0x322   :  { %v4809_v21 = vpop.eup %4808  ;;  %v1819_v44 = vmul.f32 0.5, %v1730_v62  ;;  %v1531_v62 = vpop.f32.mrf.mxu1 }
 0x323   :  { %v1894_v18 = vadd.f32 1.0, %v4809_v21  ;;  %2140 = vmatmul.bf16.gmra.mxu0 %v1993_v5  ;;  %v4811_v27 = vpop.eup %4810 }
 0x324   :  { %4812 = vtanh.f32 %v1819_v44  ;;  %v1628_v37 = vpop.f32.mrf.mxu2  ;;  %v1530_v44 = vadd.f32 %v1529_v6, %v1426_v19  ;;  %v1532_v6 = vadd.f32 %v1531_v62, %v1428_v51 }
 0x325   :  { %v1932_v54 = vmul.f32 0.5, %v1894_v18  ;;  %v1629_v13 = vadd.f32 %v1628_v37, %v1525_v57  ;;  %4814 = vtanh.f32 %v7209_v25 }
 0x327   :  { %v1732_v17 = vpop.f32.mrf.mxu3  ;;  %v1970_v11 = vmul.f32 %v4811_v27, %v1932_v54 }
 0x328   :  { %v1733_v29 = vadd.f32 %v1732_v17, %v1629_v13  ;;  %v5992_v61 = vpop.f32.mrf.mxu0  ;;  %v7211_v17 = vld [vmem:[#allocation15_spill] sm:$0xff] }
 0x32a   :  { %v4813_v35 = vpop.eup %4812  ;;  %v1820_v56 = vmul.f32 0.5, %v1733_v29  ;;  %v1534_v4 = vpop.f32.mrf.mxu1 }
 0x32b   :  { %v1895_v49 = vadd.f32 1.0, %v4813_v35  ;;  %v4815_v43 = vpop.eup %4814  ;;  %v1535_v62 = vadd.f32 %v1534_v4, %v1431_v23 }
 0x32c   :  { %4816 = vtanh.f32 %v1820_v56  ;;  %v1630_v60 = vpop.f32.mrf.mxu2 }
 0x32d   :  { %v1933_v40 = vmul.f32 0.5, %v1895_v49  ;;  %v1631_v3 = vadd.f32 %v1630_v60, %v1527_v12  ;;  %4818 = vtanh.f32 %v7210_v9 }
 0x32f   :  { %v1734_v58 = vpop.f32.mrf.mxu3  ;;  %v1971_v20 = vmul.f32 %v4815_v43, %v1933_v40 }
 0x330   :  { %v1735_v7 = vadd.f32 %v1734_v58, %v1631_v3  ;;  %v5997_v10 = vpop.f32.mrf.mxu0  ;;  %v7212_v58 = vld [vmem:[#allocation35_spill] sm:$0xff] }
 0x331   :  { %v1994_v5 = vpack.c.bf16 %v1971_v20, %v1970_v11 }
 0x332   :  { %v4817_v21 = vpop.eup %4816  ;;  %v1821_v14 = vmul.f32 0.5, %v1735_v7 }
 0x333   :  { %v1896_v15 = vadd.f32 1.0, %v4817_v21  ;;  %2145 = vmatmul.bf16.gmra.mxu0 %v1994_v5  ;;  %v4819_v54 = vpop.eup %4818 }
 0x334   :  { %4820 = vtanh.f32 %v1821_v14  ;;  %v1633_v57 = vpop.f32.mrf.mxu2  ;;  %v1536_v14 = vpop.f32.mrf.mxu1 }
 0x335   :  { %v1934_v18 = vmul.f32 0.5, %v1896_v15  ;;  %v1634_v37 = vadd.f32 %v1633_v57, %v1530_v44  ;;  %4822 = vtanh.f32 %v7211_v17 }
 0x337   :  { %v1737_v27 = vpop.f32.mrf.mxu3  ;;  %v1972_v13 = vmul.f32 %v4819_v54, %v1934_v18 }
 0x338   :  { %v1738_v25 = vadd.f32 %v1737_v27, %v1634_v37  ;;  %v6002_v29 = vpop.f32.mrf.mxu0  ;;  %v7213_v27 = vld [vmem:[#allocation24_spill] sm:$0xff] }
 0x33a   :  { %v4821_v11 = vpop.eup %4820  ;;  %v1822_v35 = vmul.f32 0.5, %v1738_v25 }
 0x33b   :  { %v1897_v56 = vadd.f32 1.0, %v4821_v11  ;;  %v4823_v40 = vpop.eup %4822 }
 0x33c   :  { %4824 = vtanh.f32 %v1822_v35  ;;  %v1635_v12 = vpop.f32.mrf.mxu2  ;;  %v1537_v35 = vadd.f32 %v1536_v14, %v1433_v32 }
 0x33d   :  { %v1935_v49 = vmul.f32 0.5, %v1897_v56  ;;  %v1636_v60 = vadd.f32 %v1635_v12, %v1532_v6  ;;  %4826 = vtanh.f32 %v7212_v58 }
 0x33f   :  { %v1739_v43 = vpop.f32.mrf.mxu3  ;;  %v1973_v3 = vmul.f32 %v4823_v40, %v1935_v49  ;;  %v1539_v40 = vpop.f32.mrf.mxu1 }
 0x340   :  { %v1740_v20 = vadd.f32 %v1739_v43, %v1636_v60  ;;  %v6007_v9 = vpop.f32.mrf.mxu0  ;;  %v7214_v43 = vld [vmem:[#allocation25_spill] sm:$0xff] }
 0x341   :  { %v1995_v7 = vpack.c.bf16 %v1973_v3, %v1972_v13 }
 0x342   :  { %v4825_v5 = vpop.eup %4824  ;;  %v1823_v21 = vmul.f32 0.5, %v1740_v20 }
 0x343   :  { %v1898_v19 = vadd.f32 1.0, %v4825_v5  ;;  %2150 = vmatmul.bf16.gmra.mxu0 %v1995_v7  ;;  %v4827_v18 = vpop.eup %4826 }
 0x344   :  { %4828 = vtanh.f32 %v1823_v21  ;;  %v1638_v44 = vpop.f32.mrf.mxu2  ;;  %v1540_v21 = vadd.f32 %v1539_v40, %v1436_v26 }
 0x345   :  { %v1936_v15 = vmul.f32 0.5, %v1898_v19  ;;  %v1639_v57 = vadd.f32 %v1638_v44, %v1535_v62  ;;  %4830 = vtanh.f32 %v7213_v27 }
 0x347   :  { %v1742_v54 = vpop.f32.mrf.mxu3  ;;  %v1974_v37 = vmul.f32 %v4827_v18, %v1936_v15 }
 0x348   :  { %v1743_v17 = vadd.f32 %v1742_v54, %v1639_v57  ;;  %v6012_v13 = vpop.f32.mrf.mxu0  ;;  %v7215_v57 = vld [vmem:[#allocation26_spill] sm:$0xff] }
 0x34a   :  { %v4829_v25 = vpop.eup %4828  ;;  %v1824_v11 = vmul.f32 0.5, %v1743_v17 }
 0x34b   :  { %v1899_v51 = vadd.f32 1.0, %v4829_v25  ;;  %v4831_v6 = vpop.eup %4830 }
 0x34c   :  { %4832 = vtanh.f32 %v1824_v11  ;;  %v1640_v56 = vpop.f32.mrf.mxu2 }
 0x34d   :  { %v1937_v4 = vmul.f32 0.5, %v1899_v51  ;;  %v1641_v49 = vadd.f32 %v1640_v56, %v1537_v35  ;;  %4834 = vtanh.f32 %v7214_v43 }
 0x34f   :  { %v1744_v12 = vpop.f32.mrf.mxu3  ;;  %v1975_v60 = vmul.f32 %v4831_v6, %v1937_v4 }
 0x350   :  { %v1745_v3 = vadd.f32 %v1744_v12, %v1641_v49  ;;  %v6017_v58 = vpop.f32.mrf.mxu0  ;;  %v7216_v12 = vld [vmem:[#allocation36_spill] sm:$0xff] }
 0x351   :  { %v1996_v20 = vpack.c.bf16 %v1975_v60, %v1974_v37  ;;  %v1541_v37 = vpop.f32.mrf.mxu1 }
 0x352   :  { %v4833_v7 = vpop.eup %4832  ;;  %v1825_v5 = vmul.f32 0.5, %v1745_v3  ;;  %v1542_v11 = vadd.f32 %v1541_v37, %v1438_v30 }
 0x353   :  { %v1900_v23 = vadd.f32 1.0, %v4833_v7  ;;  %2155 = vmatmul.bf16.gmra.mxu0 %v1996_v20  ;;  %v4835_v14 = vpop.eup %4834 }
 0x354   :  { %4836 = vtanh.f32 %v1825_v5  ;;  %v1643_v62 = vpop.f32.mrf.mxu2  ;;  %v7217_v5 = vld [vmem:[#allocation40_spill] sm:$0xff] }
 0x355   :  { %v1938_v19 = vmul.f32 0.5, %v1900_v23  ;;  %v1644_v15 = vadd.f32 %v1643_v62, %v1540_v21  ;;  %4838 = vtanh.f32 %v7215_v57 }
 0x357   :  { %v1747_v44 = vpop.f32.mrf.mxu3  ;;  %v1976_v18 = vmul.f32 %v4835_v14, %v1938_v19 }
 0x358   :  { %v1748_v54 = vadd.f32 %v1747_v44, %v1644_v15  ;;  %v6022_v27 = vpop.f32.mrf.mxu0 }
 0x35a   :  { %v4837_v17 = vpop.eup %4836  ;;  %v1826_v25 = vmul.f32 0.5, %v1748_v54 }
 0x35b   :  { %v1901_v32 = vadd.f32 1.0, %v4837_v17  ;;  %v4839_v4 = vpop.eup %4838 }
 0x35c   :  { %4840 = vtanh.f32 %v1826_v25  ;;  %v1645_v35 = vpop.f32.mrf.mxu2 }
 0x35d   :  { %v1939_v51 = vmul.f32 0.5, %v1901_v32  ;;  %v1646_v56 = vadd.f32 %v1645_v35, %v1542_v11  ;;  %4842 = vtanh.f32 %v7216_v12  ;;  %v5014_v12 = vmov 0.0  }
 0x35e   :  { %67 = vst.msk [vmem:[#allocation3] sm:$0x1] %vm65_vm1, %v5014_v12 }
 0x35f   :  { %v1977_v6 = vmul.f32 %v4839_v4, %v1939_v51  ;;  %v1749_v49 = vpop.f32.mrf.mxu3 }
 0x360   :  { %v1750_v40 = vadd.f32 %v1749_v49, %v1646_v56  ;;  %v2121_v60 = vpop.f32.mrf.mxu0  ;;  %v68_v49 = vlaneseq }
 0x361   :  { %v1997_v43 = vpack.c.bf16 %v1977_v6, %v1976_v18  ;;  %v5013_v6 = vmov -inf  }
 0x362   :  { %v4841_v3 = vpop.eup %4840  ;;  %v1827_v20 = vmul.f32 0.5, %v1750_v40  ;;  %66 = vst.msk [vmem:[#allocation2] sm:$0x1] %vm65_vm1, %v5013_v6  ;;  %vm6045_vm2 = vcmp.lt.s32.totalorder %v68_v49, 512  ;;  %v2172_v2 = vshrl.u32 %v68_v49, 7 }
 0x363   :  { %v1902_v7 = vadd.f32 1.0, %v4841_v3  ;;  %2160 = vmatmul.bf16.gmra.mxu0 %v1997_v43  ;;  %v4843_v24 = vpop.eup %4842  ;;  %72 = vst.msk [vmem:[#allocation4] sm:$0xf] %vm6045_vm2, %v5014_v12  ;;  %v6055_v3 = vadd.f32 %v5888_v53, %v5987_v33  ;;  %v6074_v33 = vadd.f32 %v5888_v53, %v2121_v60 }
 0x364   :  { %4844 = vtanh.f32 %v1827_v20  ;;  %v6059_v20 = vadd.f32 %v5888_v53, %v5992_v61 }
 0x365   :  { %v1940_v47 = vmul.f32 0.5, %v1902_v7  ;;  %4846 = vtanh.f32 %v7217_v5  ;;  %v6063_v7 = vadd.f32 %v5888_v53, %v6007_v9 }
 0x367   :  { %v1978_v26 = vmul.f32 %v4843_v24, %v1940_v47  ;;  %v6067_v47 = vadd.f32 %v5888_v53, %v6012_v13  ;;  %v2343_v24 = vsel %vm2326_vm0, %v6055_v3, -inf  ;;  %v2351_v9 = vsel %vm2326_vm0, %v6063_v7, -inf }
 0x368   :  { %v2123_v23 = vpop.f32.mrf.mxu0  ;;  %v2344_v60 = vmax.f32 %v2336_v46, %v2343_v24 }
 0x369   :  { %v6077_v61 = vadd.f32 %v5888_v53, %v2123_v23  ;;  %v2353_v5 = vsel %vm2326_vm0, %v6067_v47, -inf }
 0x36a   :  { %v4845_v21 = vpop.eup %4844 }
 0x36b   :  { %v1903_v19 = vadd.f32 1.0, %v4845_v21  ;;  %v4847_v14 = vpop.eup %4846 }
 0x36d   :  { %v1941_v62 = vmul.f32 0.5, %v1903_v19 }
 0x36f   :  { %v1979_v15 = vmul.f32 %v4847_v14, %v1941_v62  ;;  %v2359_v62 = vsel %vm2326_vm0, %v6074_v33, -inf  ;;  %v2361_v14 = vsel %vm2326_vm0, %v6077_v61, -inf }
 0x370   :  { %v6028_v44 = vpop.f32.mrf.mxu0 }
 0x371   :  { %v1998_v57 = vpack.c.bf16 %v1979_v15, %v1978_v26  ;;  %v2345_v26 = vsel %vm2326_vm0, %v6059_v20, -inf }
 0x372   :  { %v2346_v23 = vmax.f32 %v2338_v22, %v2345_v26 }
 0x373   :  { %2165 = vmatmul.bf16.gmra.mxu0 %v1998_v57 }
 0x374   :  { %v2354_v16 = vmax.f32 %v2346_v23, %v2353_v5 }
 0x378   :  { %v6030_v18 = vpop.f32.mrf.mxu0 }
 0x380   :  { %v2131_v54 = vpop.f32.mrf.mxu0 }
 0x381   :  { %v6084_v13 = vadd.f32 %v5888_v53, %v2131_v54  ;;  %v2352_v54 = vmax.f32 %v2344_v60, %v2351_v9 }
 0x383   :  { %v2367_v52 = vsel %vm2326_vm0, %v6084_v13, -inf  ;;  %v2360_v22 = vmax.f32 %v2352_v54, %v2359_v62 }
 0x385   :  { %v2368_v12 = vmax.f32 %v2360_v22, %v2367_v52  ;;  %v6159_v22 = vadd.f32 %v5888_v53, %v6022_v27 }
 0x388   :  { %v2133_v37 = vpop.f32.mrf.mxu0 }
 0x389   :  { %v6087_v21 = vadd.f32 %v5888_v53, %v2133_v37  ;;  %v2362_v37 = vmax.f32 %v2354_v16, %v2361_v14 }
 0x38b   :  { %v2369_v46 = vsel %vm2326_vm0, %v6087_v21, -inf }
 0x38c   :  { %v2370_v24 = vmax.f32 %v2362_v37, %v2369_v46  ;;  %v6155_v46 = vadd.f32 %v5888_v53, %v6017_v58  ;;  %v6171_v58 = vadd.f32 %v5888_v53, %v6030_v18  ;;  %v2357_v18 = vsel %vm2326_vm0, %v6159_v22, -inf }
 0x390   :  { %v6032_v17 = vpop.f32.mrf.mxu0 }
 0x398   :  { %v6034_v30 = vpop.f32.mrf.mxu0 }
 0x3a0   :  { %v2141_v25 = vpop.f32.mrf.mxu0 }
 0x3a1   :  { %v6100_v15 = vadd.f32 %v5888_v53, %v2141_v25 }
 0x3a3   :  { %v2375_v25 = vsel %vm2326_vm0, %v6100_v15, -inf }
 0x3a4   :  { %v2376_v5 = vmax.f32 %v2368_v12, %v2375_v25  ;;  %v6167_v12 = vadd.f32 %v5888_v53, %v6028_v44  ;;  %v2355_v44 = vsel %vm2326_vm0, %v6155_v46, -inf }
 0x3a6   :  { %v2363_v0 = vsel %vm2326_vm0, %v6167_v12, -inf }
 0x3a8   :  { %v2143_v32 = vpop.f32.mrf.mxu0 }
 0x3a9   :  { %v6103_v57 = vadd.f32 %v5888_v53, %v2143_v32 }
 0x3ab   :  { %v2377_v32 = vsel %vm2326_vm0, %v6103_v57, -inf }
 0x3ac   :  { %v2378_v60 = vmax.f32 %v2370_v24, %v2377_v32 }
 0x3b0   :  { %v6036_v11 = vpop.f32.mrf.mxu0 }
 0x3b8   :  { %v6038_v51 = vpop.f32.mrf.mxu0 }
 0x3c0   :  { %v2151_v35 = vpop.f32.mrf.mxu0 }
 0x3c1   :  { %v6110_v34 = vadd.f32 %v5888_v53, %v2151_v35  ;;  %v6124_v35 = vadd.f32 %v5888_v53, %v5977_v36 }
 0x3c3   :  { %v2383_v26 = vsel %vm2326_vm0, %v6110_v34, -inf  ;;  %v2339_v16 = vsel %vm2326_vm0, %v6124_v35, -inf }
 0x3c4   :  { %v2384_v14 = vmax.f32 %v2376_v5, %v2383_v26  ;;  %v2340_v27 = vmax.f32 %v2332_v1, %v2339_v16  ;;  %v6189_v5 = vadd.f32 %v5888_v53, %v6034_v30 }
 0x3c8   :  { %v2153_v4 = vpop.f32.mrf.mxu0 }
 0x3c9   :  { %v6113_v8 = vadd.f32 %v5888_v53, %v2153_v4  ;;  %v6128_v4 = vadd.f32 %v5888_v53, %v5982_v55  ;;  %v6145_v55 = vadd.f32 %v5888_v53, %v6002_v29 }
 0x3cb   :  { %v2385_v9 = vsel %vm2326_vm0, %v6113_v8, -inf  ;;  %v2341_v52 = vsel %vm2326_vm0, %v6128_v4, -inf  ;;  %v2349_v32 = vsel %vm2326_vm0, %v6145_v55, -inf }
 0x3cc   :  { %v2386_v54 = vmax.f32 %v2378_v60, %v2385_v9  ;;  %v2342_v26 = vmax.f32 %v2334_v38, %v2341_v52  ;;  %v6181_v9 = vadd.f32 %v5888_v53, %v6032_v17  ;;  %v2365_v38 = vsel %vm2326_vm0, %v6171_v58, -inf }
 0x3cd   :  { %v6198_v17 = vadd.f32 %v5888_v53, %v6036_v11  ;;  %v6202_v60 = vadd.f32 %v5888_v53, %v6038_v51 }
 0x3ce   :  { %v2350_v28 = vmax.f32 %v2342_v26, %v2349_v32  ;;  %v2371_v49 = vsel %vm2326_vm0, %v6181_v9, -inf }
 0x3cf   :  { %v2379_v52 = vsel %vm2326_vm0, %v6198_v17, -inf }
 0x3d0   :  { %v6040_v56 = vpop.f32.mrf.mxu0 }
 0x3d8   :  { %v6049_v43 = vpop.f32.mrf.mxu0 }
 0x3d9   :  { %v6214_v11 = vadd.f32 %v5888_v53, %v6049_v43 }
 0x3db   :  { %v2389_v43 = vsel %vm2326_vm0, %v6214_v11, -inf }
 0x3e0   :  { %v2161_v19 = vpop.f32.mrf.mxu0 }
 0x3e1   :  { %v6120_v6 = vadd.f32 %v5888_v53, %v2161_v19  ;;  %v6136_v19 = vadd.f32 %v5888_v53, %v5997_v10 }
 0x3e3   :  { %v2391_v36 = vsel %vm2326_vm0, %v6120_v6, -inf  ;;  %v2347_v25 = vsel %vm2326_vm0, %v6136_v19, -inf }
 0x3e4   :  { %v2392_v29 = vmax.f32 %v2384_v14, %v2391_v36  ;;  %v2348_v1 = vmax.f32 %v2340_v27, %v2347_v25  ;;  %v2373_v36 = vsel %vm2326_vm0, %v6189_v5, -inf  ;;  %v6210_v14 = vadd.f32 %v5888_v53, %v6040_v56 }
 0x3e6   :  { %v2356_v30 = vmax.f32 %v2348_v1, %v2355_v44  ;;  %v2387_v56 = vsel %vm2326_vm0, %v6210_v14, -inf }
 0x3e8   :  { %v2163_v23 = vpop.f32.mrf.mxu0  ;;  %v2364_v16 = vmax.f32 %v2356_v30, %v2363_v0 }
 0x3e9   :  { %v6141_v62 = vadd.f32 %v5888_v53, %v2163_v23  ;;  %v2358_v23 = vmax.f32 %v2350_v28, %v2357_v18 }
 0x3eb   :  { %v2393_v10 = vsel %vm2326_vm0, %v6141_v62, -inf  ;;  %v2366_v51 = vmax.f32 %v2358_v23, %v2365_v38 }
 0x3ec   :  { %v2394_v37 = vmax.f32 %v2386_v54, %v2393_v10  ;;  %v2209_v54 = vadd.s32 296, %v2172_v2  ;;  %v2381_v10 = vsel %vm2326_vm0, %v6202_v60, -inf }
 0x3ed   :  { %v2374_v25 = vmax.f32 %v2366_v51, %v2373_v36 }
 0x3ee   :  { %v2400_v24 = vmax.f32 %v2392_v29, %v2394_v37  ;;  %v2372_v37 = vmax.f32 %v2364_v16, %v2371_v49  ;;  %vm2286_vm3 = vcmp.lt.s32.totalorder %v2209_v54, 300 }
 0x3ef   :  { %v2382_v26 = vmax.f32 %v2374_v25, %v2381_v10 }
 0x3f0   :  { %v2166_v31 = vpop.f32.mrf.mxu0  ;;  %v2380_v27 = vmax.f32 %v2372_v37, %v2379_v52 }
 0x3f1   :  { %v6221_v29 = vadd.f32 %v5888_v53, %v2166_v31  ;;  %v2390_v31 = vmax.f32 %v2382_v26, %v2389_v43 }
 0x3f2   :  { %v2388_v2 = vmax.f32 %v2380_v27, %v2387_v56 }
 0x3f3   :  { %v2395_v18 = vsel %vm2326_vm0, %v6221_v29, -inf }
 0x3f4   :  { %v2396_v0 = vmax.f32 %v2388_v2, %v2395_v18 }
 0x3f8   :  { %v2168_v32 = vpop.f32.mrf.mxu0 }
 0x3f9   :  { %v2169_v44 = vadd.f32 %v5888_v53, %v2168_v32  ;;  %v6234_v53 = vld [vmem:[#allocation2] sm:$0x1] }
 0x3fb   :  { %v6230_v1 = vsel %vm2286_vm3, %v2169_v44, -inf }
 0x3fc   :  { %v2397_v28 = vsel %vm2326_vm0, %v6230_v1, -inf }
 0x3fd   :  { %v2398_v38 = vmax.f32 %v2390_v31, %v2397_v28 }
 0x3ff   :  { %v2399_v30 = vmax.f32 %v2396_v0, %v2398_v38 }
 0x401   :  { %v2401_v23 = vmax.f32 %v2399_v30, %v2400_v24 }
 0x403   :  { %v2402_v49 = vrot.slane %v2401_v23, 4 }
 0x405   :  { %v2403_v36 = vmax.f32 %v2401_v23, %v2402_v49 }
 0x407   :  { %v2404_v54 = vrot.slane %v2403_v36, 2 }
 0x409   :  { %v2405_v16 = vmax.f32 %v2403_v36, %v2404_v54 }
 0x40b   :  { %v2406_v51 = vrot.slane %v2405_v16, 1 }
 0x40d   :  { %v2407_v52 = vmax.f32 %v2405_v16, %v2406_v51 }
 0x40f   :  { %v2408_v10 = vmax.f32 %v6234_v53, %v2407_v52 }
 0x411   :  { %vm2409_vm4 = vcmp.eq.f32.partialorder %v2408_v10, -inf  ;;  %3357 = vst.msk [vmem:[#allocation2] sm:$0x1] %vm65_vm1, %v2408_v10 }
 0x412   :  { %v6238_v37 = vsel %vm2409_vm4, 0.0, %v2408_v10 }
 0x413   :  { %v2411_v25 = vsub.f32 %v6234_v53, %v6238_v37  ;;  %v6243_v24 = vperm.slane %v6238_v37, 0 }
 0x415   :  { %v2417_v56 = vsub.f32 %v5895_v41, %v6243_v24  ;;  %v2418_v43 = vsub.f32 %v5916_v42, %v6243_v24  ;;  %v2419_v32 = vsub.f32 %v5937_v63, %v6243_v24  ;;  %v2420_v27 = vsub.f32 %v5958_v59, %v6243_v24 }
 0x416   :  { %v2421_v26 = vsub.f32 %v5899_v39, %v6243_v24  ;;  %v2422_v44 = vsub.f32 %v5920_v45, %v6243_v24  ;;  %v2423_v18 = vsub.f32 %v5941_v48, %v6243_v24  ;;  %v2424_v41 = vsub.f32 %v5962_v50, %v6243_v24 }
 0x417   :  { %v2451_v42 = vsub.f32 %v6120_v6, %v6243_v24  ;;  %v2452_v63 = vsub.f32 %v6141_v62, %v6243_v24  ;;  %v2453_v59 = vsub.f32 %v6221_v29, %v6243_v24  ;;  %v2454_v39 = vsub.f32 %v6230_v1, %v6243_v24 }
 0x418   :  { %v2455_v2 = vmul.f32 1.442695, %v2417_v56  ;;  %v2457_v45 = vmul.f32 1.442695, %v2418_v43  ;;  %v2459_v31 = vmul.f32 1.442695, %v2419_v32  ;;  %v2425_v30 = vsub.f32 %v6124_v35, %v6243_v24 }
 0x419   :  { %v2461_v48 = vmul.f32 1.442695, %v2420_v27  ;;  %v2463_v28 = vmul.f32 1.442695, %v2421_v26  ;;  %v2465_v50 = vmul.f32 1.442695, %v2422_v44  ;;  %v2426_v36 = vsub.f32 %v6128_v4, %v6243_v24 }
 0x41a   :  { %4848 = vpow2.f32 %v2455_v2  ;;  %v2467_v23 = vmul.f32 1.442695, %v2423_v18  ;;  %v2469_v54 = vmul.f32 1.442695, %v2424_v41  ;;  %v2427_v10 = vsub.f32 %v6055_v3, %v6243_v24 }
 0x41b   :  { %4850 = vpow2.f32 %v2457_v45  ;;  %v2471_v56 = vmul.f32 1.442695, %v2425_v30  ;;  %v2428_v35 = vsub.f32 %v6059_v20, %v6243_v24  ;;  %v2473_v4 = vmul.f32 1.442695, %v2426_v36 }
 0x41c   :  { %4852 = vpow2.f32 %v2459_v31  ;;  %v5015_v18 = vmov 0   ;;  %v2429_v3 = vsub.f32 %v6136_v19, %v6243_v24  ;;  %v2475_v2 = vmul.f32 1.442695, %v2427_v10 }
 0x41d   :  { %4854 = vpow2.f32 %v2461_v48  ;;  %4694 = vset.pattern.permute.xlu2 %v5015_v18  ;;  %4693 = vset.pattern.permute.xlu1 %v5015_v18  ;;  %v2430_v48 = vsub.f32 %v6145_v55, %v6243_v24  ;;  %v2431_v19 = vsub.f32 %v6063_v7, %v6243_v24  ;;  %v2527_v6 = vmul.f32 1.442695, %v2453_v59 }
 0x41e   :  { %4856 = vpow2.f32 %v2463_v28  ;;  %4692 = vset.pattern.permute.xlu0 %v5015_v18  ;;  %v2477_v28 = vmul.f32 1.442695, %v2428_v35  ;;  %v2479_v36 = vmul.f32 1.442695, %v2429_v3 }
 0x41f   :  { %4858 = vpow2.f32 %v2465_v50  ;;  %v2481_v55 = vmul.f32 1.442695, %v2430_v48  ;;  %v2483_v7 = vmul.f32 1.442695, %v2431_v19 }
 0x420   :  { %v4849_v0 = vpop.eup %4848  ;;  %4860 = vpow2.f32 %v2467_v23 }
 0x421   :  { %v4851_v38 = vpop.eup %4850  ;;  %v2533_v16 = vsel %vm2326_vm0, %v4849_v0, 0.0  ;;  %4862 = vpow2.f32 %v2469_v54  ;;  %2771 = vperm.xlu0 %4692, %v4849_v0   ;;  %v2432_v0 = vsub.f32 %v6067_v47, %v6243_v24  ;;  %v2434_v47 = vsub.f32 %v6159_v22, %v6243_v24 }
 0x422   :  { %v4853_v49 = vpop.eup %4852  ;;  %v2534_v51 = vsel %vm2326_vm0, %v4851_v38, 0.0  ;;  %4864 = vpow2.f32 %v2471_v56 }
 0x423   :  { %v4855_v52 = vpop.eup %4854  ;;  %v2535_v43 = vadd.f32 %v2534_v51, %v2533_v16  ;;  %v2536_v27 = vsel %vm2326_vm0, %v4853_v49, 0.0  ;;  %2781 = vperm.xlu1 %4693, %v4853_v49   ;;  %4866 = vpow2.f32 %v2473_v4  ;;  %v2485_v4 = vmul.f32 1.442695, %v2432_v0 }
 0x424   :  { %v4857_v32 = vpop.eup %4856  ;;  %v2538_v44 = vsel %vm2326_vm0, %v4855_v52, 0.0  ;;  %4868 = vpow2.f32 %v2475_v2  ;;  %v2489_v22 = vmul.f32 1.442695, %v2434_v47 }
 0x425   :  { %v2537_v26 = vadd.f32 %v2536_v27, %v2535_v43  ;;  %v4859_v41 = vpop.eup %4858  ;;  %2791 = vperm.xlu2 %4694, %v4857_v32   ;;  %v2540_v20 = vsel %vm2326_vm0, %v4857_v32, 0.0  ;;  %4870 = vpow2.f32 %v2477_v28  ;;  %v2433_v43 = vsub.f32 %v6155_v46, %v6243_v24 }
 0x426   :  { %v4861_v31 = vpop.eup %4860  ;;  %v2542_v30 = vsel %vm2326_vm0, %v4859_v41, 0.0  ;;  %4872 = vpow2.f32 %v2479_v36  ;;  %v2435_v46 = vsub.f32 %v6074_v33, %v6243_v24  ;;  %v2437_v28 = vsub.f32 %v6167_v12, %v6243_v24 }
 0x427   :  { %v2539_v45 = vadd.f32 %v2538_v44, %v2537_v26  ;;  %v4863_v23 = vpop.eup %4862  ;;  %v2544_v16 = vsel %vm2326_vm0, %v4861_v31, 0.0  ;;  %4874 = vpow2.f32 %v2481_v55  ;;  %v2487_v3 = vmul.f32 1.442695, %v2433_v43 }
 0x428   :  { %v4865_v49 = vpop.eup %4864  ;;  %v2546_v10 = vsel %vm2326_vm0, %v4863_v23, 0.0  ;;  %4876 = vpow2.f32 %v2483_v7  ;;  %v2491_v33 = vmul.f32 1.442695, %v2435_v46  ;;  %v2439_v12 = vsub.f32 %v6084_v13, %v6243_v24 }
 0x429   :  { %v2541_v50 = vadd.f32 %v2540_v20, %v2539_v45  ;;  %v4867_v56 = vpop.eup %4866  ;;  %v2548_v35 = vsel %vm2326_vm0, %v4865_v49, 0.0  ;;  %2776 = vperm.xlu0 %4692, %v4851_v38   ;;  %v2436_v38 = vsub.f32 %v6077_v61, %v6243_v24  ;;  %4878 = vpow2.f32 %v2485_v4 }
 0x42a   :  { %v4869_v27 = vpop.eup %4868  ;;  %v2550_v44 = vsel %vm2326_vm0, %v4867_v56, 0.0  ;;  %4880 = vpow2.f32 %v2487_v3  ;;  %v2438_v61 = vsub.f32 %v6171_v58, %v6243_v24  ;;  %v2440_v58 = vsub.f32 %v6087_v21, %v6243_v24 }
 0x42b   :  { %v2543_v54 = vadd.f32 %v2542_v30, %v2541_v50  ;;  %2786 = vperm.xlu1 %4693, %v4855_v52   ;;  %v4871_v18 = vpop.eup %4870  ;;  %v2552_v2 = vsel %vm2326_vm0, %v4869_v27, 0.0  ;;  %4882 = vpow2.f32 %v2489_v22  ;;  %v2493_v36 = vmul.f32 1.442695, %v2436_v38 }
 0x42c   :  { %v6302_v52 = vpop.eup %4872  ;;  %v2554_v20 = vsel %vm2326_vm0, %v4871_v18, 0.0  ;;  %4884 = vpow2.f32 %v2491_v33  ;;  %v2441_v13 = vsub.f32 %v6181_v9, %v6243_v24  ;;  %v2442_v4 = vsub.f32 %v6189_v5, %v6243_v24 }
 0x42d   :  { %v2545_v51 = vadd.f32 %v2544_v16, %v2543_v54  ;;  %2796 = vperm.xlu2 %4694, %v4859_v41   ;;  %v4875_v48 = vpop.eup %4874  ;;  %v2556_v30 = vsel %vm2326_vm0, %v6302_v52, 0.0  ;;  %4886 = vpow2.f32 %v2493_v36  ;;  %v2444_v5 = vsub.f32 %v6103_v57, %v6243_v24 }
 0x42e   :  { %v4877_v19 = vpop.eup %4876  ;;  %v2558_v16 = vsel %vm2326_vm0, %v4875_v48, 0.0  ;;  %v2503_v3 = vmul.f32 1.442695, %v2441_v13 }
 0x42f   :  { %v2547_v32 = vadd.f32 %v2546_v10, %v2545_v51  ;;  %v6314_v0 = vpop.eup %4878  ;;  %v2497_v51 = vmul.f32 1.442695, %v2438_v61 }
 0x430   :  { %v2562_v43 = vsel %vm2326_vm0, %v6314_v0, 0.0 }
 0x431   :  { %v2549_v26 = vadd.f32 %v2548_v35, %v2547_v32  ;;  %2801 = vperm.xlu0 %4692, %v4861_v31   ;;  %v6319_v31 = vpop.eup %4880  ;;  %v2499_v32 = vmul.f32 1.442695, %v2439_v12 }
 0x432   :  { %v4883_v7 = vpop.eup %4882  ;;  %v2564_v47 = vsel %vm2326_vm0, %v6319_v31, 0.0 }
 0x433   :  { %v2551_v41 = vadd.f32 %v2550_v44, %v2549_v26  ;;  %2806 = vperm.xlu1 %4693, %v4863_v23   ;;  %v2560_v23 = vsel %vm2326_vm0, %v4877_v19, 0.0  ;;  %v6329_v21 = vpop.eup %4884  ;;  %v2501_v26 = vmul.f32 1.442695, %v2440_v58  ;;  %v2566_v46 = vsel %vm2326_vm0, %v4883_v7, 0.0 }
 0x434   :  { %v6334_v9 = vpop.eup %4886 }
 0x435   :  { %v2553_v45 = vadd.f32 %v2552_v2, %v2551_v41  ;;  %2811 = vperm.xlu2 %4694, %v4865_v49   ;;  %v2495_v49 = vmul.f32 1.442695, %v2437_v28  ;;  %v2505_v2 = vmul.f32 1.442695, %v2442_v4  ;;  %v2570_v22 = vsel %vm2326_vm0, %v6334_v9, 0.0 }
 0x437   :  { %v2555_v50 = vadd.f32 %v2554_v20, %v2553_v45  ;;  %4888 = vpow2.f32 %v2495_v49 }
 0x438   :  { %4890 = vpow2.f32 %v2497_v51 }
 0x439   :  { %v2557_v54 = vadd.f32 %v2556_v30, %v2555_v50  ;;  %2816 = vperm.xlu0 %4692, %v4867_v56   ;;  %4892 = vpow2.f32 %v2499_v32  ;;  %v2568_v56 = vsel %vm2326_vm0, %v6329_v21, 0.0  ;;  %v2446_v50 = vsub.f32 %v6202_v60, %v6243_v24 }
 0x43a   :  { %4894 = vpow2.f32 %v2501_v26  ;;  %v2509_v30 = vmul.f32 1.442695, %v2444_v5  ;;  %v2448_v60 = vsub.f32 %v6113_v8, %v6243_v24 }
 0x43b   :  { %v2559_v55 = vadd.f32 %v2558_v16, %v2557_v54  ;;  %2821 = vperm.xlu1 %4693, %v4869_v27   ;;  %4896 = vpow2.f32 %v2503_v3  ;;  %v2513_v12 = vmul.f32 1.442695, %v2446_v50 }
 0x43c   :  { %4898 = vpow2.f32 %v2505_v2  ;;  %v2517_v13 = vmul.f32 1.442695, %v2448_v60 }
 0x43d   :  { %v2561_v10 = vadd.f32 %v2560_v23, %v2559_v55  ;;  %2826 = vperm.xlu2 %4694, %v4871_v18   ;;  %v2443_v18 = vsub.f32 %v6100_v15, %v6243_v24  ;;  %v4889_v27 = vpop.eup %4888  ;;  %v2445_v15 = vsub.f32 %v6198_v17, %v6243_v24 }
 0x43e   :  { %v6344_v45 = vpop.eup %4890  ;;  %v2572_v33 = vsel %vm2326_vm0, %v4889_v27, 0.0 }
 0x43f   :  { %v2563_v35 = vadd.f32 %v2562_v43, %v2561_v10  ;;  %v2507_v20 = vmul.f32 1.442695, %v2443_v18  ;;  %v6350_v57 = vpop.eup %4892  ;;  %v2574_v17 = vsel %vm2326_vm0, %v6344_v45, 0.0  ;;  %v2450_v43 = vsub.f32 %v6214_v11, %v6243_v24 }
 0x440   :  { %v6356_v36 = vpop.eup %4894 }
 0x441   :  { %v2565_v44 = vadd.f32 %v2564_v47, %v2563_v35  ;;  %2831 = vperm.xlu0 %4692, %v6302_v52   ;;  %4900 = vpow2.f32 %v2507_v20  ;;  %v2576_v52 = vsel %vm2326_vm0, %v6350_v57, 0.0  ;;  %v6362_v16 = vpop.eup %4896  ;;  %v2578_v55 = vsel %vm2326_vm0, %v6356_v36, 0.0 }
 0x442   :  { %4902 = vpow2.f32 %v2509_v30  ;;  %v6368_v23 = vpop.eup %4898  ;;  %v2580_v10 = vsel %vm2326_vm0, %v6362_v16, 0.0 }
 0x443   :  { %v2567_v41 = vadd.f32 %v2566_v46, %v2565_v44  ;;  %2836 = vperm.xlu1 %4693, %v4875_v48   ;;  %v2511_v48 = vmul.f32 1.442695, %v2445_v15  ;;  %v2523_v46 = vmul.f32 1.442695, %v2451_v42 }
 0x445   :  { %v2569_v38 = vadd.f32 %v2568_v56, %v2567_v41  ;;  %2841 = vperm.xlu2 %4694, %v4877_v19   ;;  %v2447_v19 = vsub.f32 %v6110_v34, %v6243_v24  ;;  %v2449_v34 = vsub.f32 %v6210_v14, %v6243_v24  ;;  %4904 = vpow2.f32 %v2511_v48 }
 0x446   :  { %4906 = vpow2.f32 %v2513_v12  ;;  %v2582_v14 = vsel %vm2326_vm0, %v6368_v23, 0.0  ;;  %v2525_v56 = vmul.f32 1.442695, %v2452_v63 }
 0x447   :  { %v2571_v28 = vadd.f32 %v2570_v22, %v2569_v38  ;;  %v2515_v58 = vmul.f32 1.442695, %v2447_v19  ;;  %v4901_v8 = vpop.eup %4900 }
 0x448   :  { %v6380_v35 = vpop.eup %4902  ;;  %v2584_v4 = vsel %vm2326_vm0, %v4901_v8, 0.0 }
 0x449   :  { %v2573_v61 = vadd.f32 %v2572_v33, %v2571_v28  ;;  %2846 = vperm.xlu0 %4692, %v6314_v0   ;;  %4908 = vpow2.f32 %v2515_v58  ;;  %v2521_v0 = vmul.f32 1.442695, %v2450_v43  ;;  %v2586_v11 = vsel %vm2326_vm0, %v6380_v35, 0.0  ;;  %v82_v43 = vld [vmem:[#allocation6 + $0x40] sm:$0xff] }
 0x44a   :  { %4910 = vpow2.f32 %v2517_v13  ;;  %v83_v13 = vld [vmem:[#allocation6 + $0x48] sm:$0xff] }
 0x44b   :  { %v2575_v54 = vadd.f32 %v2574_v17, %v2573_v61  ;;  %2851 = vperm.xlu1 %4693, %v6319_v31   ;;  %v4905_v31 = vpop.eup %4904 }
 0x44c   :  { %v4907_v44 = vpop.eup %4906  ;;  %v2588_v3 = vsel %vm2326_vm0, %v4905_v31, 0.0 }
 0x44d   :  { %v2577_v49 = vadd.f32 %v2576_v52, %v2575_v54  ;;  %2856 = vperm.xlu2 %4694, %v4883_v7   ;;  %v2519_v7 = vmul.f32 1.442695, %v2449_v34  ;;  %v2590_v2 = vsel %vm2326_vm0, %v4907_v44, 0.0 }
 0x44f   :  { %v2579_v51 = vadd.f32 %v2578_v55, %v2577_v49  ;;  %4912 = vpow2.f32 %v2519_v7  ;;  %v4909_v41 = vpop.eup %4908  ;;  %v6444_v7 = vld [vmem:[#allocation6 + $0x80] sm:$0xff] }
 0x450   :  { %4914 = vpow2.f32 %v2521_v0  ;;  %v4911_v38 = vpop.eup %4910  ;;  %v2635_v0 = vunpack.c.l.bf16 %v83_v13 }
 0x451   :  { %v2581_v32 = vadd.f32 %v2580_v10, %v2579_v51  ;;  %2861 = vperm.xlu0 %4692, %v6329_v21   ;;  %4916 = vpow2.f32 %v2523_v46  ;;  %v2529_v21 = vmul.f32 1.442695, %v2454_v39  ;;  %v2594_v63 = vsel %vm2326_vm0, %v4911_v38, 0.0  ;;  %v4641_v10 = vld [vmem:[%s7011_s5 + $0x78] sm:$0xff] }
 0x452   :  { %4918 = vpow2.f32 %v2525_v56  ;;  %3699 = vmatpush.bf16.msrb.mxu2 %v4641_v10  ;;  %v6457_v56 = vld [vmem:[#allocation6 + $0x28] sm:$0xff] }
 0x453   :  { %v2583_v47 = vadd.f32 %v2582_v14, %v2581_v32  ;;  %2866 = vperm.xlu1 %4693, %v6334_v9   ;;  %v2592_v9 = vsel %vm2326_vm0, %v4909_v41, 0.0  ;;  %4920 = vpow2.f32 %v2527_v6  ;;  %v6440_v14 = vld [vmem:[#allocation6 + $0x50] sm:$0xff]  ;;  %v2650_v6 = vunpack.c.h.bf16 %v6444_v7 }
 0x454   :  { %4922 = vpow2.f32 %v2529_v21  ;;  %v2637_v46 = vunpack.c.l.bf16 %v6440_v14  ;;  %v6552_v21 = vld [vmem:[#allocation6 + $0x68] sm:$0xff] }
 0x455   :  { %v2585_v26 = vadd.f32 %v2584_v4, %v2583_v47  ;;  %2871 = vperm.xlu2 %4694, %v4889_v27   ;;  %v4913_v27 = vpop.eup %4912  ;;  %v6446_v47 = vld [vmem:[#allocation6 + $0x88] sm:$0xff]  ;;  %v2633_v4 = vunpack.c.l.bf16 %v82_v43 }
 0x456   :  { %v4915_v22 = vpop.eup %4914  ;;  %v2596_v29 = vsel %vm2326_vm0, %v4913_v27, 0.0 }
 0x457   :  { %v2587_v18 = vadd.f32 %v2586_v11, %v2585_v26  ;;  %v4917_v59 = vpop.eup %4916  ;;  %v2598_v1 = vsel %vm2326_vm0, %v4915_v22, 0.0  ;;  %v2636_v26 = vunpack.c.h.bf16 %v83_v13  ;;  %v6448_v11 = vld [vmem:[#allocation6 + $0xb0] sm:$0xff] }
 0x458   :  { %v4919_v24 = vpop.eup %4918  ;;  %v2600_v28 = vsel %vm2326_vm0, %v4917_v59, 0.0 }
 0x459   :  { %v2589_v5 = vadd.f32 %v2588_v3, %v2587_v18  ;;  %2876 = vperm.xlu0 %4692, %v6344_v45   ;;  %v4921_v33 = vpop.eup %4920  ;;  %v2602_v30 = vsel %vm2326_vm0, %v4919_v24, 0.0  ;;  %v2638_v18 = vunpack.c.h.bf16 %v6440_v14 }
 0x45a   :  { %v4923_v61 = vpop.eup %4922 }
 0x45b   :  { %v2591_v42 = vadd.f32 %v2590_v2, %v2589_v5  ;;  %2881 = vperm.xlu1 %4693, %v6350_v57   ;;  %v2604_v57 = vsel %vm2326_vm0, %v4921_v33, 0.0  ;;  %v2606_v19 = vsel %vm2326_vm0, %v4923_v61, 0.0 }
 0x45d   :  { %v2593_v62 = vadd.f32 %v2592_v9, %v2591_v42  ;;  %2886 = vperm.xlu2 %4694, %v6356_v36   ;;  %v2412_v36 = vmul.f32 1.442695, %v2411_v25  ;;  %v4633_v25 = vld [vmem:[%s7011_s5 + $0x38] sm:$0xff]  ;;  %v2651_v42 = vunpack.c.l.bf16 %v6446_v47  ;;  %v6465_v9 = vld [vmem:[#allocation6] sm:$0xff] }
 0x45e   :  { %3686 = vmatpush.bf16.msrb.mxu1 %v4633_v25  ;;  %v6592_v25 = vld [vmem:[#allocation6 + $0xa8] sm:$0xff] }
 0x45f   :  { %v2595_v15 = vadd.f32 %v2594_v63, %v2593_v62  ;;  %4924 = vpow2.f32 %v2412_v36  ;;  %v6490_v36 = vld [vmem:[#allocation6 + $0x30] sm:$0xff]  ;;  %v6546_v62 = vld [vmem:[#allocation6 + $0x78] sm:$0xff] }
 0x461   :  { %v2597_v20 = vadd.f32 %v2596_v29, %v2595_v15  ;;  %2891 = vperm.xlu0 %4692, %v6362_v16   ;;  %v2531_v16 = vld [vmem:[#allocation3] sm:$0x1]  ;;  %v6473_v15 = vld [vmem:[#allocation6 + $0xe0] sm:$0xff] }
 0x463   :  { %v2599_v39 = vadd.f32 %v2598_v1, %v2597_v20  ;;  %2896 = vperm.xlu1 %4693, %v6368_v23  }
 0x465   :  { %v2601_v50 = vadd.f32 %v2600_v28, %v2599_v39  ;;  %2901 = vperm.xlu2 %4694, %v4901_v8   ;;  %v6418_v49 = vpop.eup %4924  ;;  %v4649_v8 = vld [vmem:[%s7011_s5 + $0xb8] sm:$0xff]  ;;  %v6568_v28 = vld [vmem:[#allocation6 + $0x148] sm:$0xff] }
 0x466   :  { %v2532_v23 = vmul.f32 %v6418_v49, %v2531_v16  ;;  %3712 = vmatpush.bf16.msrb.mxu3 %v4649_v8  ;;  %v6560_v8 = vld [vmem:[#allocation6 + $0x140] sm:$0xff] }
 0x467   :  { %v2603_v17 = vadd.f32 %v2602_v30, %v2601_v50  ;;  %v2618_v50 = vunpack.c.h.bf16 %v6465_v9 }
 0x469   :  { %v2605_v45 = vadd.f32 %v2604_v57, %v2603_v17  ;;  %2906 = vperm.xlu0 %4692, %v6380_v35   ;;  %v6442_v35 = vld [vmem:[#allocation6 + $0x58] sm:$0xff] }
 0x46a   :  { %v2639_v3 = vunpack.c.l.bf16 %v6442_v35  ;;  %v2640_v2 = vunpack.c.h.bf16 %v6442_v35 }
 0x46b   :  { %v2607_v48 = vadd.f32 %v2606_v19, %v2605_v45  ;;  %2911 = vperm.xlu1 %4693, %v4905_v31   ;;  %v2634_v31 = vunpack.c.h.bf16 %v82_v43  ;;  %v6492_v19 = vld [vmem:[#allocation6 + $0x38] sm:$0xff] }
 0x46d   :  { %v2608_v54 = vrot.slane %v2607_v48, 4  ;;  %2916 = vperm.xlu2 %4694, %v4907_v44   ;;  %v6450_v44 = vld [vmem:[#allocation6 + $0xb8] sm:$0xff] }
 0x46f   :  { %v2609_v52 = vadd.f32 %v2608_v54, %v2607_v48 }
 0x471   :  { %v2610_v60 = vrot.slane %v2609_v52, 2  ;;  %2921 = vperm.xlu0 %4692, %v4909_v41   ;;  %v6455_v41 = vld [vmem:[#allocation6 + $0x20] sm:$0xff] }
 0x473   :  { %v2611_v12 = vadd.f32 %v2610_v60, %v2609_v52  ;;  %2926 = vperm.xlu1 %4693, %v4911_v38   ;;  %v2649_v38 = vunpack.c.l.bf16 %v6444_v7  ;;  %v6496_v52 = vld [vmem:[#allocation6 + $0x10] sm:$0xff]  ;;  %v6498_v60 = vld [vmem:[#allocation6 + $0x18] sm:$0xff] }
 0x474   :  { %v2621_v14 = vunpack.c.l.bf16 %v6496_v52  ;;  %v2622_v35 = vunpack.c.h.bf16 %v6496_v52 }
 0x475   :  { %v2612_v55 = vrot.slane %v2611_v12, 1  ;;  %2931 = vperm.xlu2 %4694, %v4913_v27   ;;  %v2652_v27 = vunpack.c.h.bf16 %v6446_v47  ;;  %v4632_v47 = vld [vmem:[%s7011_s5 + $0x30] sm:$0xff] }
 0x476   :  { %3687 = vmatpush.bf16.msrb.mxu1 %v4632_v47 }
 0x477   :  { %v2613_v53 = vadd.f32 %v2612_v55, %v2611_v12 }
 0x479   :  { %v2614_v37 = vadd.f32 %v2613_v53, %v2532_v23  ;;  %2936 = vperm.xlu0 %4692, %v4915_v22   ;;  %v6471_v22 = vld [vmem:[#allocation6 + $0x8] sm:$0xff] }
 0x47a   :  { %v2620_v17 = vunpack.c.h.bf16 %v6471_v22 }
 0x47b   :  { %2616 = vst.msk [vmem:[#allocation3] sm:$0x1] %vm65_vm1, %v2614_v37  ;;  %2941 = vperm.xlu1 %4693, %v4917_v59   ;;  %v2625_v59 = vunpack.c.l.bf16 %v6455_v41 }
 0x47d   :  { %2946 = vperm.xlu2 %4694, %v4919_v24   ;;  %v6479_v24 = vld [vmem:[#allocation6 + $0xe8] sm:$0xff] }
 0x47f   :  { %v6425_v34 = vpop.permute.xlu2 %2791 }
 0x480   :  { %v6503_v55 = vmul.f32 %v6425_v34, %v2633_v4  ;;  %v6506_v23 = vmul.f32 %v6425_v34, %v2634_v31  ;;  %v6509_v53 = vmul.f32 %v6425_v34, %v2635_v0  ;;  %v6512_v37 = vmul.f32 %v6425_v34, %v2636_v26  ;;  %v6522_v31 = vld [vmem:[#allocation6 + $0x110] sm:$0xff]  ;;  %v6525_v0 = vld [vmem:[#allocation6 + $0x118] sm:$0xff] }
 0x481   :  { %2951 = vperm.xlu0 %4692, %v4921_v33   ;;  %v2617_v33 = vunpack.c.l.bf16 %v6465_v9  ;;  %v2623_v4 = vunpack.c.l.bf16 %v6498_v60  ;;  %v2624_v34 = vunpack.c.h.bf16 %v6498_v60  ;;  %v6527_v26 = vld [vmem:[#allocation6 + $0x70] sm:$0xff]  ;;  %v7227_v60 = vunpack.c.l.bf16 %v6490_v36 }
 0x482   :  { %v6427_v58 = vld [vmem:[#allocation3] sm:$0x1] }
 0x483   :  { %4926 = vrcp.f32 %v6427_v58  ;;  %v3371_v12 = vand.u32 2147483647, %v6427_v58  ;;  %v3373_v16 = vand.u32 2147483648, %v6427_v58  ;;  %vm3367_vm5 = vweird.f32 %v6427_v58 }
 0x485   :  { %2956 = vperm.xlu2 %4694, %v4923_v61   ;;  %v2619_v61 = vunpack.c.l.bf16 %v6471_v22  ;;  %vm6530_vm6 = vcmp.eq.f32.partialorder %v3371_v12, 8.507059e+37  ;;  %v6548_v12 = vld [vmem:[#allocation6 + $0x60] sm:$0xff] }
 0x487   :  { %v6430_v51 = vpop.permute.xlu2 %2796 }
 0x488   :  { %v6535_v54 = vmul.f32 %v6430_v51, %v2637_v46  ;;  %v6538_v48 = vmul.f32 %v6430_v51, %v2638_v18  ;;  %v6541_v45 = vmul.f32 %v6430_v51, %v2639_v3  ;;  %v6544_v57 = vmul.f32 %v6430_v51, %v2640_v2  ;;  %v6570_v3 = vld [vmem:[#allocation6 + $0xa0] sm:$0xff] }
 0x489   :  { %v6438_v32 = vpop.eup %4926 }
 0x48a   :  { %v3363_v5 = vmul.f32 %v6438_v32, %v6427_v58  ;;  %vm3368_vm7 = vweird.f32 %v6438_v32 }
 0x48b   :  { %vm6588_vm8 = vmor %vm3367_vm5, %vm3368_vm7 }
 0x48c   :  { %v3364_v30 = vsub.f32 1.0, %v3363_v5 }
 0x48e   :  { %v3365_v43 = vmul.f32 %v6438_v32, %v3364_v30  ;;  %v3374_v30 = vor.u32 1.1754944e-38, %v3373_v16  ;;  %v6610_v16 = vld [vmem:[#allocation6 + $0x98] sm:$0xff] }
 0x48f   :  { %v6481_v39 = vpop.permute.xlu2 %2811 }
 0x490   :  { %v3366_v18 = vadd.f32 %v6438_v32, %v3365_v43  ;;  %v6575_v51 = vmul.f32 %v6481_v39, %v2649_v38  ;;  %v6580_v13 = vmul.f32 %v6481_v39, %v2650_v6  ;;  %v6594_v38 = vld [vmem:[#allocation6 + $0x90] sm:$0xff]  ;;  %v6599_v7 = vmul.f32 %v6481_v39, %v2651_v42 }
 0x491   :  { %v6604_v6 = vmul.f32 %v6481_v39, %v2652_v27 }
 0x492   :  { %v3370_v58 = vsel %vm6588_vm8, %v6438_v32, %v3366_v18  ;;  %v2653_v32 = vunpack.c.l.bf16 %v6594_v38 }
 0x493   :  { %v2772_v63 = vpop.permute.xlu0 %2771  ;;  %v3375_v46 = vsel %vm6530_vm6, %v3374_v30, %v3370_v58 }
 0x494   :  { %v2959_v39 = vmul.f32 %v2772_v63, %v2617_v33  ;;  %v2960_v27 = vmul.f32 %v2772_v63, %v2618_v50  ;;  %v2961_v5 = vmul.f32 %v2772_v63, %v2619_v61  ;;  %v2962_v30 = vmul.f32 %v2772_v63, %v2620_v17 }
 0x495   :  { %v2782_v29 = vpop.permute.xlu1 %2781  ;;  %v7224_v50 = vunpack.c.h.bf16 %v6455_v41  ;;  %v7225_v63 = vunpack.c.l.bf16 %v6457_v56  ;;  %v7226_v17 = vunpack.c.h.bf16 %v6457_v56  ;;  %v7229_v41 = vunpack.c.l.bf16 %v6492_v19 }
 0x496   :  { %v2967_v9 = vmul.f32 %v2782_v29, %v2625_v59  ;;  %v7228_v59 = vunpack.c.h.bf16 %v6490_v36  ;;  %v7232_v36 = vunpack.c.h.bf16 %v6448_v11 }
 0x497   :  { %v6562_v10 = vpop.permute.xlu2 %2826  ;;  %v2968_v22 = vmul.f32 %v2782_v29, %v7224_v50  ;;  %v2969_v61 = vmul.f32 %v2782_v29, %v7225_v63  ;;  %v2970_v52 = vmul.f32 %v2782_v29, %v7226_v17  ;;  %v7230_v50 = vunpack.c.h.bf16 %v6492_v19 }
 0x498   :  { %v7233_v19 = vunpack.c.l.bf16 %v6450_v44 }
 0x49b   :  { %v2777_v2 = vpop.permute.xlu0 %2776 }
 0x49c   :  { %v2963_v58 = vmul.f32 %v2777_v2, %v2621_v14  ;;  %v2964_v20 = vmul.f32 %v2777_v2, %v2622_v35  ;;  %v2965_v42 = vmul.f32 %v2777_v2, %v2623_v4  ;;  %v2966_v33 = vmul.f32 %v2777_v2, %v2624_v34 }
 0x49d   :  { %v2787_v18 = vpop.permute.xlu1 %2786 }
 0x49e   :  { %v3111_v14 = vadd.f32 %v2963_v58, %v2959_v39  ;;  %v3154_v35 = vadd.f32 %v2964_v20, %v2960_v27  ;;  %v3197_v1 = vadd.f32 %v2965_v42, %v2961_v5  ;;  %v3240_v4 = vadd.f32 %v2966_v33, %v2962_v30  ;;  %v6662_v42 = vld [vmem:[#allocation6 + $0x170] sm:$0xff]  ;;  %v6664_v27 = vld [vmem:[#allocation6 + $0x178] sm:$0xff] }
 0x49f   :  { %v6652_v43 = vpop.permute.xlu2 %2841  ;;  %v2971_v34 = vmul.f32 %v2787_v18, %v7227_v60  ;;  %v2972_v47 = vmul.f32 %v2787_v18, %v7228_v59  ;;  %v2973_v2 = vmul.f32 %v2787_v18, %v7229_v41  ;;  %v2974_v63 = vmul.f32 %v2787_v18, %v7230_v50 }
 0x4a0   :  { %v3112_v56 = vadd.f32 %v3111_v14, %v2967_v9  ;;  %v3155_v29 = vadd.f32 %v3154_v35, %v2968_v22  ;;  %v3198_v39 = vadd.f32 %v3197_v1, %v2969_v61  ;;  %v3241_v20 = vadd.f32 %v3240_v4, %v2970_v52  ;;  %v6686_v9 = vld [vmem:[#allocation6 + $0xd0] sm:$0xff]  ;;  %v6688_v22 = vld [vmem:[#allocation6 + $0xd8] sm:$0xff] }
 0x4a1   :  { %v7231_v5 = vunpack.c.l.bf16 %v6448_v11  ;;  %v6674_v58 = vmul.f32 %v6562_v10, %v7232_v36  ;;  %v6679_v18 = vmul.f32 %v6562_v10, %v7233_v19  ;;  %v7234_v1 = vunpack.c.h.bf16 %v6450_v44 }
 0x4a2   :  { %v3113_v61 = vadd.f32 %v3112_v56, %v2971_v34  ;;  %v3156_v17 = vadd.f32 %v3155_v29, %v2972_v47  ;;  %v3199_v11 = vadd.f32 %v3198_v39, %v2973_v2  ;;  %v3242_v52 = vadd.f32 %v3241_v20, %v2974_v63 }
 0x4a3   :  { %v6669_v30 = vmul.f32 %v6562_v10, %v7231_v5  ;;  %v6684_v33 = vmul.f32 %v6562_v10, %v7234_v1  ;;  %v2802_v35 = vpop.permute.xlu0 %2801  ;;  %3377 = vxpose.xlu0.b32.start.end [1/1] (short) (narrow) %v3375_v46, 8  ;;  %v2709_v4 = vunpack.c.l.bf16 %v6662_v42  ;;  %v2710_v60 = vunpack.c.h.bf16 %v6662_v42  ;;  %v116_v42 = vld [vmem:[#allocation6 + $0x150] sm:$0xff] }
 0x4a4   :  { %v2711_v44 = vunpack.c.l.bf16 %v6664_v27  ;;  %v2712_v10 = vunpack.c.h.bf16 %v6664_v27  ;;  %v2669_v59 = vunpack.c.l.bf16 %v6686_v9  ;;  %v2670_v41 = vunpack.c.h.bf16 %v6686_v9 }
 0x4a5   :  { %v2807_v14 = vpop.permute.xlu1 %2806  ;;  %v2671_v34 = vunpack.c.l.bf16 %v6688_v22  ;;  %v2672_v47 = vunpack.c.h.bf16 %v6688_v22  ;;  %v3114_v2 = vadd.f32 %v3113_v61, %v6503_v55  ;;  %v3157_v46 = vadd.f32 %v3156_v17, %v6506_v23  ;;  %v6714_v61 = vld [vmem:[#allocation6 + $0xc0] sm:$0xff]  ;;  %v6716_v17 = vld [vmem:[#allocation6 + $0xc8] sm:$0xff] }
 0x4a6   :  { %v3200_v50 = vadd.f32 %v3199_v11, %v6509_v53  ;;  %v3243_v63 = vadd.f32 %v3242_v52, %v6512_v37  ;;  %v7235_v56 = vunpack.c.l.bf16 %v6548_v12  ;;  %v7236_v39 = vunpack.c.h.bf16 %v6548_v12 }
 0x4a7   :  { %v7237_v5 = vunpack.c.l.bf16 %v6552_v21  ;;  %v7238_v19 = vunpack.c.h.bf16 %v6552_v21  ;;  %v3115_v55 = vadd.f32 %v3114_v2, %v6535_v54  ;;  %v3158_v23 = vadd.f32 %v3157_v46, %v6538_v48  ;;  %v6726_v2 = vpop.permute.xlu2 %2856 }
 0x4a8   :  { %v2983_v29 = vmul.f32 %v2802_v35, %v7235_v56  ;;  %v2984_v20 = vmul.f32 %v2802_v35, %v7236_v39  ;;  %v3201_v53 = vadd.f32 %v3200_v50, %v6541_v45  ;;  %v3244_v37 = vadd.f32 %v3243_v63, %v6544_v57 }
 0x4a9   :  { %v2985_v36 = vmul.f32 %v2802_v35, %v7237_v5  ;;  %v2986_v1 = vmul.f32 %v2802_v35, %v7238_v19  ;;  %v7239_v12 = vunpack.c.l.bf16 %v6527_v26  ;;  %v7240_v52 = vunpack.c.h.bf16 %v6527_v26 }
 0x4aa   :  { %v7241_v21 = vunpack.c.l.bf16 %v6546_v62  ;;  %v7242_v54 = vunpack.c.h.bf16 %v6546_v62  ;;  %v3116_v45 = vadd.f32 %v3115_v55, %v2983_v29  ;;  %v3159_v57 = vadd.f32 %v3158_v23, %v2984_v20  ;;  %v4640_v62 = vld [vmem:[%s7011_s5 + $0x70] sm:$0xff] }
 0x4ab   :  { %v2987_v11 = vmul.f32 %v2807_v14, %v7239_v12  ;;  %v2988_v56 = vmul.f32 %v2807_v14, %v7240_v52  ;;  %v3202_v46 = vadd.f32 %v3201_v53, %v2985_v36  ;;  %v3245_v50 = vadd.f32 %v3244_v37, %v2986_v1  ;;  %v2817_v39 = vpop.permute.xlu0 %2816  ;;  %3700 = vmatpush.bf16.msrb.mxu2 %v4640_v62 }
 0x4ac   :  { %v2989_v35 = vmul.f32 %v2807_v14, %v7241_v21  ;;  %v2990_v48 = vmul.f32 %v2807_v14, %v7242_v54  ;;  %v2665_v5 = vunpack.c.l.bf16 %v6714_v61  ;;  %v2666_v19 = vunpack.c.h.bf16 %v6714_v61  ;;  %v4648_v14 = vld [vmem:[%s7011_s5 + $0xb0] sm:$0xff] }
 0x4ad   :  { %v2822_v63 = vpop.permute.xlu1 %2821  ;;  %v2667_v26 = vunpack.c.l.bf16 %v6716_v17  ;;  %v2668_v12 = vunpack.c.h.bf16 %v6716_v17  ;;  %v3117_v29 = vadd.f32 %v3116_v45, %v2987_v11  ;;  %v3160_v20 = vadd.f32 %v3159_v57, %v2988_v56  ;;  %3713 = vmatpush.bf16.msrb.mxu3 %v4648_v14 }
 0x4ae   :  { %v3203_v36 = vadd.f32 %v3202_v46, %v2989_v35  ;;  %v3246_v1 = vadd.f32 %v3245_v50, %v2990_v48  ;;  %v7243_v55 = vunpack.c.l.bf16 %v6473_v15  ;;  %v7244_v53 = vunpack.c.h.bf16 %v6473_v15  ;;  %v6771_v46 = vld [vmem:[#allocation6 + $0x1a0] sm:$0xff] }
 0x4af   :  { %v7245_v61 = vunpack.c.l.bf16 %v6479_v24  ;;  %v7246_v11 = vunpack.c.h.bf16 %v6479_v24  ;;  %v3118_v56 = vadd.f32 %v3117_v29, %v6575_v51  ;;  %v3161_v21 = vadd.f32 %v3160_v20, %v6580_v13  ;;  %v6773_v13 = vld [vmem:[#allocation6 + $0x1a8] sm:$0xff] }
 0x4b0   :  { %v6741_v23 = vmul.f32 %v6652_v43, %v7243_v55  ;;  %v6746_v37 = vmul.f32 %v6652_v43, %v7244_v53  ;;  %v3204_v15 = vadd.f32 %v3203_v36, %v6599_v7  ;;  %v3247_v35 = vadd.f32 %v3246_v1, %v6604_v6  ;;  %3283 = vxpose.xlu1.b32.start.end [1/1] (short) (narrow) %v6418_v49, 8  ;;  %v6783_v1 = vld [vmem:[#allocation6 + $0x100] sm:$0xff]  ;;  %v6785_v55 = vld [vmem:[#allocation6 + $0x108] sm:$0xff] }
 0x4b1   :  { %v6751_v17 = vmul.f32 %v6652_v43, %v7245_v61  ;;  %v6756_v52 = vmul.f32 %v6652_v43, %v7246_v11  ;;  %v2995_v54 = vmul.f32 %v2817_v39, %v2653_v32  ;;  %v7247_v48 = vunpack.c.h.bf16 %v6594_v38  ;;  %v104_v11 = vld [vmem:[#allocation6 + $0xf0] sm:$0xff] }
 0x4b2   :  { %v7248_v43 = vunpack.c.l.bf16 %v6610_v16  ;;  %v7249_v57 = vunpack.c.h.bf16 %v6610_v16  ;;  %v7250_v7 = vunpack.c.l.bf16 %v6570_v3  ;;  %v7251_v6 = vunpack.c.h.bf16 %v6570_v3 }
 0x4b3   :  { %v2996_v24 = vmul.f32 %v2817_v39, %v7247_v48  ;;  %v7252_v38 = vunpack.c.l.bf16 %v6592_v25  ;;  %v7253_v62 = vunpack.c.h.bf16 %v6592_v25  ;;  %v3119_v20 = vadd.f32 %v3118_v56, %v2995_v54  ;;  %v105_v48 = vld [vmem:[#allocation6 + $0xf8] sm:$0xff]  ;;  %v2872_v54 = vpop.permute.xlu2 %2871 }
 0x4b4   :  { %v2997_v45 = vmul.f32 %v2817_v39, %v7248_v43  ;;  %v2998_v51 = vmul.f32 %v2817_v39, %v7249_v57  ;;  %v2999_v49 = vmul.f32 %v2822_v63, %v7250_v7  ;;  %v3000_v32 = vmul.f32 %v2822_v63, %v7251_v6 }
 0x4b5   :  { %v3001_v50 = vmul.f32 %v2822_v63, %v7252_v38  ;;  %v3002_v29 = vmul.f32 %v2822_v63, %v7253_v62  ;;  %v3162_v16 = vadd.f32 %v3161_v21, %v2996_v24  ;;  %v2721_v14 = vunpack.c.l.bf16 %v6771_v46 }
 0x4b6   :  { %v3205_v39 = vadd.f32 %v3204_v15, %v2997_v45  ;;  %v3248_v36 = vadd.f32 %v3247_v35, %v2998_v51  ;;  %v2722_v53 = vunpack.c.h.bf16 %v6771_v46  ;;  %v2723_v3 = vunpack.c.l.bf16 %v6773_v13  ;;  %v2837_v15 = vpop.permute.xlu1 %2836  ;;  %v2832_v35 = vpop.permute.xlu0 %2831 }
 0x4b7   :  { %v2724_v61 = vunpack.c.h.bf16 %v6773_v13  ;;  %v3120_v25 = vadd.f32 %v3119_v20, %v2999_v49  ;;  %v3163_v63 = vadd.f32 %v3162_v16, %v3000_v32  ;;  %v2681_v24 = vunpack.c.l.bf16 %v6783_v1 }
 0x4b8   :  { %v3206_v56 = vadd.f32 %v3205_v39, %v3001_v50  ;;  %v3249_v21 = vadd.f32 %v3248_v36, %v3002_v29  ;;  %v2682_v43 = vunpack.c.h.bf16 %v6783_v1  ;;  %v2683_v45 = vunpack.c.l.bf16 %v6785_v55 }
 0x4b9   :  { %v2684_v57 = vunpack.c.h.bf16 %v6785_v55  ;;  %v2677_v51 = vunpack.c.l.bf16 %v104_v11  ;;  %v2678_v7 = vunpack.c.h.bf16 %v104_v11  ;;  %v2679_v6 = vunpack.c.l.bf16 %v105_v48 }
 0x4ba   :  { %v2680_v38 = vunpack.c.h.bf16 %v105_v48  ;;  %v3121_v49 = vadd.f32 %v3120_v25, %v6669_v30  ;;  %v3164_v32 = vadd.f32 %v3163_v63, %v6674_v58  ;;  %v3207_v50 = vadd.f32 %v3206_v56, %v6679_v18 }
 0x4bb   :  { %v3250_v62 = vadd.f32 %v3249_v21, %v6684_v33  ;;  %v3007_v29 = vmul.f32 %v2832_v35, %v2665_v5  ;;  %v3008_v20 = vmul.f32 %v2832_v35, %v2666_v19  ;;  %v3009_v16 = vmul.f32 %v2832_v35, %v2667_v26  ;;  %v6807_v5 = vld [vmem:[#allocation6 + $0x1d0] sm:$0xff]  ;;  %v6809_v19 = vld [vmem:[#allocation6 + $0x1d8] sm:$0xff] }
 0x4bc   :  { %v3010_v39 = vmul.f32 %v2832_v35, %v2668_v12  ;;  %v3011_v36 = vmul.f32 %v2837_v15, %v2669_v59  ;;  %v3012_v1 = vmul.f32 %v2837_v15, %v2670_v41  ;;  %v3013_v55 = vmul.f32 %v2837_v15, %v2671_v34 }
 0x4bd   :  { %v3014_v30 = vmul.f32 %v2837_v15, %v2672_v47  ;;  %v3122_v58 = vadd.f32 %v3121_v49, %v3007_v29  ;;  %v3165_v18 = vadd.f32 %v3164_v32, %v3008_v20  ;;  %v3208_v11 = vadd.f32 %v3207_v50, %v3009_v16 }
 0x4be   :  { %v3251_v33 = vadd.f32 %v3250_v62, %v3010_v39  ;;  %v7254_v26 = vunpack.c.l.bf16 %v6522_v31  ;;  %v7255_v9 = vunpack.c.h.bf16 %v6522_v31  ;;  %v7256_v34 = vunpack.c.l.bf16 %v6525_v0  ;;  %v2852_v21 = vpop.permute.xlu1 %2851  ;;  %v2847_v15 = vpop.permute.xlu0 %2846 }
 0x4bf   :  { %v7257_v47 = vunpack.c.h.bf16 %v6525_v0  ;;  %v3123_v48 = vadd.f32 %v3122_v58, %v3011_v36  ;;  %v3166_v25 = vadd.f32 %v3165_v18, %v3012_v1  ;;  %v3209_v63 = vadd.f32 %v3208_v11, %v3013_v55  ;;  %v2887_v36 = vpop.permute.xlu2 %2886 }
 0x4c0   :  { %v3027_v59 = vmul.f32 %v6726_v2, %v7254_v26  ;;  %v3028_v41 = vmul.f32 %v6726_v2, %v7255_v9  ;;  %v3029_v22 = vmul.f32 %v6726_v2, %v7256_v34  ;;  %v3252_v56 = vadd.f32 %v3251_v33, %v3014_v30  ;;  %v110_v26 = vld [vmem:[#allocation6 + $0x120] sm:$0xff]  ;;  %v111_v9 = vld [vmem:[#allocation6 + $0x128] sm:$0xff] }
 0x4c1   :  { %v3030_v12 = vmul.f32 %v6726_v2, %v7257_v47  ;;  %v2733_v35 = vunpack.c.l.bf16 %v6807_v5  ;;  %v2734_v31 = vunpack.c.h.bf16 %v6807_v5  ;;  %v2735_v49 = vunpack.c.l.bf16 %v6809_v19 }
 0x4c2   :  { %v2736_v32 = vunpack.c.h.bf16 %v6809_v19  ;;  %v7258_v50 = vunpack.c.l.bf16 %v6560_v8  ;;  %v7259_v0 = vunpack.c.h.bf16 %v6560_v8  ;;  %v7260_v29 = vunpack.c.l.bf16 %v6568_v28  ;;  %v4638_v19 = vld [vmem:[%s7011_s5 + $0x60] sm:$0xff] }
 0x4c3   :  { %v7261_v16 = vunpack.c.h.bf16 %v6568_v28  ;;  %v3124_v1 = vadd.f32 %v3123_v48, %v6741_v23  ;;  %v3167_v55 = vadd.f32 %v3166_v25, %v6746_v37  ;;  %v3210_v30 = vadd.f32 %v3209_v63, %v6751_v17  ;;  %v112_v48 = vld [vmem:[#allocation6 + $0x130] sm:$0xff]  ;;  %v113_v37 = vld [vmem:[#allocation6 + $0x138] sm:$0xff] }
 0x4c4   :  { %v6829_v62 = vmul.f32 %v2872_v54, %v7258_v50  ;;  %v6833_v2 = vmul.f32 %v2872_v54, %v7259_v0  ;;  %v6837_v20 = vmul.f32 %v2872_v54, %v7260_v29  ;;  %v3253_v58 = vadd.f32 %v3252_v56, %v6756_v52 }
 0x4c5   :  { %v6841_v39 = vmul.f32 %v2872_v54, %v7261_v16  ;;  %v3019_v8 = vmul.f32 %v2847_v15, %v2677_v51  ;;  %v3020_v18 = vmul.f32 %v2847_v15, %v2678_v7  ;;  %v3021_v11 = vmul.f32 %v2847_v15, %v2679_v6 }
 0x4c6   :  { %v3022_v33 = vmul.f32 %v2847_v15, %v2680_v38  ;;  %v3023_v34 = vmul.f32 %v2852_v21, %v2681_v24  ;;  %v3024_v47 = vmul.f32 %v2852_v21, %v2682_v43  ;;  %v3025_v28 = vmul.f32 %v2852_v21, %v2683_v45  ;;  %v2867_v56 = vpop.permute.xlu1 %2866  ;;  %v2862_v15 = vpop.permute.xlu0 %2861  ;;  %v4631_v24 = vld [vmem:[%s7011_s5 + $0x28] sm:$0xff] }
 0x4c7   :  { %v3026_v54 = vmul.f32 %v2852_v21, %v2684_v57  ;;  %v3125_v50 = vadd.f32 %v3124_v1, %v3019_v8  ;;  %v3168_v0 = vadd.f32 %v3167_v55, %v3020_v18  ;;  %v3211_v29 = vadd.f32 %v3210_v30, %v3021_v11  ;;  %3688 = vmatpush.bf16.msrb.mxu1 %v4631_v24 }
 0x4c8   :  { %v3254_v23 = vadd.f32 %v3253_v58, %v3022_v33  ;;  %v2689_v25 = vunpack.c.l.bf16 %v110_v26  ;;  %v2690_v17 = vunpack.c.h.bf16 %v110_v26  ;;  %v2691_v63 = vunpack.c.l.bf16 %v111_v9 }
 0x4c9   :  { %v2692_v52 = vunpack.c.h.bf16 %v111_v9  ;;  %v3126_v51 = vadd.f32 %v3125_v50, %v3023_v34  ;;  %v3169_v7 = vadd.f32 %v3168_v0, %v3024_v47  ;;  %v3212_v6 = vadd.f32 %v3211_v29, %v3025_v28  ;;  %v2902_v34 = vpop.permute.xlu2 %2901  ;;  %v118_v0 = vld [vmem:[#allocation6 + $0x160] sm:$0xff] }
 0x4ca   :  { %v3255_v38 = vadd.f32 %v3254_v23, %v3026_v54  ;;  %v2693_v43 = vunpack.c.l.bf16 %v112_v48  ;;  %v2694_v45 = vunpack.c.h.bf16 %v112_v48  ;;  %v2695_v57 = vunpack.c.l.bf16 %v113_v37  ;;  %v4639_v23 = vld [vmem:[%s7011_s5 + $0x68] sm:$0xff] }
 0x4cb   :  { %v2696_v21 = vunpack.c.h.bf16 %v113_v37  ;;  %v6852_v16 = vmul.f32 %v2887_v36, %v2709_v4  ;;  %v6856_v1 = vmul.f32 %v2887_v36, %v2710_v60  ;;  %v6860_v55 = vmul.f32 %v2887_v36, %v2711_v44  ;;  %v117_v60 = vld [vmem:[#allocation6 + $0x158] sm:$0xff]  ;;  %v4647_v48 = vld [vmem:[%s7011_s5 + $0xa8] sm:$0xff]  ;;  %3701 = vmatpush.bf16.msrb.mxu2 %v4639_v23 }
 0x4cc   :  { %v6864_v30 = vmul.f32 %v2887_v36, %v2712_v10  ;;  %v3127_v58 = vadd.f32 %v3126_v51, %v3027_v59  ;;  %v3170_v8 = vadd.f32 %v3169_v7, %v3028_v41  ;;  %v3213_v18 = vadd.f32 %v3212_v6, %v3029_v22  ;;  %v119_v59 = vld [vmem:[#allocation6 + $0x168] sm:$0xff]  ;;  %3714 = vmatpush.bf16.msrb.mxu3 %v4647_v48 }
 0x4cd   :  { %v3256_v11 = vadd.f32 %v3255_v38, %v3030_v12  ;;  %v3031_v33 = vmul.f32 %v2862_v15, %v2689_v25  ;;  %v3032_v4 = vmul.f32 %v2862_v15, %v2690_v17  ;;  %v3033_v26 = vmul.f32 %v2862_v15, %v2691_v63 }
 0x4ce   :  { %v3034_v9 = vmul.f32 %v2862_v15, %v2692_v52  ;;  %v3035_v47 = vmul.f32 %v2867_v56, %v2693_v43  ;;  %v3036_v28 = vmul.f32 %v2867_v56, %v2694_v45  ;;  %v3037_v44 = vmul.f32 %v2867_v56, %v2695_v57  ;;  %v2882_v52 = vpop.permute.xlu1 %2881  ;;  %v2877_v51 = vpop.permute.xlu0 %2876 }
 0x4cf   :  { %v3038_v54 = vmul.f32 %v2867_v56, %v2696_v21  ;;  %v3128_v50 = vadd.f32 %v3127_v58, %v3031_v33  ;;  %v3171_v27 = vadd.f32 %v3170_v8, %v3032_v4  ;;  %v3214_v10 = vadd.f32 %v3213_v18, %v3033_v26  ;;  %3702 = vmatpush.bf16.msrb.mxu2 %v4638_v19 }
 0x4d0   :  { %v3257_v36 = vadd.f32 %v3256_v11, %v3034_v9  ;;  %v2701_v41 = vunpack.c.l.bf16 %v116_v42  ;;  %v2702_v22 = vunpack.c.h.bf16 %v116_v42  ;;  %v2703_v12 = vunpack.c.l.bf16 %v117_v60  ;;  %v122_v11 = vld [vmem:[#allocation6 + $0x180] sm:$0xff] }
 0x4d1   :  { %v2704_v29 = vunpack.c.h.bf16 %v117_v60  ;;  %v3129_v37 = vadd.f32 %v3128_v50, %v3035_v47  ;;  %v3172_v25 = vadd.f32 %v3171_v27, %v3036_v28  ;;  %v3215_v17 = vadd.f32 %v3214_v10, %v3037_v44  ;;  %v124_v60 = vld [vmem:[#allocation6 + $0x190] sm:$0xff]  ;;  %v6892_v44 = vld [vmem:[#allocation6 + $0x1c0] sm:$0xff] }
 0x4d2   :  { %v3258_v63 = vadd.f32 %v3257_v36, %v3038_v54  ;;  %v2705_v7 = vunpack.c.l.bf16 %v118_v0  ;;  %v2706_v6 = vunpack.c.h.bf16 %v118_v0  ;;  %v2707_v38 = vunpack.c.l.bf16 %v119_v59 }
 0x4d3   :  { %v2708_v56 = vunpack.c.h.bf16 %v119_v59  ;;  %v6874_v15 = vmul.f32 %v2902_v34, %v2721_v14  ;;  %v6878_v24 = vmul.f32 %v2902_v34, %v2722_v53  ;;  %v6882_v43 = vmul.f32 %v2902_v34, %v2723_v3  ;;  %v123_v3 = vld [vmem:[#allocation6 + $0x188] sm:$0xff] }
 0x4d4   :  { %v6886_v45 = vmul.f32 %v2902_v34, %v2724_v61  ;;  %v3130_v57 = vadd.f32 %v3129_v37, %v6829_v62  ;;  %v3173_v21 = vadd.f32 %v3172_v25, %v6833_v2  ;;  %v3216_v14 = vadd.f32 %v3215_v17, %v6837_v20  ;;  %v125_v2 = vld [vmem:[#allocation6 + $0x198] sm:$0xff]  ;;  %v2917_v34 = vpop.permute.xlu2 %2916 }
 0x4d5   :  { %v3259_v58 = vadd.f32 %v3258_v63, %v6841_v39  ;;  %v3043_v46 = vmul.f32 %v2877_v51, %v2701_v41  ;;  %v3044_v53 = vmul.f32 %v2877_v51, %v2702_v22  ;;  %v3045_v8 = vmul.f32 %v2877_v51, %v2703_v12 }
 0x4d6   :  { %v3046_v18 = vmul.f32 %v2877_v51, %v2704_v29  ;;  %v3047_v33 = vmul.f32 %v2882_v52, %v2705_v7  ;;  %v3048_v4 = vmul.f32 %v2882_v52, %v2706_v6  ;;  %v3049_v13 = vmul.f32 %v2882_v52, %v2707_v38  ;;  %v2897_v36 = vpop.permute.xlu1 %2896  ;;  %v2892_v0 = vpop.permute.xlu0 %2891  ;;  %v129_v6 = vld [vmem:[#allocation6 + $0x1b8] sm:$0xff] }
 0x4d7   :  { %v3050_v61 = vmul.f32 %v2882_v52, %v2708_v56  ;;  %v3131_v26 = vadd.f32 %v3130_v57, %v3043_v46  ;;  %v3174_v9 = vadd.f32 %v3173_v21, %v3044_v53  ;;  %v3217_v42 = vadd.f32 %v3216_v14, %v3045_v8  ;;  %v131_v46 = vld [vmem:[#allocation6 + $0x1c8] sm:$0xff] }
 0x4d8   :  { %v3260_v62 = vadd.f32 %v3259_v58, %v3046_v18  ;;  %v2713_v20 = vunpack.c.l.bf16 %v122_v11  ;;  %v2714_v47 = vunpack.c.h.bf16 %v122_v11  ;;  %v2715_v39 = vunpack.c.l.bf16 %v123_v3  ;;  %v6913_v18 = vld [vmem:[#allocation6 + $0x1f8] sm:$0xff] }
 0x4d9   :  { %v2716_v28 = vunpack.c.h.bf16 %v123_v3  ;;  %v3132_v54 = vadd.f32 %v3131_v26, %v3047_v33  ;;  %v3175_v50 = vadd.f32 %v3174_v9, %v3048_v4  ;;  %v3218_v27 = vadd.f32 %v3217_v42, %v3049_v13 }
 0x4da   :  { %v3261_v10 = vadd.f32 %v3260_v62, %v3050_v61  ;;  %v2717_v59 = vunpack.c.l.bf16 %v124_v60  ;;  %v2718_v41 = vunpack.c.h.bf16 %v124_v60  ;;  %v2719_v22 = vunpack.c.l.bf16 %v125_v2 }
 0x4db   :  { %v2720_v12 = vunpack.c.h.bf16 %v125_v2  ;;  %v6896_v29 = vmul.f32 %v2917_v34, %v2733_v35  ;;  %v6900_v23 = vmul.f32 %v2917_v34, %v2734_v31  ;;  %v6904_v48 = vmul.f32 %v2917_v34, %v2735_v49  ;;  %v128_v31 = vld [vmem:[#allocation6 + $0x1b0] sm:$0xff] }
 0x4dc   :  { %v2729_v37 = vunpack.c.l.bf16 %v6892_v44  ;;  %v3133_v25 = vadd.f32 %v3132_v54, %v6852_v16  ;;  %v3176_v17 = vadd.f32 %v3175_v50, %v6856_v1  ;;  %v3219_v63 = vadd.f32 %v3218_v27, %v6860_v55 }
 0x4dd   :  { %v3262_v52 = vadd.f32 %v3261_v10, %v6864_v30  ;;  %v3055_v35 = vmul.f32 %v2892_v0, %v2713_v20  ;;  %v3056_v51 = vmul.f32 %v2892_v0, %v2714_v47  ;;  %v3057_v7 = vmul.f32 %v2892_v0, %v2715_v39  ;;  %v6911_v30 = vld [vmem:[#allocation6 + $0x1f0] sm:$0xff]  ;;  %v4630_v39 = vld [vmem:[%s7011_s5 + $0x20] sm:$0xff] }
 0x4de   :  { %v3058_v5 = vmul.f32 %v2892_v0, %v2716_v28  ;;  %v3059_v38 = vmul.f32 %v2897_v36, %v2717_v59  ;;  %v3060_v56 = vmul.f32 %v2897_v36, %v2718_v41  ;;  %v3061_v49 = vmul.f32 %v2897_v36, %v2719_v22  ;;  %v2912_v13 = vpop.permute.xlu1 %2911  ;;  %v2907_v61 = vpop.permute.xlu0 %2906  ;;  %v134_v0 = vld [vmem:[#allocation6 + $0x1e0] sm:$0xff]  ;;  %v135_v59 = vld [vmem:[#allocation6 + $0x1e8] sm:$0xff]  ;;  %3689 = vmatpush.bf16.msrb.mxu1 %v4630_v39  ;;  %v4629_v41 = vld [vmem:[%s7011_s5 + $0x18] sm:$0xff] }
 0x4df   :  { %v3062_v57 = vmul.f32 %v2897_v36, %v2720_v12  ;;  %v3134_v21 = vadd.f32 %v3133_v25, %v3055_v35  ;;  %v3177_v14 = vadd.f32 %v3176_v17, %v3056_v51  ;;  %v3220_v58 = vadd.f32 %v3219_v63, %v3057_v7  ;;  %v4645_v35 = vld [vmem:[%s7011_s5 + $0x98] sm:$0xff] }
 0x4e0   :  { %v3263_v16 = vadd.f32 %v3262_v52, %v3058_v5  ;;  %v2725_v1 = vunpack.c.l.bf16 %v128_v31  ;;  %v2726_v53 = vunpack.c.h.bf16 %v128_v31  ;;  %v2727_v55 = vunpack.c.l.bf16 %v129_v6 }
 0x4e1   :  { %v2728_v8 = vunpack.c.h.bf16 %v129_v6  ;;  %v3135_v11 = vadd.f32 %v3134_v21, %v3059_v38  ;;  %v3178_v3 = vadd.f32 %v3177_v14, %v3060_v56  ;;  %v3221_v33 = vadd.f32 %v3220_v58, %v3061_v49  ;;  %v4628_v21 = vld [vmem:[%s7011_s5 + $0x10] sm:$0xff] }
 0x4e2   :  { %v3264_v4 = vadd.f32 %v3263_v16, %v3062_v57  ;;  %v3078_v26 = vmul.f32 %v2917_v34, %v2736_v32  ;;  %v2730_v9 = vunpack.c.h.bf16 %v6892_v44  ;;  %v2731_v42 = vunpack.c.l.bf16 %v131_v46  ;;  %v4646_v32 = vld [vmem:[%s7011_s5 + $0xa0] sm:$0xff]  ;;  %3690 = vmatpush.bf16.msrb.mxu1 %v4629_v41 }
 0x4e3   :  { %v2732_v62 = vunpack.c.h.bf16 %v131_v46  ;;  %v3071_v60 = vmul.f32 %v2912_v13, %v2729_v37  ;;  %v2741_v2 = vunpack.c.l.bf16 %v6911_v30  ;;  %v2742_v20 = vunpack.c.h.bf16 %v6911_v30  ;;  %3715 = vmatpush.bf16.msrb.mxu3 %v4646_v32  ;;  %v139_v37 = vld [vmem:[#allocation6 + $0x208] sm:$0xff] }
 0x4e4   :  { %v2743_v47 = vunpack.c.l.bf16 %v6913_v18  ;;  %v3136_v34 = vadd.f32 %v3135_v11, %v6874_v15  ;;  %v3179_v28 = vadd.f32 %v3178_v3, %v6878_v24  ;;  %v3222_v44 = vadd.f32 %v3221_v33, %v6882_v43  ;;  %v4637_v43 = vld [vmem:[%s7011_s5 + $0x58] sm:$0xff] }
 0x4e5   :  { %v3265_v54 = vadd.f32 %v3264_v4, %v6886_v45  ;;  %v3067_v50 = vmul.f32 %v2907_v61, %v2725_v1  ;;  %v3068_v27 = vmul.f32 %v2907_v61, %v2726_v53  ;;  %v3069_v10 = vmul.f32 %v2907_v61, %v2727_v55  ;;  %v138_v45 = vld [vmem:[#allocation6 + $0x200] sm:$0xff]  ;;  %3703 = vmatpush.bf16.msrb.mxu2 %v4637_v43  ;;  %v140_v4 = vld [vmem:[#allocation6 + $0x210] sm:$0xff] }
 0x4e6   :  { %v3070_v36 = vmul.f32 %v2907_v61, %v2728_v8  ;;  %v3072_v22 = vmul.f32 %v2912_v13, %v2730_v9  ;;  %v3073_v12 = vmul.f32 %v2912_v13, %v2731_v42  ;;  %v3074_v15 = vmul.f32 %v2912_v13, %v2732_v62  ;;  %v2922_v57 = vpop.permute.xlu0 %2921  ;;  %v2927_v1 = vpop.permute.xlu1 %2926  ;;  %v141_v13 = vld [vmem:[#allocation6 + $0x218] sm:$0xff]  ;;  %3691 = vmatpush.bf16.msrb.mxu1 %v4628_v21  ;;  %v143_v21 = vld [vmem:[#allocation6 + $0x228] sm:$0xff] }
 0x4e7   :  { %v2744_v24 = vunpack.c.h.bf16 %v6913_v18  ;;  %v3137_v25 = vadd.f32 %v3136_v34, %v3067_v50  ;;  %v3180_v17 = vadd.f32 %v3179_v28, %v3068_v27  ;;  %v3223_v63 = vadd.f32 %v3222_v44, %v3069_v10  ;;  %3716 = vmatpush.bf16.msrb.mxu3 %v4645_v35  ;;  %v4635_v35 = vld [vmem:[%s7011_s5 + $0x48] sm:$0xff] }
 0x4e8   :  { %v3266_v52 = vadd.f32 %v3265_v54, %v3070_v36  ;;  %v2737_v51 = vunpack.c.l.bf16 %v134_v0  ;;  %v2738_v7 = vunpack.c.h.bf16 %v134_v0  ;;  %v2739_v5 = vunpack.c.l.bf16 %v135_v59 }
 0x4e9   :  { %v2740_v31 = vunpack.c.h.bf16 %v135_v59  ;;  %v3138_v6 = vadd.f32 %v3137_v25, %v3071_v60  ;;  %v3181_v38 = vadd.f32 %v3180_v17, %v3072_v22  ;;  %v3224_v56 = vadd.f32 %v3223_v63, %v3073_v12  ;;  %v2932_v60 = vpop.permute.xlu2 %2931  ;;  %v4636_v17 = vld [vmem:[%s7011_s5 + $0x50] sm:$0xff] }
 0x4ea   :  { %v3267_v49 = vadd.f32 %v3266_v52, %v3074_v15  ;;  %v2745_v14 = vunpack.c.l.bf16 %v138_v45  ;;  %v2746_v58 = vunpack.c.h.bf16 %v138_v45  ;;  %v2747_v16 = vunpack.c.l.bf16 %v139_v37  ;;  %v4644_v63 = vld [vmem:[%s7011_s5 + $0x90] sm:$0xff]  ;;  %v4627_v52 = vld [vmem:[%s7011_s5 + $0x8] sm:$0xff]  ;;  %3704 = vmatpush.bf16.msrb.mxu2 %v4636_v17 }
 0x4eb   :  { %v2748_v46 = vunpack.c.h.bf16 %v139_v37  ;;  %v3139_v53 = vadd.f32 %v3138_v6, %v6896_v29  ;;  %v3182_v55 = vadd.f32 %v3181_v38, %v6900_v23  ;;  %v3225_v8 = vadd.f32 %v3224_v56, %v6904_v48  ;;  %3717 = vmatpush.bf16.msrb.mxu3 %v4644_v63  ;;  %3692 = vmatpush.bf16.msrb.mxu1 %v4627_v52 }
 0x4ec   :  { %v3268_v30 = vadd.f32 %v3267_v49, %v3078_v26  ;;  %v3079_v18 = vmul.f32 %v2922_v57, %v2737_v51  ;;  %v3080_v11 = vmul.f32 %v2922_v57, %v2738_v7  ;;  %v3081_v3 = vmul.f32 %v2922_v57, %v2739_v5  ;;  %v4643_v51 = vld [vmem:[%s7011_s5 + $0x88] sm:$0xff]  ;;  %v4626_v7 = vld [vmem:[%s7011_s5] sm:$0xff] }
 0x4ed   :  { %v3082_v33 = vmul.f32 %v2922_v57, %v2740_v31  ;;  %v3083_v61 = vmul.f32 %v2927_v1, %v2741_v2  ;;  %v3084_v9 = vmul.f32 %v2927_v1, %v2742_v20  ;;  %v3085_v42 = vmul.f32 %v2927_v1, %v2743_v47  ;;  %v4634_v5 = vld [vmem:[%s7011_s5 + $0x40] sm:$0xff] }
 0x4ee   :  { %v3086_v62 = vmul.f32 %v2927_v1, %v2744_v24  ;;  %v3140_v39 = vadd.f32 %v3139_v53, %v3079_v18  ;;  %v3183_v29 = vadd.f32 %v3182_v55, %v3080_v11  ;;  %v3226_v19 = vadd.f32 %v3225_v8, %v3081_v3  ;;  %v2937_v47 = vpop.permute.xlu0 %2936  ;;  %3705 = vmatpush.bf16.msrb.mxu2 %v4635_v35  ;;  %v4642_v31 = vld [vmem:[%s7011_s5 + $0x80] sm:$0xff]  ;;  %v2942_v6 = vpop.permute.xlu1 %2941  ;;  %v147_v55 = vld [vmem:[#allocation6 + $0x248] sm:$0xff] }
 0x4ef   :  { %v3269_v23 = vadd.f32 %v3268_v30, %v3082_v33  ;;  %v2749_v32 = vunpack.c.l.bf16 %v140_v4  ;;  %v2750_v48 = vunpack.c.h.bf16 %v140_v4  ;;  %v2751_v26 = vunpack.c.l.bf16 %v141_v13  ;;  %3718 = vmatpush.bf16.msrb.mxu3 %v4643_v51  ;;  %3693 = vmatpush.bf16.msrb.mxu1 %v4626_v7  ;;  %v142_v57 = vld [vmem:[#allocation6 + $0x220] sm:$0xff] }
 0x4f0   :  { %v2752_v34 = vunpack.c.h.bf16 %v141_v13  ;;  %v3141_v28 = vadd.f32 %v3140_v39, %v3083_v61  ;;  %v3184_v44 = vadd.f32 %v3183_v29, %v3084_v9  ;;  %v3227_v54 = vadd.f32 %v3226_v19, %v3085_v42  ;;  %v146_v53 = vld [vmem:[#allocation6 + $0x240] sm:$0xff]  ;;  %v149_v39 = vld [vmem:[#allocation6 + $0x258] sm:$0xff] }
 0x4f1   :  { %v3270_v50 = vadd.f32 %v3269_v23, %v3086_v62  ;;  %v3087_v27 = vmul.f32 %v2932_v60, %v2745_v14  ;;  %v3088_v10 = vmul.f32 %v2932_v60, %v2746_v58  ;;  %v3089_v2 = vmul.f32 %v2932_v60, %v2747_v16  ;;  %v144_v14 = vld [vmem:[#allocation6 + $0x230] sm:$0xff]  ;;  %v145_v58 = vld [vmem:[#allocation6 + $0x238] sm:$0xff]  ;;  %v2947_v8 = vpop.permute.xlu2 %2946 }
 0x4f2   :  { %v3090_v20 = vmul.f32 %v2932_v60, %v2748_v46  ;;  %v3091_v22 = vmul.f32 %v2937_v47, %v2749_v32  ;;  %v3092_v12 = vmul.f32 %v2937_v47, %v2750_v48  ;;  %v3093_v15 = vmul.f32 %v2937_v47, %v2751_v26  ;;  %3706 = vmatpush.bf16.msrb.mxu2 %v4634_v5  ;;  %v148_v60 = vld [vmem:[#allocation6 + $0x250] sm:$0xff] }
 0x4f3   :  { %v3142_v36 = vadd.f32 %v3141_v28, %v3087_v27  ;;  %v3185_v0 = vadd.f32 %v3184_v44, %v3088_v10  ;;  %v3228_v59 = vadd.f32 %v3227_v54, %v3089_v2  ;;  %v3094_v24 = vmul.f32 %v2937_v47, %v2752_v34  ;;  %3719 = vmatpush.bf16.msrb.mxu3 %v4642_v31  ;;  %v4657_v5 = vld [vmem:[%s7011_s5 + $0xf8] sm:$0xff] }
 0x4f4   :  { %v3271_v41 = vadd.f32 %v3270_v50, %v3090_v20  ;;  %v2754_v16 = vunpack.c.h.bf16 %v142_v57  ;;  %v2755_v46 = vunpack.c.l.bf16 %v143_v21  ;;  %v2756_v1 = vunpack.c.h.bf16 %v143_v21  ;;  %3725 = vmatpush.bf16.msra.mxu1 %v4657_v5 }
 0x4f5   :  { %v3143_v43 = vadd.f32 %v3142_v36, %v3091_v22  ;;  %v3186_v45 = vadd.f32 %v3185_v0, %v3092_v12  ;;  %v3229_v37 = vadd.f32 %v3228_v59, %v3093_v15  ;;  %v2758_v30 = vunpack.c.h.bf16 %v144_v14 }
 0x4f6   :  { %v3272_v25 = vadd.f32 %v3271_v41, %v3094_v24  ;;  %v2952_v38 = vpop.permute.xlu0 %2951  ;;  %v2759_v18 = vunpack.c.l.bf16 %v145_v58  ;;  %v2760_v11 = vunpack.c.h.bf16 %v145_v58  ;;  %v2753_v3 = vunpack.c.l.bf16 %v142_v57 }
 0x4f7   :  { %v2762_v33 = vunpack.c.h.bf16 %v146_v53  ;;  %v2763_v4 = vunpack.c.l.bf16 %v147_v55  ;;  %v3096_v13 = vmul.f32 %v2942_v6, %v2754_v16  ;;  %v3097_v61 = vmul.f32 %v2942_v6, %v2755_v46 }
 0x4f8   :  { %v3098_v9 = vmul.f32 %v2942_v6, %v2756_v1  ;;  %v2764_v42 = vunpack.c.h.bf16 %v147_v55  ;;  %v2757_v62 = vunpack.c.l.bf16 %v144_v14  ;;  %v3100_v32 = vmul.f32 %v2947_v8, %v2758_v30 }
 0x4f9   :  { %v3187_v29 = vadd.f32 %v3186_v45, %v3096_v13  ;;  %v3230_v19 = vadd.f32 %v3229_v37, %v3097_v61  ;;  %v3101_v48 = vmul.f32 %v2947_v8, %v2759_v18  ;;  %v3095_v26 = vmul.f32 %v2942_v6, %v2753_v3  ;;  %v2957_v41 = vpop.permute.xlu2 %2956  ;;  %v3315_v3 = vld [vmem:[#allocation4] sm:$0xf] }
 0x4fa   :  { %v3273_v23 = vadd.f32 %v3272_v25, %v3098_v9  ;;  %v2761_v34 = vunpack.c.l.bf16 %v146_v53  ;;  %v3102_v28 = vmul.f32 %v2947_v8, %v2760_v11  ;;  %v3104_v44 = vmul.f32 %v2952_v38, %v2762_v33  ;;  %v4656_v53 = vld [vmem:[%s7011_s5 + $0xf0] sm:$0xff] }
 0x4fb   :  { %v3105_v54 = vmul.f32 %v2952_v38, %v2763_v4  ;;  %v3106_v50 = vmul.f32 %v2952_v38, %v2764_v42  ;;  %v2766_v27 = vunpack.c.h.bf16 %v148_v60  ;;  %v2767_v10 = vunpack.c.l.bf16 %v149_v39  ;;  %3726 = vmatpush.bf16.msra.mxu1 %v4656_v53  ;;  %v4654_v4 = vld [vmem:[%s7011_s5 + $0xe0] sm:$0xff] }
 0x4fc   :  { %v3144_v2 = vadd.f32 %v3143_v43, %v3095_v26  ;;  %v2768_v20 = vunpack.c.h.bf16 %v149_v39  ;;  %v3188_v47 = vadd.f32 %v3187_v29, %v3100_v32  ;;  %v3231_v36 = vadd.f32 %v3230_v19, %v3101_v48  ;;  %v4653_v19 = vld [vmem:[%s7011_s5 + $0xd8] sm:$0xff] }
 0x4fd   :  { %v3274_v0 = vadd.f32 %v3273_v23, %v3102_v28  ;;  %v3099_v59 = vmul.f32 %v2947_v8, %v2757_v62  ;;  %v3103_v22 = vmul.f32 %v2952_v38, %v2761_v34  ;;  %v2765_v45 = vunpack.c.l.bf16 %v148_v60  ;;  %v4655_v8 = vld [vmem:[%s7011_s5 + $0xe8] sm:$0xff] }
 0x4fe   :  { %v3189_v12 = vadd.f32 %v3188_v47, %v3104_v44  ;;  %v3232_v15 = vadd.f32 %v3231_v36, %v3105_v54  ;;  %v3108_v25 = vmul.f32 %v2957_v41, %v2766_v27  ;;  %v3109_v17 = vmul.f32 %v2957_v41, %v2767_v10 }
 0x4ff   :  { %v3275_v24 = vadd.f32 %v3274_v0, %v3106_v50  ;;  %v3145_v37 = vadd.f32 %v3144_v2, %v3099_v59  ;;  %v3110_v63 = vmul.f32 %v2957_v41, %v2768_v20  ;;  %v3107_v43 = vmul.f32 %v2957_v41, %v2765_v45  ;;  %3727 = vmatpush.bf16.msra.mxu1 %v4655_v8  ;;  %v4652_v20 = vld [vmem:[%s7011_s5 + $0xd0] sm:$0xff] }
 0x500   :  { %v3190_v35 = vadd.f32 %v3189_v12, %v3108_v25  ;;  %v3233_v51 = vadd.f32 %v3232_v15, %v3109_v17  ;;  %v3322_v42 = vperm.slane %v3315_v3, 0  ;;  %v3323_v62 = vperm.slane %v3315_v3, 1  ;;  %v4651_v12 = vld [vmem:[%s7011_s5 + $0xc8] sm:$0xff] }
 0x501   :  { %v3146_v52 = vadd.f32 %v3145_v37, %v3103_v22  ;;  %v3276_v7 = vadd.f32 %v3275_v24, %v3110_v63  ;;  %v3324_v60 = vperm.slane %v3315_v3, 2  ;;  %v3325_v39 = vperm.slane %v3315_v3, 3  ;;  %v4650_v24 = vld [vmem:[%s7011_s5 + $0xc0] sm:$0xff] }
 0x502   :  { %v3191_v6 = vrot.slane %v3190_v35, 4  ;;  %v3234_v38 = vrot.slane %v3233_v51, 4 }
 0x503   :  { %v3147_v31 = vadd.f32 %v3146_v52, %v3107_v43  ;;  %3728 = vmatpush.bf16.msra.mxu1 %v4654_v4 }
 0x504   :  { %v3192_v57 = vadd.f32 %v3191_v6, %v3190_v35  ;;  %v3235_v21 = vadd.f32 %v3234_v38, %v3233_v51  ;;  %v3493_v6 = vld [vmem:[%s7012_s6] sm:$0x1] }
 0x506   :  { %v3193_v16 = vrot.slane %v3192_v57, 2  ;;  %v3236_v46 = vrot.slane %v3235_v21, 2 }
 0x507   :  { %3729 = vmatpush.bf16.msra.mxu1 %v4653_v19 }
 0x508   :  { %v3194_v30 = vadd.f32 %v3193_v16, %v3192_v57  ;;  %v3237_v18 = vadd.f32 %v3236_v46, %v3235_v21 }
 0x50a   :  { %v3195_v13 = vrot.slane %v3194_v30, 1  ;;  %v3238_v61 = vrot.slane %v3237_v18, 1 }
 0x50b   :  { %3730 = vmatpush.bf16.msra.mxu1 %v4652_v20 }
 0x50c   :  { %v3196_v23 = vadd.f32 %v3195_v13, %v3194_v30  ;;  %v3239_v32 = vadd.f32 %v3238_v61, %v3237_v18 }
 0x50f   :  { %3731 = vmatpush.bf16.msra.mxu1 %v4651_v12 }
 0x513   :  { %3732 = vmatpush.bf16.msra.mxu1 %v4650_v24 }
 0x547   :  { %v3393_v49 = vpop.trf.xlu0 }
 0x554   :  { %v3299_v56 = vpop.trf.xlu1 }
 0x555   :  { %3318 = vperm.xlu2 %4694, %v3299_v56   ;;  %v3277_v56 = vrot.slane %v3276_v7, 4 }
 0x557   :  { %v3278_v14 = vadd.f32 %v3277_v56, %v3276_v7 }
 0x559   :  { %v3279_v1 = vrot.slane %v3278_v14, 2 }
 0x55b   :  { %v3280_v11 = vadd.f32 %v3279_v1, %v3278_v14 }
 0x55d   :  { %3411 = vperm.xlu2 %4694, %v3393_v49   ;;  %v3148_v49 = vrot.slane %v3147_v31, 4  ;;  %v3281_v9 = vrot.slane %v3280_v11, 1 }
 0x55f   :  { %v3149_v58 = vadd.f32 %v3148_v49, %v3147_v31  ;;  %v3282_v48 = vadd.f32 %v3281_v9, %v3280_v11 }
 0x561   :  { %v3150_v55 = vrot.slane %v3149_v58, 2 }
 0x563   :  { %v3151_v33 = vadd.f32 %v3150_v55, %v3149_v58 }
 0x565   :  { %v3152_v29 = vrot.slane %v3151_v33, 1 }
 0x567   :  { %v3153_v50 = vadd.f32 %v3152_v29, %v3151_v33 }
 0x5af   :  { %v3319_v26 = vpop.permute.xlu2 %3318 }
 0x5b0   :  { %v3330_v34 = vmul.f32 %v3322_v42, %v3319_v26  ;;  %v3331_v28 = vmul.f32 %v3323_v62, %v3319_v26  ;;  %v3332_v44 = vmul.f32 %v3324_v60, %v3319_v26  ;;  %v3333_v54 = vmul.f32 %v3325_v39, %v3319_v26 }
 0x5b2   :  { %v3335_v27 = vadd.f32 %v3331_v28, %v3196_v23  ;;  %v3336_v10 = vadd.f32 %v3332_v44, %v3239_v32  ;;  %v3337_v2 = vadd.f32 %v3333_v54, %v3282_v48  ;;  %v3334_v47 = vadd.f32 %v3330_v34, %v3153_v50 }
 0x5b4   :  { %v3342_v36 = vrot.slane %v3335_v27, 7  ;;  %v3343_v0 = vrot.slane %v3336_v10, 6  ;;  %v3344_v59 = vrot.slane %v3337_v2, 5 }
 0x5b6   :  { %v3346_v41 = vsel %vm3345_vm9, %v3334_v47, %v3342_v36  ;;  %v3348_v22 = vsel %vm3347_vm10, %v3343_v0, %v3344_v59 }
 0x5b7   :  { %v3350_v15 = vsel %vm3349_vm11, %v3346_v41, %v3348_v22  ;;  %v3412_v45 = vpop.permute.xlu2 %3411 }
 0x5b8   :  { %3356 = vst.msk [vmem:[#allocation4] sm:$0xf] %vm6045_vm2, %v3350_v15  ;;  %v3413_v37 = vperm.slane %v3412_v45, 0 }
 0x5bf   :  { %v3376_v25 = vld [vmem:[#allocation4] sm:$0xf] }
 0x5c0   :  { %v3415_v17 = vmul.f32 %v3413_v37, %v3376_v25 }
 0x5c2   :  { %v3417_v63 = vperm.slane %v3415_v17, 0  ;;  %v3418_v52 = vperm.slane %v3415_v17, 1  ;;  %v3419_v35 = vperm.slane %v3415_v17, 2  ;;  %v3420_v40 = vperm.slane %v3415_v17, 3 }
 0x5c4   :  { %v3425_v51 = vpack.c.bf16 %v3417_v63, %v3417_v63  ;;  %v3426_v7 = vpack.c.bf16 %v3418_v52, %v3418_v52  ;;  %v3427_v43 = vpack.c.bf16 %v3419_v35, %v3419_v35  ;;  %v3428_v5 = vpack.c.bf16 %v3420_v40, %v3420_v40 }
 0x5c6   :  { %3694 = vmatmul.bf16.vlgmr.msrb.gmra.mxu1 %v3425_v51  ;;  %3707 = vmatmul.bf16.vlgmr.msrb.gmra.mxu2 %v3426_v7 }
 0x5c7   :  { %3720 = vmatmul.bf16.vlgmr.msrb.gmra.mxu3 %v3427_v43 }
 0x5d6   :  { %3733 = vmatmul.bf16.vlgmr.msra.gmra.mxu1 %v3428_v5 }
 0x643   :  { %v3695_v31 = vpop.f32.mrf.mxu1 }
 0x644   :  { %v3696_v57 = vadd.f32 %v3695_v31, %v3493_v6 }
 0x649   :  { %v3708_v38 = vpop.f32.mrf.mxu2 }
 0x64a   :  { %v3721_v56 = vpop.f32.mrf.mxu3  ;;  %v3709_v21 = vadd.f32 %v3708_v38, %v3696_v57 }
 0x64b   :  { %v3697_v49 = vpop.f32.mrf.mxu1 }
 0x64c   :  { %v3722_v58 = vadd.f32 %v3721_v56, %v3709_v21 }
 0x651   :  { %v3710_v14 = vpop.f32.mrf.mxu2 }
 0x652   :  { %v3723_v16 = vpop.f32.mrf.mxu3 }
 0x653   :  { %v3734_v46 = vpop.f32.mrf.mxu1 }
 0x654   :  { %v3735_v1 = vadd.f32 %v3734_v46, %v3722_v58 }
 0x656   :  { %3739 = vst.msk [vmem:[#allocation11] sm:$0x1] %vm3738_vm12, %v3735_v1 }
 0x657   :  { %3750 = dma.vmem_to_hbm [thread:$0]  %s3746_s16, 16, %s3748_s19, [#allocation8]  }
 0x65b   :  { %v3736_v53 = vpop.f32.mrf.mxu1 }
 0x65c   :  { %5005 = dma.done.wait [#allocation8], 16  }
 0x65d   :  { %5006 = vsyncadd [#allocation8], 4294967280 }
 0x65e   :  { %3755 = vsyncpa [#allocation7], 1 }
 0x65f   :  { %3756 = vsyncpa [#allocation10], 1 }
 0x660   :  { %3757 = vsyncpa [#allocation8], 1 }

</bundles_post_ra>
